<compile_context>
chip_gen: v7x
topology: tpu7x:2x2x1
jax: 0.10.0
libtpu: 0.0.40
codegen_flags: <defaults>
</compile_context>

<pallas_src>
import functools
import math

import jax
import jax.numpy as jnp
from jax.experimental import pallas as pl
from jax.experimental.pallas import tpu as pltpu

LN_EPS = 1e-12  # HF Roberta layer_norm_eps default


def _round_up(x, m):
    return ((x + m - 1) // m) * m


def _pad2(a, rows, cols):
    r, c = a.shape
    if r == rows and c == cols:
        return a
    return jnp.pad(a, ((0, rows - r), (0, cols - c)))


def _ln_body(x, g, b):
    mu = jnp.mean(x, axis=-1, keepdims=True)
    xc = x - mu
    var = jnp.mean(xc * xc, axis=-1, keepdims=True)
    return xc * jax.lax.rsqrt(var + LN_EPS) * g + b


# -----------------------------------------------------------------------------
# Tiled dense: bf16 MXU matmul + bias + optional activation + optional fused
# residual-add + LayerNorm epilogue (k == last).  f32 VMEM accumulator.
# -----------------------------------------------------------------------------
def _dense_kernel(*refs, activation, has_residual, has_ln):
    it = iter(refs)
    x_ref, w_ref, b_ref = next(it), next(it), next(it)
    r_ref = next(it) if has_residual else None
    g_ref = next(it) if has_ln else None
    be_ref = next(it) if has_ln else None
    o_ref, acc_ref = next(it), next(it)

    k = pl.program_id(2)

    @pl.when(k == 0)
    def _():
        acc_ref[...] = jnp.zeros_like(acc_ref)

    acc_ref[...] += jnp.dot(x_ref[...], w_ref[...],
                            preferred_element_type=jnp.float32)

    @pl.when(k == pl.num_programs(2) - 1)
    def _():
        y = acc_ref[...] + b_ref[...]
        if activation == "gelu":      # exact (erf) GELU, as in HF Roberta
            y = 0.5 * y * (1.0 + jax.lax.erf(y * jnp.float32(1.0 / math.sqrt(2.0))))
        elif activation == "relu":
            y = jnp.maximum(y, 0.0)
        elif activation == "tanh":
            y = jnp.tanh(y)
        if has_residual:
            y = y + r_ref[...].astype(jnp.float32)
        if has_ln:
            y = _ln_body(y, g_ref[...], be_ref[...])
        o_ref[...] = y.astype(o_ref.dtype)


def dense(x, w, b, activation=None, residual=None, ln=None, out_dtype=jnp.bfloat16):
    """y = act(x @ w + b) [+ residual] [-> LayerNorm].  x, residual in bf16."""
    M, K = x.shape
    N = w.shape[1]
    tm = min(256, _round_up(M, 8))
    tn = min(512, _round_up(N, 128))
    tk = min(1024, _round_up(K, 128))
    Mp, Kp, Np = _round_up(M, tm), _round_up(K, tk), _round_up(N, tn)
    if ln is not None:
        # LayerNorm epilogue needs the full (unpadded) row inside one N tile.
        assert N == Np == tn, "LayerNorm fusion requires N == single 128-multiple tile"

    xp = _pad2(x.astype(jnp.bfloat16), Mp, Kp)
    wp = _pad2(w.astype(jnp.bfloat16), Kp, Np)
    bp = _pad2(b.reshape(1, N).astype(jnp.float32), 1, Np)

    in_arrays = [xp, wp, bp]
    in_specs = [
        pl.BlockSpec((tm, tk), lambda i, j, k: (i, k)),
        pl.BlockSpec((tk, tn), lambda i, j, k: (k, j)),
        pl.BlockSpec((1, tn), lambda i, j, k: (0, j)),
    ]
    if residual is not None:
        in_arrays.append(_pad2(residual.astype(jnp.bfloat16), Mp, Np))
        in_specs.append(pl.BlockSpec((tm, tn), lambda i, j, k: (i, j)))
    if ln is not None:
        g, be = ln
        in_arrays.append(g.reshape(1, N).astype(jnp.float32))
        in_arrays.append(be.reshape(1, N).astype(jnp.float32))
        in_specs.append(pl.BlockSpec((1, tn), lambda i, j, k: (0, j)))
        in_specs.append(pl.BlockSpec((1, tn), lambda i, j, k: (0, j)))

    grid = (Mp // tm, Np // tn, Kp // tk)
    kernel = functools.partial(_dense_kernel, activation=activation,
                               has_residual=residual is not None,
                               has_ln=ln is not None)
    out = pl.pallas_call(
        kernel,
        out_shape=jax.ShapeDtypeStruct((Mp, Np), out_dtype),
        grid=grid,
        in_specs=in_specs,
        out_specs=pl.BlockSpec((tm, tn), lambda i, j, k: (i, j)),
        scratch_shapes=[pltpu.VMEM((tm, tn), jnp.float32)],
        compiler_params=pltpu.CompilerParams(
            dimension_semantics=("parallel", "parallel", "arbitrary")),
        cost_estimate=pl.CostEstimate(
            flops=2 * Mp * Np * Kp,
            transcendentals=0,
            bytes_accessed=2 * Mp * Kp * (Np // tn) + 2 * Kp * Np + 4 * Np + 2 * Mp * Np),
    )(*in_arrays)
    if Mp == M and Np == N:
        return out
    return out[:M, :N]


# -----------------------------------------------------------------------------
# Standalone LayerNorm (embedding LN only; every other LN is fused into dense)
# -----------------------------------------------------------------------------
def _ln_kernel(x_ref, g_ref, b_ref, o_ref):
    o_ref[...] = _ln_body(x_ref[...].astype(jnp.float32),
                          g_ref[...], b_ref[...]).astype(o_ref.dtype)


def layernorm(x, g, b, out_dtype=jnp.bfloat16):
    M, D = x.shape
    tr = min(512, _round_up(M, 8))
    Mp = _round_up(M, tr)
    xp = _pad2(x, Mp, D)
    g2 = g.reshape(1, D).astype(jnp.float32)
    b2 = b.reshape(1, D).astype(jnp.float32)
    row_spec = pl.BlockSpec((tr, D), lambda i: (i, 0))
    vec_spec = pl.BlockSpec((1, D), lambda i: (0, 0))
    out = pl.pallas_call(
        _ln_kernel, out_shape=jax.ShapeDtypeStruct((Mp, D), out_dtype),
        grid=(Mp // tr,), in_specs=[row_spec, vec_spec, vec_spec],
        out_specs=row_spec,
        compiler_params=pltpu.CompilerParams(dimension_semantics=("parallel",)),
    )(xp, g2, b2)
    return out if Mp == M else out[:M]


# -----------------------------------------------------------------------------
# Multi-head attention: one grid step per batch, all heads in-kernel.
# Heads are sliced from the fused QKV / KV projections inside the kernel and the
# per-head contexts are concatenated so the output store is lane-dense (width D).
# -----------------------------------------------------------------------------
def _mha_core(q_full, k_full, v_full, mask, H, Dh, scale, causal):
    # q_full: (Sq, H*Dh) bf16, k_full/v_full: (Sk, H*Dh) bf16, mask: (1, Sk) f32 in {0,1}
    Sq, Sk = q_full.shape[0], k_full.shape[0]
    add_mask = (1.0 - mask) * jnp.float32(-1e9)          # (1, Sk) additive padding mask
    if causal:
        row = jax.lax.broadcasted_iota(jnp.int32, (Sq, Sk), 0)
        col = jax.lax.broadcasted_iota(jnp.int32, (Sq, Sk), 1)
        causal_add = jnp.where(col <= row, 0.0, jnp.float32(-1e9))
    ctx = []
    for h in range(H):                                   # static loop over heads
        sl = slice(h * Dh, (h + 1) * Dh)
        q = (q_full[:, sl].astype(jnp.float32) * scale).astype(jnp.bfloat16)
        k = k_full[:, sl]
        v = v_full[:, sl]
        # contract on Dh directly: no XLU transpose of K
        s = jax.lax.dot_general(q, k, (((1,), (1,)), ((), ())),
                                preferred_element_type=jnp.float32)   # (Sq, Sk)
        s = s + add_mask
        if causal:
            s = s + causal_add
        s = s - jnp.max(s, axis=-1, keepdims=True)
        p = jnp.exp(s)
        p = p * pl.reciprocal(jnp.sum(p, axis=-1, keepdims=True), approx=True)
        ctx.append(jnp.dot(p.astype(jnp.bfloat16), v,
                           preferred_element_type=jnp.float32))       # (Sq, Dh)
    return jnp.concatenate(ctx, axis=-1)                 # (Sq, H*Dh) f32, lane-dense


def _self_attn_kernel(qkv_ref, m_ref, o_ref, *, H, Dh, scale, causal):
    qkv = qkv_ref[0]                                     # (Sq, 3*D) bf16
    D = H * Dh
    q, k, v = qkv[:, :D], qkv[:, D:2 * D], qkv[:, 2 * D:]
    o_ref[0] = _mha_core(q, k, v, m_ref[0], H, Dh, scale, causal).astype(o_ref.dtype)


def _cross_attn_kernel(q_ref, kv_ref, m_ref, o_ref, *, H, Dh, scale):
    kv = kv_ref[0]                                       # (Sk, 2*D) bf16
    D = H * Dh
    o_ref[0] = _mha_core(q_ref[0], kv[:, :D], kv[:, D:], m_ref[0],
                         H, Dh, scale, False).astype(o_ref.dtype)


def mha_self(qkv, mask, H, causal):
    # qkv: [B, S, 3D] bf16 (fused QKV projection), mask: [B, S] in {0,1}
    B, S, D3 = qkv.shape
    D = D3 // 3
    Dh = D // H
    mask3 = mask.reshape(B, 1, S).astype(jnp.float32)
    kernel = functools.partial(_self_attn_kernel, H=H, Dh=Dh,
                               scale=1.0 / math.sqrt(Dh), causal=causal)
    return pl.pallas_call(
        kernel,
        out_shape=jax.ShapeDtypeStruct((B, S, D), jnp.bfloat16),
        grid=(B,),
        in_specs=[pl.BlockSpec((1, S, D3), lambda i: (i, 0, 0)),
                  pl.BlockSpec((1, 1, S), lambda i: (i, 0, 0))],
        out_specs=pl.BlockSpec((1, S, D), lambda i: (i, 0, 0)),
        compiler_params=pltpu.CompilerParams(dimension_semantics=("parallel",)),
    )(qkv, mask3)


def mha_cross(q, kv, mask, H):
    # q: [B, Sq, D] bf16, kv: [B, Sk, 2D] bf16 (fused KV projection), mask: [B, Sk]
    B, Sq, D = q.shape
    Sk = kv.shape[1]
    Dh = D // H
    mask3 = mask.reshape(B, 1, Sk).astype(jnp.float32)
    kernel = functools.partial(_cross_attn_kernel, H=H, Dh=Dh,
                               scale=1.0 / math.sqrt(Dh))
    return pl.pallas_call(
        kernel,
        out_shape=jax.ShapeDtypeStruct((B, Sq, D), jnp.bfloat16),
        grid=(B,),
        in_specs=[pl.BlockSpec((1, Sq, D), lambda i: (i, 0, 0)),
                  pl.BlockSpec((1, Sk, 2 * D), lambda i: (i, 0, 0)),
                  pl.BlockSpec((1, 1, Sk), lambda i: (i, 0, 0))],
        out_specs=pl.BlockSpec((1, Sq, D), lambda i: (i, 0, 0)),
        compiler_params=pltpu.CompilerParams(dimension_semantics=("parallel",)),
    )(q, kv, mask3)


# -----------------------------------------------------------------------------
# Transformer glue (parameter plumbing; activations stay bf16 throughout)
# -----------------------------------------------------------------------------
def transformer_layer(x, enc_h, self_mask, cross_mask, p, H, causal):
    B, S, D = x.shape
    x2 = x.reshape(B * S, D)
    # Self-attention: fused QKV proj -> per-batch MHA -> out-proj + residual + LN (fused)
    qkv = dense(x2, p["self"]["w_qkv"], p["self"]["b_qkv"]).reshape(B, S, 3 * D)
    ctx = mha_self(qkv, self_mask, H, causal).reshape(B * S, D)
    h = dense(ctx, p["self"]["wo"], p["self"]["bo"],
              residual=x2, ln=(p["ln1_g"], p["ln1_b"]))
    if "cross" in p:
        Sk = enc_h.shape[1]
        q = dense(h, p["cross"]["wq"], p["cross"]["bq"]).reshape(B, S, D)
        kv = dense(enc_h.reshape(B * Sk, D),
                   p["cross"]["w_kv"], p["cross"]["b_kv"]).reshape(B, Sk, 2 * D)
        cctx = mha_cross(q, kv, cross_mask, H).reshape(B * S, D)
        h = dense(cctx, p["cross"]["wo"], p["cross"]["bo"],
                  residual=h, ln=(p["lnx_g"], p["lnx_b"]))
    # FFN: gelu matmul -> second matmul + residual + LN (fused)
    ff = dense(h, p["wi"], p["bi"], activation="gelu")
    h = dense(ff, p["wo2"], p["bo2"], residual=h, ln=(p["ln2_g"], p["ln2_b"]))
    return h.reshape(B, S, D)


def roberta_forward(p, attention_mask, H, *, input_ids=None, inputs_embeds=None,
                    enc_hidden=None, enc_attention_mask=None, causal=False, with_head=True):
    if inputs_embeds is None:
        inputs_embeds = jnp.take(p["emb"]["word"], input_ids, axis=0)
    B, S, D = inputs_embeds.shape
    h = inputs_embeds + p["emb"]["pos"][:S][None] + p["emb"]["type"][0][None, None]
    h = layernorm(h.reshape(B * S, D), p["emb"]["ln_g"], p["emb"]["ln_b"]).reshape(B, S, D)
    for lp in p["layers"]:
        h = transformer_layer(h, enc_hidden, attention_mask, enc_attention_mask, lp, H, causal)
    if not with_head:
        return h                                     # == hidden_states[-1] (bf16)
    # LM / AM head: dense -> gelu -> layernorm (fused) -> output projection (+ bias)
    x = dense(h.reshape(B * S, D), p["head"]["w1"], p["head"]["b1"],
              activation="gelu", ln=(p["head"]["ln_g"], p["head"]["ln_b"]))
    out = dense(x, p["head"]["w2"], p["head"]["b2"])
    return out.reshape(B, S, p["head"]["w2"].shape[1])


def encoder_decoder_text(params, encoder_inputs_embeds, encoder_attention_mask,
                         decoder_input_ids, decoder_attention_mask, H):
    # modality='text': acoustic (AM) encoder + text (LM) decoder with cross-attention.
    enc_h = roberta_forward(params["encoder"], encoder_attention_mask, H,
                            inputs_embeds=encoder_inputs_embeds, with_head=False)
    return roberta_forward(params["decoder"], decoder_attention_mask, H,
                           input_ids=decoder_input_ids, enc_hidden=enc_h,
                           enc_attention_mask=encoder_attention_mask,
                           causal=True, with_head=True)


def encoder_decoder_speech(params, encoder_input_ids, encoder_attention_mask,
                           decoder_inputs_embeds, decoder_attention_mask, H):
    # modality='speech': text (LM) encoder + acoustic (AM) decoder with cross-attention.
    enc_h = roberta_forward(params["encoder"], encoder_attention_mask, H,
                            input_ids=encoder_input_ids, with_head=False)
    return roberta_forward(params["decoder"], decoder_attention_mask, H,
                           inputs_embeds=decoder_inputs_embeds, enc_hidden=enc_h,
                           enc_attention_mask=encoder_attention_mask,
                           causal=True, with_head=True)


def multimodal_forward(params,
                       text_encoder_inputs, text_encoder_attention_mask,
                       text_decoder_inputs, text_decoder_attention_mask,
                       speech_encoder_inputs, speech_encoder_attention_mask,
                       speech_decoder_inputs, speech_decoder_attention_mask, H):
    text_hidden = encoder_decoder_text(
        params["text_model"], text_encoder_inputs, text_encoder_attention_mask,
        text_decoder_inputs, text_decoder_attention_mask, H)          # [B, S_td, V] bf16
    speech_hidden = encoder_decoder_speech(
        params["speech_model"], speech_encoder_inputs, speech_encoder_attention_mask,
        speech_decoder_inputs, speech_decoder_attention_mask, H)      # [B, S_sd, D] bf16

    B, S_sd, D = speech_hidden.shape
    # pool_type == 'attention'
    text_pooled = text_hidden[:, 0, :].astype(jnp.float32)
    sh = dense(speech_hidden.reshape(B * S_sd, D),
               params["speech_att_linear"]["w"], params["speech_att_linear"]["b"],
               activation="tanh").reshape(B, S_sd, D)
    scores = dense(sh.reshape(B * S_sd, D),
                   params["speech_att_attention"]["w"],
                   params["speech_att_attention"]["b"],
                   out_dtype=jnp.float32).reshape(B, S_sd, 1)
    m = speech_decoder_attention_mask[:, :, None]
    scores = scores * m - 99999.0 * (1.0 - m)
    w = jax.nn.softmax(scores, axis=1)
    speech_pooled = jnp.einsum("bs,bsd->bd", w[:, :, 0], sh).astype(jnp.float32)

    fuse = jnp.concatenate([text_pooled, speech_pooled], axis=-1)
    h1 = dense(fuse, params["fuse"]["w1"], params["fuse"]["b1"], activation="relu")
    hiddens = dense(h1, params["fuse"]["w2"], params["fuse"]["b2"],
                    activation="relu", out_dtype=jnp.float32)
    logits = dense(hiddens, params["out"]["w"], params["out"]["b"],
                   out_dtype=jnp.float32)
    return logits, hiddens


# -----------------------------------------------------------------------------
# Deterministic parameter initialization (weights bf16, norms/biases/embeddings f32)
# -----------------------------------------------------------------------------
class KeyGen:
    def __init__(self, key):
        self.key = key

    def __call__(self):
        self.key, k = jax.random.split(self.key)
        return k


def _lin(kg, din, dout):
    w = (0.02 * jax.random.normal(kg(), (din, dout), jnp.float32)).astype(jnp.bfloat16)
    return w, jnp.zeros((dout,), jnp.float32)


def _self_attn_params(kg, D):
    w_qkv, b_qkv = _lin(kg, D, 3 * D)
    wo, bo = _lin(kg, D, D)
    return dict(w_qkv=w_qkv, b_qkv=b_qkv, wo=wo, bo=bo)


def _cross_attn_params(kg, D):
    wq, bq = _lin(kg, D, D)
    w_kv, b_kv = _lin(kg, D, 2 * D)
    wo, bo = _lin(kg, D, D)
    return dict(wq=wq, bq=bq, w_kv=w_kv, b_kv=b_kv, wo=wo, bo=bo)


def _layer_params(kg, D, F, cross):
    wi, bi = _lin(kg, D, F)
    wo2, bo2 = _lin(kg, F, D)
    p = dict(self=_self_attn_params(kg, D),
             ln1_g=jnp.ones((D,), jnp.float32), ln1_b=jnp.zeros((D,), jnp.float32),
             wi=wi, bi=bi, wo2=wo2, bo2=bo2,
             ln2_g=jnp.ones((D,), jnp.float32), ln2_b=jnp.zeros((D,), jnp.float32))
    if cross:
        p["cross"] = _cross_attn_params(kg, D)
        p["lnx_g"] = jnp.ones((D,), jnp.float32)
        p["lnx_b"] = jnp.zeros((D,), jnp.float32)
    return p


def _roberta_params(kg, D, F, n_layers, max_pos, vocab=None, cross=False, head_out=None):
    emb = dict(pos=0.02 * jax.random.normal(kg(), (max_pos, D), jnp.float32),
               type=0.02 * jax.random.normal(kg(), (1, D), jnp.float32),
               ln_g=jnp.ones((D,), jnp.float32), ln_b=jnp.zeros((D,), jnp.float32))
    if vocab is not None:
        emb["word"] = 0.02 * jax.random.normal(kg(), (vocab, D), jnp.float32)
    p = dict(emb=emb, layers=[_layer_params(kg, D, F, cross) for _ in range(n_layers)])
    if head_out is not None:
        w1, b1 = _lin(kg, D, D)
        w2, b2 = _lin(kg, D, head_out)
        p["head"] = dict(w1=w1, b1=b1,
                         ln_g=jnp.ones((D,), jnp.float32), ln_b=jnp.zeros((D,), jnp.float32),
                         w2=w2, b2=b2)
    return p


def init_params(key, D, F, n_layers, vocab, max_pos, num_classes):
    kg = KeyGen(key)
    text_model = dict(
        encoder=_roberta_params(kg, D, F, n_layers, max_pos, vocab=None, cross=False, head_out=None),
        decoder=_roberta_params(kg, D, F, n_layers, max_pos, vocab=vocab, cross=True, head_out=vocab),
    )
    speech_model = dict(
        encoder=_roberta_params(kg, D, F, n_layers, max_pos, vocab=vocab, cross=False, head_out=None),
        decoder=_roberta_params(kg, D, F, n_layers, max_pos, vocab=None, cross=True, head_out=D),
    )
    w_al, b_al = _lin(kg, D, D)
    w_aa, b_aa = _lin(kg, D, 1)
    in_features = vocab + D
    hid = in_features // 2
    w_f1, b_f1 = _lin(kg, in_features, hid)
    w_f2, b_f2 = _lin(kg, hid, hid)
    w_o, b_o = _lin(kg, hid, num_classes)
    return dict(text_model=text_model, speech_model=speech_model,
                speech_att_linear=dict(w=w_al, b=b_al),
                speech_att_attention=dict(w=w_aa, b=b_aa),
                fuse=dict(w1=w_f1, b1=b_f1, w2=w_f2, b2=b_f2),
                out=dict(w=w_o, b=b_o))


# -----------------------------------------------------------------------------
if __name__ == "__main__":
    B = 2
    S_TE, S_TD = 8, 8          # text_model: acoustic-encoder seq, text-decoder seq
    S_SE, S_SD = 8, 8          # speech_model: text-encoder seq, acoustic-decoder seq
    D, H, F = 128, 2, 256
    VOCAB, N_LAYERS, MAX_POS, NUM_CLASSES = 128, 2, 64, 8

    root = jax.random.PRNGKey(0)
    k_par, k_te, k_td, k_se, k_sd = jax.random.split(root, 5)

    params = init_params(k_par, D, F, N_LAYERS, VOCAB, MAX_POS, NUM_CLASSES)

    text_encoder_inputs = jax.random.normal(k_te, (B, S_TE, D), jnp.float32)   # acoustic feats
    text_encoder_attention_mask = jnp.ones((B, S_TE), jnp.float32)
    text_decoder_inputs = jax.random.randint(k_td, (B, S_TD), 0, VOCAB)        # text ids
    text_decoder_attention_mask = jnp.ones((B, S_TD), jnp.float32)

    speech_encoder_inputs = jax.random.randint(k_se, (B, S_SE), 0, VOCAB)      # text ids
    speech_encoder_attention_mask = jnp.ones((B, S_SE), jnp.float32)
    speech_decoder_inputs = jax.random.normal(k_sd, (B, S_SD, D), jnp.float32) # acoustic feats
    speech_decoder_attention_mask = jnp.ones((B, S_SD), jnp.float32)

    fwd = jax.jit(functools.partial(multimodal_forward, H=H))
    logits, hiddens = fwd(params,
                          text_encoder_inputs, text_encoder_attention_mask,
                          text_decoder_inputs, text_decoder_attention_mask,
                          speech_encoder_inputs, speech_encoder_attention_mask,
                          speech_decoder_inputs, speech_decoder_attention_mask)
    jax.block_until_ready((logits, hiddens))

    assert logits.shape == (B, NUM_CLASSES), logits.shape
    assert hiddens.shape == (B, (VOCAB + D) // 2), hiddens.shape
    assert bool(jnp.all(jnp.isfinite(logits))) and bool(jnp.all(jnp.isfinite(hiddens)))
    print("KERNEL_OK")
</pallas_src>

<mosaic_0001>
module attributes {stable_mosaic.version = 11 : i64} {
  func.func @_ln_kernel(%arg0: i32, %arg1: memref<16x128xf32, #tpu.memory_space<vmem>>, %arg2: memref<1x128xf32, #tpu.memory_space<vmem>>, %arg3: memref<1x128xf32, #tpu.memory_space<vmem>>, %arg4: memref<16x128xbf16, #tpu.memory_space<vmem>>) attributes {dimension_semantics = [#tpu.dimension_semantics<parallel>], iteration_bounds = array<i64: 1>, scalar_prefetch = 0 : i64, scratch_operands = 0 : i64, tpu.core_type = #tpu.core_type<tc>, window_params = [{transform_indices = @transform_0, window_bounds = array<i64: 16, 128>}, {pipeline_mode = #tpu.pipeline_mode<synchronous>, transform_indices = @transform_1, window_bounds = array<i64: 1, 128>}, {pipeline_mode = #tpu.pipeline_mode<synchronous>, transform_indices = @transform_2, window_bounds = array<i64: 1, 128>}, {transform_indices = @transform_3, window_bounds = array<i64: 16, 128>}]} {
    %c0 = arith.constant 0 : index
    %c0_0 = arith.constant 0 : index
    %0 = vector.load %arg1[%c0, %c0_0] : memref<16x128xf32, #tpu.memory_space<vmem>>, vector<16x128xf32>
    %c0_1 = arith.constant 0 : index
    %c0_2 = arith.constant 0 : index
    %1 = vector.load %arg2[%c0_1, %c0_2] : memref<1x128xf32, #tpu.memory_space<vmem>>, vector<1x128xf32>
    %c0_3 = arith.constant 0 : index
    %c0_4 = arith.constant 0 : index
    %2 = vector.load %arg3[%c0_3, %c0_4] : memref<1x128xf32, #tpu.memory_space<vmem>>, vector<1x128xf32>
    %cst = arith.constant dense<0.000000e+00> : vector<16xf32>
    %3 = vector.multi_reduction <add>, %0, %cst [1] : vector<16x128xf32> to vector<16xf32>
    %4 = vector.shape_cast %3 : vector<16xf32> to vector<16x1xf32>
    %cst_5 = arith.constant 1.280000e+02 : f32
    %5 = vector.broadcast %cst_5 : f32 to vector<16x1xf32>
    %6 = arith.divf %4, %5 : vector<16x1xf32>
    %7 = vector.broadcast %6 : vector<16x1xf32> to vector<16x128xf32>
    %8 = arith.subf %0, %7 : vector<16x128xf32>
    %9 = arith.mulf %8, %8 : vector<16x128xf32>
    %cst_6 = arith.constant dense<0.000000e+00> : vector<16xf32>
    %10 = vector.multi_reduction <add>, %9, %cst_6 [1] : vector<16x128xf32> to vector<16xf32>
    %11 = vector.shape_cast %10 : vector<16xf32> to vector<16x1xf32>
    %cst_7 = arith.constant 1.280000e+02 : f32
    %12 = vector.broadcast %cst_7 : f32 to vector<16x1xf32>
    %13 = arith.divf %11, %12 : vector<16x1xf32>
    %cst_8 = arith.constant 9.99999996E-13 : f32
    %14 = vector.broadcast %cst_8 : f32 to vector<16x1xf32>
    %15 = arith.addf %13, %14 : vector<16x1xf32>
    %16 = math.rsqrt %15 : vector<16x1xf32>
    %17 = vector.broadcast %16 : vector<16x1xf32> to vector<16x128xf32>
    %18 = arith.mulf %8, %17 : vector<16x128xf32>
    %19 = vector.broadcast %1 : vector<1x128xf32> to vector<16x128xf32>
    %20 = arith.mulf %18, %19 : vector<16x128xf32>
    %21 = vector.broadcast %2 : vector<1x128xf32> to vector<16x128xf32>
    %22 = arith.addf %20, %21 : vector<16x128xf32>
    %23 = arith.truncf %22 : vector<16x128xf32> to vector<16x128xbf16>
    %c0_9 = arith.constant 0 : index
    %c0_10 = arith.constant 0 : index
    %24 = vector.load %arg4[%c0_9, %c0_10] : memref<16x128xbf16, #tpu.memory_space<vmem>>, vector<16x128xbf16>
    tpu.vector_store %arg4[%c0_9, %c0_10], %23 {strides = array<i32>} : memref<16x128xbf16, #tpu.memory_space<vmem>>, vector<16x128xbf16>,
    return
  }
  func.func @transform_0(%arg0: i32) -> (i32, i32) {
    %c0_i32 = arith.constant 0 : i32
    %c0_i32_0 = arith.constant 0 : i32
    return %arg0, %c0_i32 : i32, i32
  }
  func.func @transform_1(%arg0: i32) -> (i32, i32) {
    %c0_i32 = arith.constant 0 : i32
    %c0_i32_0 = arith.constant 0 : i32
    %c0_i32_1 = arith.constant 0 : i32
    return %c0_i32, %c0_i32_0 : i32, i32
  }
  func.func @transform_2(%arg0: i32) -> (i32, i32) {
    %c0_i32 = arith.constant 0 : i32
    %c0_i32_0 = arith.constant 0 : i32
    %c0_i32_1 = arith.constant 0 : i32
    return %c0_i32, %c0_i32_0 : i32, i32
  }
  func.func @transform_3(%arg0: i32) -> (i32, i32) {
    %c0_i32 = arith.constant 0 : i32
    %c0_i32_0 = arith.constant 0 : i32
    return %arg0, %c0_i32 : i32, i32
  }
}

module attributes {stable_mosaic.version = 11 : i64} {
  func.func @_dense_kernel(%arg0: i32, %arg1: i32, %arg2: i32, %arg3: memref<16x128xbf16, #tpu.memory_space<vmem>>, %arg4: memref<128x384xbf16, #tpu.memory_space<vmem>>, %arg5: memref<1x384xf32, #tpu.memory_space<vmem>>, %arg6: memref<16x384xbf16, #tpu.memory_space<vmem>>, %arg7: memref<16x384xf32, #tpu.memory_space<vmem>>) attributes {dimension_semantics = [#tpu.dimension_semantics<parallel>, #tpu.dimension_semantics<parallel>, #tpu.dimension_semantics<arbitrary>], iteration_bounds = array<i64: 1, 1, 1>, scalar_prefetch = 0 : i64, scratch_operands = 1 : i64, tpu.core_type = #tpu.core_type<tc>, window_params = [{transform_indices = @transform_0, window_bounds = array<i64: 16, 128>}, {transform_indices = @transform_1, window_bounds = array<i64: 128, 384>}, {transform_indices = @transform_2, window_bounds = array<i64: 1, 384>}, {transform_indices = @transform_3, window_bounds = array<i64: 16, 384>}]} {
    %c0_i32 = arith.constant 0 : i32
    %0 = arith.cmpi eq, %arg2, %c0_i32 : i32
    %1 = arith.extui %0 : i1 to i32
    %c0_i32_0 = arith.constant 0 : i32
    %2 = arith.cmpi ne, %1, %c0_i32_0 : i32
    scf.if %2 {
      %cst_10 = arith.constant 0.000000e+00 : f32
      %12 = vector.broadcast %cst_10 : f32 to vector<16x384xf32>
      %c0_11 = arith.constant 0 : index
      %c0_12 = arith.constant 0 : index
      %13 = vector.load %arg7[%c0_11, %c0_12] : memref<16x384xf32, #tpu.memory_space<vmem>>, vector<16x384xf32>
      tpu.vector_store %arg7[%c0_11, %c0_12], %12 {strides = array<i32>} : memref<16x384xf32, #tpu.memory_space<vmem>>, vector<16x384xf32>,
    } else {
    }
    %c0 = arith.constant 0 : index
    %c0_1 = arith.constant 0 : index
    %3 = vector.load %arg7[%c0, %c0_1] : memref<16x384xf32, #tpu.memory_space<vmem>>, vector<16x384xf32>
    %c0_2 = arith.constant 0 : index
    %c0_3 = arith.constant 0 : index
    %4 = vector.load %arg3[%c0_2, %c0_3] : memref<16x128xbf16, #tpu.memory_space<vmem>>, vector<16x128xbf16>
    %c0_4 = arith.constant 0 : index
    %c0_5 = arith.constant 0 : index
    %5 = vector.load %arg4[%c0_4, %c0_5] : memref<128x384xbf16, #tpu.memory_space<vmem>>, vector<128x384xbf16>
    %cst = arith.constant dense<0.000000e+00> : vector<16x384xf32>
    %6 = tpu.matmul %4, %5, %cst {dimension_numbers = #tpu.dot_dimension_numbers<[1], [0], [0], [1], [0, 0, 1, 1], [], []>} : vector<16x128xbf16>, vector<128x384xbf16>, vector<16x384xf32> -> vector<16x384xf32>
    %7 = arith.addf %3, %6 : vector<16x384xf32>
    %c0_6 = arith.constant 0 : index
    %c0_7 = arith.constant 0 : index
    %8 = vector.load %arg7[%c0_6, %c0_7] : memref<16x384xf32, #tpu.memory_space<vmem>>, vector<16x384xf32>
    tpu.vector_store %arg7[%c0_6, %c0_7], %7 {strides = array<i32>} : memref<16x384xf32, #tpu.memory_space<vmem>>, vector<16x384xf32>,
    %c0_i32_8 = arith.constant 0 : i32
    %9 = arith.cmpi eq, %arg2, %c0_i32_8 : i32
    %10 = arith.extui %9 : i1 to i32
    %c0_i32_9 = arith.constant 0 : i32
    %11 = arith.cmpi ne, %10, %c0_i32_9 : i32
    scf.if %11 {
      %c0_10 = arith.constant 0 : index
      %c0_11 = arith.constant 0 : index
      %12 = vector.load %arg7[%c0_10, %c0_11] : memref<16x384xf32, #tpu.memory_space<vmem>>, vector<16x384xf32>
      %c0_12 = arith.constant 0 : index
      %c0_13 = arith.constant 0 : index
      %13 = vector.load %arg5[%c0_12, %c0_13] : memref<1x384xf32, #tpu.memory_space<vmem>>, vector<1x384xf32>
      %14 = vector.broadcast %13 : vector<1x384xf32> to vector<16x384xf32>
      %15 = arith.addf %12, %14 : vector<16x384xf32>
      %16 = arith.truncf %15 : vector<16x384xf32> to vector<16x384xbf16>
      %c0_14 = arith.constant 0 : index
      %c0_15 = arith.constant 0 : index
      %17 = vector.load %arg6[%c0_14, %c0_15] : memref<16x384xbf16, #tpu.memory_space<vmem>>, vector<16x384xbf16>
      tpu.vector_store %arg6[%c0_14, %c0_15], %16 {strides = array<i32>} : memref<16x384xbf16, #tpu.memory_space<vmem>>, vector<16x384xbf16>,
    } else {
    }
    return
  }
  func.func @transform_0(%arg0: i32, %arg1: i32, %arg2: i32) -> (i32, i32) {
    %c0_i32 = arith.constant 0 : i32
    return %arg0, %arg2 : i32, i32
  }
  func.func @transform_1(%arg0: i32, %arg1: i32, %arg2: i32) -> (i32, i32) {
    %c0_i32 = arith.constant 0 : i32
    return %arg2, %arg1 : i32, i32
  }
  func.func @transform_2(%arg0: i32, %arg1: i32, %arg2: i32) -> (i32, i32) {
    %c0_i32 = arith.constant 0 : i32
    %c0_i32_0 = arith.constant 0 : i32
    return %c0_i32, %arg1 : i32, i32
  }
  func.func @transform_3(%arg0: i32, %arg1: i32, %arg2: i32) -> (i32, i32) {
    %c0_i32 = arith.constant 0 : i32
    return %arg0, %arg1 : i32, i32
  }
}

module attributes {stable_mosaic.version = 11 : i64} {
  func.func @_self_attn_kernel(%arg0: i32, %arg1: memref<1x8x384xbf16, #tpu.memory_space<vmem>>, %arg2: memref<1x1x8xf32, #tpu.memory_space<vmem>>, %arg3: memref<1x8x128xbf16, #tpu.memory_space<vmem>>) attributes {dimension_semantics = [#tpu.dimension_semantics<parallel>], iteration_bounds = array<i64: 2>, scalar_prefetch = 0 : i64, scratch_operands = 0 : i64, tpu.core_type = #tpu.core_type<tc>, window_params = [{transform_indices = @transform_0, window_bounds = array<i64: 1, 8, 384>}, {transform_indices = @transform_1, window_bounds = array<i64: 1, 1, 8>}, {transform_indices = @transform_2, window_bounds = array<i64: 1, 8, 128>}]} {
    %c0 = arith.constant 0 : index
    %c0_0 = arith.constant 0 : index
    %c0_1 = arith.constant 0 : index
    %0 = vector.load %arg1[%c0, %c0_0, %c0_1] : memref<1x8x384xbf16, #tpu.memory_space<vmem>>, vector<1x8x384xbf16>
    %1 = vector.shape_cast %0 : vector<1x8x384xbf16> to vector<8x384xbf16>
    %2 = vector.extract_strided_slice %1 {offsets = [0, 0], sizes = [8, 128], strides = [1, 1]} : vector<8x384xbf16> to vector<8x128xbf16>
    %3 = vector.extract_strided_slice %1 {offsets = [0, 128], sizes = [8, 128], strides = [1, 1]} : vector<8x384xbf16> to vector<8x128xbf16>
    %4 = vector.extract_strided_slice %1 {offsets = [0, 256], sizes = [8, 128], strides = [1, 1]} : vector<8x384xbf16> to vector<8x128xbf16>
    %c0_2 = arith.constant 0 : index
    %c0_3 = arith.constant 0 : index
    %c0_4 = arith.constant 0 : index
    %5 = vector.load %arg2[%c0_2, %c0_3, %c0_4] : memref<1x1x8xf32, #tpu.memory_space<vmem>>, vector<1x1x8xf32>
    %6 = vector.shape_cast %5 : vector<1x1x8xf32> to vector<1x8xf32>
    %cst = arith.constant 1.000000e+00 : f32
    %7 = vector.broadcast %cst : f32 to vector<1x8xf32>
    %8 = arith.subf %7, %6 : vector<1x8xf32>
    %cst_5 = arith.constant -1.000000e+09 : f32
    %9 = vector.broadcast %cst_5 : f32 to vector<1x8xf32>
    %10 = arith.mulf %8, %9 : vector<1x8xf32>
    %11 = tpu.iota {dimensions = array<i32: 0>} : vector<8x8xi32>
    %12 = tpu.iota {dimensions = array<i32: 1>} : vector<8x8xi32>
    %13 = arith.cmpi sle, %12, %11 : vector<8x8xi32>
    %cst_6 = arith.constant 0.000000e+00 : f32
    %cst_7 = arith.constant -1.000000e+09 : f32
    %14 = vector.broadcast %cst_6 : f32 to vector<8x8xf32>
    %15 = vector.broadcast %cst_7 : f32 to vector<8x8xf32>
    %16 = arith.select %13, %14, %15 : vector<8x8xi1>, vector<8x8xf32>
    %17 = vector.extract_strided_slice %2 {offsets = [0, 0], sizes = [8, 64], strides = [1, 1]} : vector<8x128xbf16> to vector<8x64xbf16>
    %18 = arith.extf %17 : vector<8x64xbf16> to vector<8x64xf32>
    %cst_8 = arith.constant 1.250000e-01 : f32
    %19 = vector.broadcast %cst_8 : f32 to vector<8x64xf32>
    %20 = arith.mulf %18, %19 : vector<8x64xf32>
    %21 = arith.truncf %20 : vector<8x64xf32> to vector<8x64xbf16>
    %22 = vector.extract_strided_slice %3 {offsets = [0, 0], sizes = [8, 64], strides = [1, 1]} : vector<8x128xbf16> to vector<8x64xbf16>
    %23 = vector.extract_strided_slice %4 {offsets = [0, 0], sizes = [8, 64], strides = [1, 1]} : vector<8x128xbf16> to vector<8x64xbf16>
    %cst_9 = arith.constant dense<0.000000e+00> : vector<8x8xf32>
    %24 = tpu.matmul %21, %22, %cst_9 {dimension_numbers = #tpu.dot_dimension_numbers<[1], [1], [0], [0], [0, 0, 1, 0], [], []>} : vector<8x64xbf16>, vector<8x64xbf16>, vector<8x8xf32> -> vector<8x8xf32>
    %25 = vector.broadcast %10 : vector<1x8xf32> to vector<8x8xf32>
    %26 = arith.addf %24, %25 : vector<8x8xf32>
    %27 = arith.addf %26, %16 : vector<8x8xf32>
    %cst_10 = arith.constant dense<0xFF800000> : vector<8xf32>
    %28 = vector.multi_reduction <maximumf>, %27, %cst_10 [1] : vector<8x8xf32> to vector<8xf32>
    %29 = vector.shape_cast %28 : vector<8xf32> to vector<8x1xf32>
    %30 = vector.broadcast %29 : vector<8x1xf32> to vector<8x8xf32>
    %31 = arith.subf %27, %30 : vector<8x8xf32>
    %32 = math.exp %31 : vector<8x8xf32>
    %cst_11 = arith.constant dense<0.000000e+00> : vector<8xf32>
    %33 = vector.multi_reduction <add>, %32, %cst_11 [1] : vector<8x8xf32> to vector<8xf32>
    %34 = vector.shape_cast %33 : vector<8xf32> to vector<8x1xf32>
    %35 = tpu.reciprocal %34 {approx = true} : vector<8x1xf32> -> vector<8x1xf32>
    %36 = vector.broadcast %35 : vector<8x1xf32> to vector<8x8xf32>
    %37 = arith.mulf %32, %36 : vector<8x8xf32>
    %38 = arith.truncf %37 : vector<8x8xf32> to vector<8x8xbf16>
    %cst_12 = arith.constant dense<0.000000e+00> : vector<8x64xf32>
    %39 = tpu.matmul %38, %23, %cst_12 {dimension_numbers = #tpu.dot_dimension_numbers<[1], [0], [0], [1], [0, 0, 1, 1], [], []>} : vector<8x8xbf16>, vector<8x64xbf16>, vector<8x64xf32> -> vector<8x64xf32>
    %40 = vector.extract_strided_slice %2 {offsets = [0, 64], sizes = [8, 64], strides = [1, 1]} : vector<8x128xbf16> to vector<8x64xbf16>
    %41 = arith.extf %40 : vector<8x64xbf16> to vector<8x64xf32>
    %cst_13 = arith.constant 1.250000e-01 : f32
    %42 = vector.broadcast %cst_13 : f32 to vector<8x64xf32>
    %43 = arith.mulf %41, %42 : vector<8x64xf32>
    %44 = arith.truncf %43 : vector<8x64xf32> to vector<8x64xbf16>
    %45 = vector.extract_strided_slice %3 {offsets = [0, 64], sizes = [8, 64], strides = [1, 1]} : vector<8x128xbf16> to vector<8x64xbf16>
    %46 = vector.extract_strided_slice %4 {offsets = [0, 64], sizes = [8, 64], strides = [1, 1]} : vector<8x128xbf16> to vector<8x64xbf16>
    %cst_14 = arith.constant dense<0.000000e+00> : vector<8x8xf32>
    %47 = tpu.matmul %44, %45, %cst_14 {dimension_numbers = #tpu.dot_dimension_numbers<[1], [1], [0], [0], [0, 0, 1, 0], [], []>} : vector<8x64xbf16>, vector<8x64xbf16>, vector<8x8xf32> -> vector<8x8xf32>
    %48 = vector.broadcast %10 : vector<1x8xf32> to vector<8x8xf32>
    %49 = arith.addf %47, %48 : vector<8x8xf32>
    %50 = arith.addf %49, %16 : vector<8x8xf32>
    %cst_15 = arith.constant dense<0xFF800000> : vector<8xf32>
    %51 = vector.multi_reduction <maximumf>, %50, %cst_15 [1] : vector<8x8xf32> to vector<8xf32>
    %52 = vector.shape_cast %51 : vector<8xf32> to vector<8x1xf32>
    %53 = vector.broadcast %52 : vector<8x1xf32> to vector<8x8xf32>
    %54 = arith.subf %50, %53 : vector<8x8xf32>
    %55 = math.exp %54 : vector<8x8xf32>
    %cst_16 = arith.constant dense<0.000000e+00> : vector<8xf32>
    %56 = vector.multi_reduction <add>, %55, %cst_16 [1] : vector<8x8xf32> to vector<8xf32>
    %57 = vector.shape_cast %56 : vector<8xf32> to vector<8x1xf32>
    %58 = tpu.reciprocal %57 {approx = true} : vector<8x1xf32> -> vector<8x1xf32>
    %59 = vector.broadcast %58 : vector<8x1xf32> to vector<8x8xf32>
    %60 = arith.mulf %55, %59 : vector<8x8xf32>
    %61 = arith.truncf %60 : vector<8x8xf32> to vector<8x8xbf16>
    %cst_17 = arith.constant dense<0.000000e+00> : vector<8x64xf32>
    %62 = tpu.matmul %61, %46, %cst_17 {dimension_numbers = #tpu.dot_dimension_numbers<[1], [0], [0], [1], [0, 0, 1, 1], [], []>} : vector<8x8xbf16>, vector<8x64xbf16>, vector<8x64xf32> -> vector<8x64xf32>
    %63 = tpu.concatenate %39, %62 in 1 : vector<8x64xf32>, vector<8x64xf32> -> vector<8x128xf32>
    %64 = arith.truncf %63 : vector<8x128xf32> to vector<8x128xbf16>
    %c0_18 = arith.constant 0 : index
    %c0_19 = arith.constant 0 : index
    %c0_20 = arith.constant 0 : index
    %65 = vector.load %arg3[%c0_18, %c0_19, %c0_20] : memref<1x8x128xbf16, #tpu.memory_space<vmem>>, vector<1x8x128xbf16>
    %66 = vector.shape_cast %65 : vector<1x8x128xbf16> to vector<8x128xbf16>
    %67 = vector.shape_cast %64 : vector<8x128xbf16> to vector<1x8x128xbf16>
    tpu.vector_store %arg3[%c0_18, %c0_19, %c0_20], %67 {strides = array<i32>} : memref<1x8x128xbf16, #tpu.memory_space<vmem>>, vector<1x8x128xbf16>,
    return
  }
  func.func @transform_0(%arg0: i32) -> (i32, i32, i32) {
    %c0_i32 = arith.constant 0 : i32
    %c0_i32_0 = arith.constant 0 : i32
    %c0_i32_1 = arith.constant 0 : i32
    return %arg0, %c0_i32, %c0_i32_0 : i32, i32, i32
  }
  func.func @transform_1(%arg0: i32) -> (i32, i32, i32) {
    %c0_i32 = arith.constant 0 : i32
    %c0_i32_0 = arith.constant 0 : i32
    %c0_i32_1 = arith.constant 0 : i32
    return %arg0, %c0_i32, %c0_i32_0 : i32, i32, i32
  }
  func.func @transform_2(%arg0: i32) -> (i32, i32, i32) {
    %c0_i32 = arith.constant 0 : i32
    %c0_i32_0 = arith.constant 0 : i32
    %c0_i32_1 = arith.constant 0 : i32
    return %arg0, %c0_i32, %c0_i32_0 : i32, i32, i32
  }
}

module attributes {stable_mosaic.version = 11 : i64} {
  func.func @_dense_kernel(%arg0: i32, %arg1: i32, %arg2: i32, %arg3: memref<16x128xbf16, #tpu.memory_space<vmem>>, %arg4: memref<128x128xbf16, #tpu.memory_space<vmem>>, %arg5: memref<1x128xf32, #tpu.memory_space<vmem>>, %arg6: memref<16x128xbf16, #tpu.memory_space<vmem>>, %arg7: memref<1x128xf32, #tpu.memory_space<vmem>>, %arg8: memref<1x128xf32, #tpu.memory_space<vmem>>, %arg9: memref<16x128xbf16, #tpu.memory_space<vmem>>, %arg10: memref<16x128xf32, #tpu.memory_space<vmem>>) attributes {dimension_semantics = [#tpu.dimension_semantics<parallel>, #tpu.dimension_semantics<parallel>, #tpu.dimension_semantics<arbitrary>], iteration_bounds = array<i64: 1, 1, 1>, scalar_prefetch = 0 : i64, scratch_operands = 1 : i64, tpu.core_type = #tpu.core_type<tc>, window_params = [{transform_indices = @transform_0, window_bounds = array<i64: 16, 128>}, {transform_indices = @transform_1, window_bounds = array<i64: 128, 128>}, {transform_indices = @transform_2, window_bounds = array<i64: 1, 128>}, {transform_indices = @transform_3, window_bounds = array<i64: 16, 128>}, {transform_indices = @transform_4, window_bounds = array<i64: 1, 128>}, {transform_indices = @transform_5, window_bounds = array<i64: 1, 128>}, {transform_indices = @transform_6, window_bounds = array<i64: 16, 128>}]} {
    %c0_i32 = arith.constant 0 : i32
    %0 = arith.cmpi eq, %arg2, %c0_i32 : i32
    %1 = arith.extui %0 : i1 to i32
    %c0_i32_0 = arith.constant 0 : i32
    %2 = arith.cmpi ne, %1, %c0_i32_0 : i32
    scf.if %2 {
      %cst_10 = arith.constant 0.000000e+00 : f32
      %12 = vector.broadcast %cst_10 : f32 to vector<16x128xf32>
      %c0_11 = arith.constant 0 : index
      %c0_12 = arith.constant 0 : index
      %13 = vector.load %arg10[%c0_11, %c0_12] : memref<16x128xf32, #tpu.memory_space<vmem>>, vector<16x128xf32>
      tpu.vector_store %arg10[%c0_11, %c0_12], %12 {strides = array<i32>} : memref<16x128xf32, #tpu.memory_space<vmem>>, vector<16x128xf32>,
    } else {
    }
    %c0 = arith.constant 0 : index
    %c0_1 = arith.constant 0 : index
    %3 = vector.load %arg10[%c0, %c0_1] : memref<16x128xf32, #tpu.memory_space<vmem>>, vector<16x128xf32>
    %c0_2 = arith.constant 0 : index
    %c0_3 = arith.constant 0 : index
    %4 = vector.load %arg3[%c0_2, %c0_3] : memref<16x128xbf16, #tpu.memory_space<vmem>>, vector<16x128xbf16>
    %c0_4 = arith.constant 0 : index
    %c0_5 = arith.constant 0 : index
    %5 = vector.load %arg4[%c0_4, %c0_5] : memref<128x128xbf16, #tpu.memory_space<vmem>>, vector<128x128xbf16>
    %cst = arith.constant dense<0.000000e+00> : vector<16x128xf32>
    %6 = tpu.matmul %4, %5, %cst {dimension_numbers = #tpu.dot_dimension_numbers<[1], [0], [0], [1], [0, 0, 1, 1], [], []>} : vector<16x128xbf16>, vector<128x128xbf16>, vector<16x128xf32> -> vector<16x128xf32>
    %7 = arith.addf %3, %6 : vector<16x128xf32>
    %c0_6 = arith.constant 0 : index
    %c0_7 = arith.constant 0 : index
    %8 = vector.load %arg10[%c0_6, %c0_7] : memref<16x128xf32, #tpu.memory_space<vmem>>, vector<16x128xf32>
    tpu.vector_store %arg10[%c0_6, %c0_7], %7 {strides = array<i32>} : memref<16x128xf32, #tpu.memory_space<vmem>>, vector<16x128xf32>,
    %c0_i32_8 = arith.constant 0 : i32
    %9 = arith.cmpi eq, %arg2, %c0_i32_8 : i32
    %10 = arith.extui %9 : i1 to i32
    %c0_i32_9 = arith.constant 0 : i32
    %11 = arith.cmpi ne, %10, %c0_i32_9 : i32
    scf.if %11 {
      %c0_10 = arith.constant 0 : index
      %c0_11 = arith.constant 0 : index
      %12 = vector.load %arg10[%c0_10, %c0_11] : memref<16x128xf32, #tpu.memory_space<vmem>>, vector<16x128xf32>
      %c0_12 = arith.constant 0 : index
      %c0_13 = arith.constant 0 : index
      %13 = vector.load %arg5[%c0_12, %c0_13] : memref<1x128xf32, #tpu.memory_space<vmem>>, vector<1x128xf32>
      %14 = vector.broadcast %13 : vector<1x128xf32> to vector<16x128xf32>
      %15 = arith.addf %12, %14 : vector<16x128xf32>
      %c0_14 = arith.constant 0 : index
      %c0_15 = arith.constant 0 : index
      %16 = vector.load %arg6[%c0_14, %c0_15] : memref<16x128xbf16, #tpu.memory_space<vmem>>, vector<16x128xbf16>
      %17 = arith.extf %16 : vector<16x128xbf16> to vector<16x128xf32>
      %18 = arith.addf %15, %17 : vector<16x128xf32>
      %c0_16 = arith.constant 0 : index
      %c0_17 = arith.constant 0 : index
      %19 = vector.load %arg7[%c0_16, %c0_17] : memref<1x128xf32, #tpu.memory_space<vmem>>, vector<1x128xf32>
      %c0_18 = arith.constant 0 : index
      %c0_19 = arith.constant 0 : index
      %20 = vector.load %arg8[%c0_18, %c0_19] : memref<1x128xf32, #tpu.memory_space<vmem>>, vector<1x128xf32>
      %cst_20 = arith.constant dense<0.000000e+00> : vector<16xf32>
      %21 = vector.multi_reduction <add>, %18, %cst_20 [1] : vector<16x128xf32> to vector<16xf32>
      %22 = vector.shape_cast %21 : vector<16xf32> to vector<16x1xf32>
      %cst_21 = arith.constant 1.280000e+02 : f32
      %23 = vector.broadcast %cst_21 : f32 to vector<16x1xf32>
      %24 = arith.divf %22, %23 : vector<16x1xf32>
      %25 = vector.broadcast %24 : vector<16x1xf32> to vector<16x128xf32>
      %26 = arith.subf %18, %25 : vector<16x128xf32>
      %27 = arith.mulf %26, %26 : vector<16x128xf32>
      %cst_22 = arith.constant dense<0.000000e+00> : vector<16xf32>
      %28 = vector.multi_reduction <add>, %27, %cst_22 [1] : vector<16x128xf32> to vector<16xf32>
      %29 = vector.shape_cast %28 : vector<16xf32> to vector<16x1xf32>
      %cst_23 = arith.constant 1.280000e+02 : f32
      %30 = vector.broadcast %cst_23 : f32 to vector<16x1xf32>
      %31 = arith.divf %29, %30 : vector<16x1xf32>
      %cst_24 = arith.constant 9.99999996E-13 : f32
      %32 = vector.broadcast %cst_24 : f32 to vector<16x1xf32>
      %33 = arith.addf %31, %32 : vector<16x1xf32>
      %34 = math.rsqrt %33 : vector<16x1xf32>
      %35 = vector.broadcast %34 : vector<16x1xf32> to vector<16x128xf32>
      %36 = arith.mulf %26, %35 : vector<16x128xf32>
      %37 = vector.broadcast %19 : vector<1x128xf32> to vector<16x128xf32>
      %38 = arith.mulf %36, %37 : vector<16x128xf32>
      %39 = vector.broadcast %20 : vector<1x128xf32> to vector<16x128xf32>
      %40 = arith.addf %38, %39 : vector<16x128xf32>
      %41 = arith.truncf %40 : vector<16x128xf32> to vector<16x128xbf16>
      %c0_25 = arith.constant 0 : index
      %c0_26 = arith.constant 0 : index
      %42 = vector.load %arg9[%c0_25, %c0_26] : memref<16x128xbf16, #tpu.memory_space<vmem>>, vector<16x128xbf16>
      tpu.vector_store %arg9[%c0_25, %c0_26], %41 {strides = array<i32>} : memref<16x128xbf16, #tpu.memory_space<vmem>>, vector<16x128xbf16>,
    } else {
    }
    return
  }
  func.func @transform_0(%arg0: i32, %arg1: i32, %arg2: i32) -> (i32, i32) {
    %c0_i32 = arith.constant 0 : i32
    return %arg0, %arg2 : i32, i32
  }
  func.func @transform_1(%arg0: i32, %arg1: i32, %arg2: i32) -> (i32, i32) {
    %c0_i32 = arith.constant 0 : i32
    return %arg2, %arg1 : i32, i32
  }
  func.func @transform_2(%arg0: i32, %arg1: i32, %arg2: i32) -> (i32, i32) {
    %c0_i32 = arith.constant 0 : i32
    %c0_i32_0 = arith.constant 0 : i32
    return %c0_i32, %arg1 : i32, i32
  }
  func.func @transform_3(%arg0: i32, %arg1: i32, %arg2: i32) -> (i32, i32) {
    %c0_i32 = arith.constant 0 : i32
    return %arg0, %arg1 : i32, i32
  }
  func.func @transform_4(%arg0: i32, %arg1: i32, %arg2: i32) -> (i32, i32) {
    %c0_i32 = arith.constant 0 : i32
    %c0_i32_0 = arith.constant 0 : i32
    return %c0_i32, %arg1 : i32, i32
  }
  func.func @transform_5(%arg0: i32, %arg1: i32, %arg2: i32) -> (i32, i32) {
    %c0_i32 = arith.constant 0 : i32
    %c0_i32_0 = arith.constant 0 : i32
    return %c0_i32, %arg1 : i32, i32
  }
  func.func @transform_6(%arg0: i32, %arg1: i32, %arg2: i32) -> (i32, i32) {
    %c0_i32 = arith.constant 0 : i32
    return %arg0, %arg1 : i32, i32
  }
}

module attributes {stable_mosaic.version = 11 : i64} {
  func.func @_dense_kernel(%arg0: i32, %arg1: i32, %arg2: i32, %arg3: memref<16x128xbf16, #tpu.memory_space<vmem>>, %arg4: memref<128x128xbf16, #tpu.memory_space<vmem>>, %arg5: memref<1x128xf32, #tpu.memory_space<vmem>>, %arg6: memref<16x128xbf16, #tpu.memory_space<vmem>>, %arg7: memref<16x128xf32, #tpu.memory_space<vmem>>) attributes {dimension_semantics = [#tpu.dimension_semantics<parallel>, #tpu.dimension_semantics<parallel>, #tpu.dimension_semantics<arbitrary>], iteration_bounds = array<i64: 1, 1, 1>, scalar_prefetch = 0 : i64, scratch_operands = 1 : i64, tpu.core_type = #tpu.core_type<tc>, window_params = [{transform_indices = @transform_0, window_bounds = array<i64: 16, 128>}, {transform_indices = @transform_1, window_bounds = array<i64: 128, 128>}, {transform_indices = @transform_2, window_bounds = array<i64: 1, 128>}, {transform_indices = @transform_3, window_bounds = array<i64: 16, 128>}]} {
    %c0_i32 = arith.constant 0 : i32
    %0 = arith.cmpi eq, %arg2, %c0_i32 : i32
    %1 = arith.extui %0 : i1 to i32
    %c0_i32_0 = arith.constant 0 : i32
    %2 = arith.cmpi ne, %1, %c0_i32_0 : i32
    scf.if %2 {
      %cst_10 = arith.constant 0.000000e+00 : f32
      %12 = vector.broadcast %cst_10 : f32 to vector<16x128xf32>
      %c0_11 = arith.constant 0 : index
      %c0_12 = arith.constant 0 : index
      %13 = vector.load %arg7[%c0_11, %c0_12] : memref<16x128xf32, #tpu.memory_space<vmem>>, vector<16x128xf32>
      tpu.vector_store %arg7[%c0_11, %c0_12], %12 {strides = array<i32>} : memref<16x128xf32, #tpu.memory_space<vmem>>, vector<16x128xf32>,
    } else {
    }
    %c0 = arith.constant 0 : index
    %c0_1 = arith.constant 0 : index
    %3 = vector.load %arg7[%c0, %c0_1] : memref<16x128xf32, #tpu.memory_space<vmem>>, vector<16x128xf32>
    %c0_2 = arith.constant 0 : index
    %c0_3 = arith.constant 0 : index
    %4 = vector.load %arg3[%c0_2, %c0_3] : memref<16x128xbf16, #tpu.memory_space<vmem>>, vector<16x128xbf16>
    %c0_4 = arith.constant 0 : index
    %c0_5 = arith.constant 0 : index
    %5 = vector.load %arg4[%c0_4, %c0_5] : memref<128x128xbf16, #tpu.memory_space<vmem>>, vector<128x128xbf16>
    %cst = arith.constant dense<0.000000e+00> : vector<16x128xf32>
    %6 = tpu.matmul %4, %5, %cst {dimension_numbers = #tpu.dot_dimension_numbers<[1], [0], [0], [1], [0, 0, 1, 1], [], []>} : vector<16x128xbf16>, vector<128x128xbf16>, vector<16x128xf32> -> vector<16x128xf32>
    %7 = arith.addf %3, %6 : vector<16x128xf32>
    %c0_6 = arith.constant 0 : index
    %c0_7 = arith.constant 0 : index
    %8 = vector.load %arg7[%c0_6, %c0_7] : memref<16x128xf32, #tpu.memory_space<vmem>>, vector<16x128xf32>
    tpu.vector_store %arg7[%c0_6, %c0_7], %7 {strides = array<i32>} : memref<16x128xf32, #tpu.memory_space<vmem>>, vector<16x128xf32>,
    %c0_i32_8 = arith.constant 0 : i32
    %9 = arith.cmpi eq, %arg2, %c0_i32_8 : i32
    %10 = arith.extui %9 : i1 to i32
    %c0_i32_9 = arith.constant 0 : i32
    %11 = arith.cmpi ne, %10, %c0_i32_9 : i32
    scf.if %11 {
      %c0_10 = arith.constant 0 : index
      %c0_11 = arith.constant 0 : index
      %12 = vector.load %arg7[%c0_10, %c0_11] : memref<16x128xf32, #tpu.memory_space<vmem>>, vector<16x128xf32>
      %c0_12 = arith.constant 0 : index
      %c0_13 = arith.constant 0 : index
      %13 = vector.load %arg5[%c0_12, %c0_13] : memref<1x128xf32, #tpu.memory_space<vmem>>, vector<1x128xf32>
      %14 = vector.broadcast %13 : vector<1x128xf32> to vector<16x128xf32>
      %15 = arith.addf %12, %14 : vector<16x128xf32>
      %16 = arith.truncf %15 : vector<16x128xf32> to vector<16x128xbf16>
      %c0_14 = arith.constant 0 : index
      %c0_15 = arith.constant 0 : index
      %17 = vector.load %arg6[%c0_14, %c0_15] : memref<16x128xbf16, #tpu.memory_space<vmem>>, vector<16x128xbf16>
      tpu.vector_store %arg6[%c0_14, %c0_15], %16 {strides = array<i32>} : memref<16x128xbf16, #tpu.memory_space<vmem>>, vector<16x128xbf16>,
    } else {
    }
    return
  }
  func.func @transform_0(%arg0: i32, %arg1: i32, %arg2: i32) -> (i32, i32) {
    %c0_i32 = arith.constant 0 : i32
    return %arg0, %arg2 : i32, i32
  }
  func.func @transform_1(%arg0: i32, %arg1: i32, %arg2: i32) -> (i32, i32) {
    %c0_i32 = arith.constant 0 : i32
    return %arg2, %arg1 : i32, i32
  }
  func.func @transform_2(%arg0: i32, %arg1: i32, %arg2: i32) -> (i32, i32) {
    %c0_i32 = arith.constant 0 : i32
    %c0_i32_0 = arith.constant 0 : i32
    return %c0_i32, %arg1 : i32, i32
  }
  func.func @transform_3(%arg0: i32, %arg1: i32, %arg2: i32) -> (i32, i32) {
    %c0_i32 = arith.constant 0 : i32
    return %arg0, %arg1 : i32, i32
  }
}

module attributes {stable_mosaic.version = 11 : i64} {
  func.func @_self_attn_kernel(%arg0: i32, %arg1: memref<1x8x384xbf16, #tpu.memory_space<vmem>>, %arg2: memref<1x1x8xf32, #tpu.memory_space<vmem>>, %arg3: memref<1x8x128xbf16, #tpu.memory_space<vmem>>) attributes {dimension_semantics = [#tpu.dimension_semantics<parallel>], iteration_bounds = array<i64: 2>, scalar_prefetch = 0 : i64, scratch_operands = 0 : i64, tpu.core_type = #tpu.core_type<tc>, window_params = [{transform_indices = @transform_0, window_bounds = array<i64: 1, 8, 384>}, {transform_indices = @transform_1, window_bounds = array<i64: 1, 1, 8>}, {transform_indices = @transform_2, window_bounds = array<i64: 1, 8, 128>}]} {
    %c0 = arith.constant 0 : index
    %c0_0 = arith.constant 0 : index
    %c0_1 = arith.constant 0 : index
    %0 = vector.load %arg1[%c0, %c0_0, %c0_1] : memref<1x8x384xbf16, #tpu.memory_space<vmem>>, vector<1x8x384xbf16>
    %1 = vector.shape_cast %0 : vector<1x8x384xbf16> to vector<8x384xbf16>
    %2 = vector.extract_strided_slice %1 {offsets = [0, 0], sizes = [8, 128], strides = [1, 1]} : vector<8x384xbf16> to vector<8x128xbf16>
    %3 = vector.extract_strided_slice %1 {offsets = [0, 128], sizes = [8, 128], strides = [1, 1]} : vector<8x384xbf16> to vector<8x128xbf16>
    %4 = vector.extract_strided_slice %1 {offsets = [0, 256], sizes = [8, 128], strides = [1, 1]} : vector<8x384xbf16> to vector<8x128xbf16>
    %c0_2 = arith.constant 0 : index
    %c0_3 = arith.constant 0 : index
    %c0_4 = arith.constant 0 : index
    %5 = vector.load %arg2[%c0_2, %c0_3, %c0_4] : memref<1x1x8xf32, #tpu.memory_space<vmem>>, vector<1x1x8xf32>
    %6 = vector.shape_cast %5 : vector<1x1x8xf32> to vector<1x8xf32>
    %cst = arith.constant 1.000000e+00 : f32
    %7 = vector.broadcast %cst : f32 to vector<1x8xf32>
    %8 = arith.subf %7, %6 : vector<1x8xf32>
    %cst_5 = arith.constant -1.000000e+09 : f32
    %9 = vector.broadcast %cst_5 : f32 to vector<1x8xf32>
    %10 = arith.mulf %8, %9 : vector<1x8xf32>
    %11 = vector.extract_strided_slice %2 {offsets = [0, 0], sizes = [8, 64], strides = [1, 1]} : vector<8x128xbf16> to vector<8x64xbf16>
    %12 = arith.extf %11 : vector<8x64xbf16> to vector<8x64xf32>
    %cst_6 = arith.constant 1.250000e-01 : f32
    %13 = vector.broadcast %cst_6 : f32 to vector<8x64xf32>
    %14 = arith.mulf %12, %13 : vector<8x64xf32>
    %15 = arith.truncf %14 : vector<8x64xf32> to vector<8x64xbf16>
    %16 = vector.extract_strided_slice %3 {offsets = [0, 0], sizes = [8, 64], strides = [1, 1]} : vector<8x128xbf16> to vector<8x64xbf16>
    %17 = vector.extract_strided_slice %4 {offsets = [0, 0], sizes = [8, 64], strides = [1, 1]} : vector<8x128xbf16> to vector<8x64xbf16>
    %cst_7 = arith.constant dense<0.000000e+00> : vector<8x8xf32>
    %18 = tpu.matmul %15, %16, %cst_7 {dimension_numbers = #tpu.dot_dimension_numbers<[1], [1], [0], [0], [0, 0, 1, 0], [], []>} : vector<8x64xbf16>, vector<8x64xbf16>, vector<8x8xf32> -> vector<8x8xf32>
    %19 = vector.broadcast %10 : vector<1x8xf32> to vector<8x8xf32>
    %20 = arith.addf %18, %19 : vector<8x8xf32>
    %cst_8 = arith.constant dense<0xFF800000> : vector<8xf32>
    %21 = vector.multi_reduction <maximumf>, %20, %cst_8 [1] : vector<8x8xf32> to vector<8xf32>
    %22 = vector.shape_cast %21 : vector<8xf32> to vector<8x1xf32>
    %23 = vector.broadcast %22 : vector<8x1xf32> to vector<8x8xf32>
    %24 = arith.subf %20, %23 : vector<8x8xf32>
    %25 = math.exp %24 : vector<8x8xf32>
    %cst_9 = arith.constant dense<0.000000e+00> : vector<8xf32>
    %26 = vector.multi_reduction <add>, %25, %cst_9 [1] : vector<8x8xf32> to vector<8xf32>
    %27 = vector.shape_cast %26 : vector<8xf32> to vector<8x1xf32>
    %28 = tpu.reciprocal %27 {approx = true} : vector<8x1xf32> -> vector<8x1xf32>
    %29 = vector.broadcast %28 : vector<8x1xf32> to vector<8x8xf32>
    %30 = arith.mulf %25, %29 : vector<8x8xf32>
    %31 = arith.truncf %30 : vector<8x8xf32> to vector<8x8xbf16>
    %cst_10 = arith.constant dense<0.000000e+00> : vector<8x64xf32>
    %32 = tpu.matmul %31, %17, %cst_10 {dimension_numbers = #tpu.dot_dimension_numbers<[1], [0], [0], [1], [0, 0, 1, 1], [], []>} : vector<8x8xbf16>, vector<8x64xbf16>, vector<8x64xf32> -> vector<8x64xf32>
    %33 = vector.extract_strided_slice %2 {offsets = [0, 64], sizes = [8, 64], strides = [1, 1]} : vector<8x128xbf16> to vector<8x64xbf16>
    %34 = arith.extf %33 : vector<8x64xbf16> to vector<8x64xf32>
    %cst_11 = arith.constant 1.250000e-01 : f32
    %35 = vector.broadcast %cst_11 : f32 to vector<8x64xf32>
    %36 = arith.mulf %34, %35 : vector<8x64xf32>
    %37 = arith.truncf %36 : vector<8x64xf32> to vector<8x64xbf16>
    %38 = vector.extract_strided_slice %3 {offsets = [0, 64], sizes = [8, 64], strides = [1, 1]} : vector<8x128xbf16> to vector<8x64xbf16>
    %39 = vector.extract_strided_slice %4 {offsets = [0, 64], sizes = [8, 64], strides = [1, 1]} : vector<8x128xbf16> to vector<8x64xbf16>
    %cst_12 = arith.constant dense<0.000000e+00> : vector<8x8xf32>
    %40 = tpu.matmul %37, %38, %cst_12 {dimension_numbers = #tpu.dot_dimension_numbers<[1], [1], [0], [0], [0, 0, 1, 0], [], []>} : vector<8x64xbf16>, vector<8x64xbf16>, vector<8x8xf32> -> vector<8x8xf32>
    %41 = vector.broadcast %10 : vector<1x8xf32> to vector<8x8xf32>
    %42 = arith.addf %40, %41 : vector<8x8xf32>
    %cst_13 = arith.constant dense<0xFF800000> : vector<8xf32>
    %43 = vector.multi_reduction <maximumf>, %42, %cst_13 [1] : vector<8x8xf32> to vector<8xf32>
    %44 = vector.shape_cast %43 : vector<8xf32> to vector<8x1xf32>
    %45 = vector.broadcast %44 : vector<8x1xf32> to vector<8x8xf32>
    %46 = arith.subf %42, %45 : vector<8x8xf32>
    %47 = math.exp %46 : vector<8x8xf32>
    %cst_14 = arith.constant dense<0.000000e+00> : vector<8xf32>
    %48 = vector.multi_reduction <add>, %47, %cst_14 [1] : vector<8x8xf32> to vector<8xf32>
    %49 = vector.shape_cast %48 : vector<8xf32> to vector<8x1xf32>
    %50 = tpu.reciprocal %49 {approx = true} : vector<8x1xf32> -> vector<8x1xf32>
    %51 = vector.broadcast %50 : vector<8x1xf32> to vector<8x8xf32>
    %52 = arith.mulf %47, %51 : vector<8x8xf32>
    %53 = arith.truncf %52 : vector<8x8xf32> to vector<8x8xbf16>
    %cst_15 = arith.constant dense<0.000000e+00> : vector<8x64xf32>
    %54 = tpu.matmul %53, %39, %cst_15 {dimension_numbers = #tpu.dot_dimension_numbers<[1], [0], [0], [1], [0, 0, 1, 1], [], []>} : vector<8x8xbf16>, vector<8x64xbf16>, vector<8x64xf32> -> vector<8x64xf32>
    %55 = tpu.concatenate %32, %54 in 1 : vector<8x64xf32>, vector<8x64xf32> -> vector<8x128xf32>
    %56 = arith.truncf %55 : vector<8x128xf32> to vector<8x128xbf16>
    %c0_16 = arith.constant 0 : index
    %c0_17 = arith.constant 0 : index
    %c0_18 = arith.constant 0 : index
    %57 = vector.load %arg3[%c0_16, %c0_17, %c0_18] : memref<1x8x128xbf16, #tpu.memory_space<vmem>>, vector<1x8x128xbf16>
    %58 = vector.shape_cast %57 : vector<1x8x128xbf16> to vector<8x128xbf16>
    %59 = vector.shape_cast %56 : vector<8x128xbf16> to vector<1x8x128xbf16>
    tpu.vector_store %arg3[%c0_16, %c0_17, %c0_18], %59 {strides = array<i32>} : memref<1x8x128xbf16, #tpu.memory_space<vmem>>, vector<1x8x128xbf16>,
    return
  }
  func.func @transform_0(%arg0: i32) -> (i32, i32, i32) {
    %c0_i32 = arith.constant 0 : i32
    %c0_i32_0 = arith.constant 0 : i32
    %c0_i32_1 = arith.constant 0 : i32
    return %arg0, %c0_i32, %c0_i32_0 : i32, i32, i32
  }
  func.func @transform_1(%arg0: i32) -> (i32, i32, i32) {
    %c0_i32 = arith.constant 0 : i32
    %c0_i32_0 = arith.constant 0 : i32
    %c0_i32_1 = arith.constant 0 : i32
    return %arg0, %c0_i32, %c0_i32_0 : i32, i32, i32
  }
  func.func @transform_2(%arg0: i32) -> (i32, i32, i32) {
    %c0_i32 = arith.constant 0 : i32
    %c0_i32_0 = arith.constant 0 : i32
    %c0_i32_1 = arith.constant 0 : i32
    return %arg0, %c0_i32, %c0_i32_0 : i32, i32, i32
  }
}

module attributes {stable_mosaic.version = 11 : i64} {
  func.func @_dense_kernel(%arg0: i32, %arg1: i32, %arg2: i32, %arg3: memref<16x128xbf16, #tpu.memory_space<vmem>>, %arg4: memref<128x256xbf16, #tpu.memory_space<vmem>>, %arg5: memref<1x256xf32, #tpu.memory_space<vmem>>, %arg6: memref<16x256xbf16, #tpu.memory_space<vmem>>, %arg7: memref<16x256xf32, #tpu.memory_space<vmem>>) attributes {dimension_semantics = [#tpu.dimension_semantics<parallel>, #tpu.dimension_semantics<parallel>, #tpu.dimension_semantics<arbitrary>], iteration_bounds = array<i64: 1, 1, 1>, scalar_prefetch = 0 : i64, scratch_operands = 1 : i64, tpu.core_type = #tpu.core_type<tc>, window_params = [{transform_indices = @transform_0, window_bounds = array<i64: 16, 128>}, {transform_indices = @transform_1, window_bounds = array<i64: 128, 256>}, {transform_indices = @transform_2, window_bounds = array<i64: 1, 256>}, {transform_indices = @transform_3, window_bounds = array<i64: 16, 256>}]} {
    %c0_i32 = arith.constant 0 : i32
    %0 = arith.cmpi eq, %arg2, %c0_i32 : i32
    %1 = arith.extui %0 : i1 to i32
    %c0_i32_0 = arith.constant 0 : i32
    %2 = arith.cmpi ne, %1, %c0_i32_0 : i32
    scf.if %2 {
      %cst_10 = arith.constant 0.000000e+00 : f32
      %12 = vector.broadcast %cst_10 : f32 to vector<16x256xf32>
      %c0_11 = arith.constant 0 : index
      %c0_12 = arith.constant 0 : index
      %13 = vector.load %arg7[%c0_11, %c0_12] : memref<16x256xf32, #tpu.memory_space<vmem>>, vector<16x256xf32>
      tpu.vector_store %arg7[%c0_11, %c0_12], %12 {strides = array<i32>} : memref<16x256xf32, #tpu.memory_space<vmem>>, vector<16x256xf32>,
    } else {
    }
    %c0 = arith.constant 0 : index
    %c0_1 = arith.constant 0 : index
    %3 = vector.load %arg7[%c0, %c0_1] : memref<16x256xf32, #tpu.memory_space<vmem>>, vector<16x256xf32>
    %c0_2 = arith.constant 0 : index
    %c0_3 = arith.constant 0 : index
    %4 = vector.load %arg3[%c0_2, %c0_3] : memref<16x128xbf16, #tpu.memory_space<vmem>>, vector<16x128xbf16>
    %c0_4 = arith.constant 0 : index
    %c0_5 = arith.constant 0 : index
    %5 = vector.load %arg4[%c0_4, %c0_5] : memref<128x256xbf16, #tpu.memory_space<vmem>>, vector<128x256xbf16>
    %cst = arith.constant dense<0.000000e+00> : vector<16x256xf32>
    %6 = tpu.matmul %4, %5, %cst {dimension_numbers = #tpu.dot_dimension_numbers<[1], [0], [0], [1], [0, 0, 1, 1], [], []>} : vector<16x128xbf16>, vector<128x256xbf16>, vector<16x256xf32> -> vector<16x256xf32>
    %7 = arith.addf %3, %6 : vector<16x256xf32>
    %c0_6 = arith.constant 0 : index
    %c0_7 = arith.constant 0 : index
    %8 = vector.load %arg7[%c0_6, %c0_7] : memref<16x256xf32, #tpu.memory_space<vmem>>, vector<16x256xf32>
    tpu.vector_store %arg7[%c0_6, %c0_7], %7 {strides = array<i32>} : memref<16x256xf32, #tpu.memory_space<vmem>>, vector<16x256xf32>,
    %c0_i32_8 = arith.constant 0 : i32
    %9 = arith.cmpi eq, %arg2, %c0_i32_8 : i32
    %10 = arith.extui %9 : i1 to i32
    %c0_i32_9 = arith.constant 0 : i32
    %11 = arith.cmpi ne, %10, %c0_i32_9 : i32
    scf.if %11 {
      %c0_10 = arith.constant 0 : index
      %c0_11 = arith.constant 0 : index
      %12 = vector.load %arg7[%c0_10, %c0_11] : memref<16x256xf32, #tpu.memory_space<vmem>>, vector<16x256xf32>
      %c0_12 = arith.constant 0 : index
      %c0_13 = arith.constant 0 : index
      %13 = vector.load %arg5[%c0_12, %c0_13] : memref<1x256xf32, #tpu.memory_space<vmem>>, vector<1x256xf32>
      %14 = vector.broadcast %13 : vector<1x256xf32> to vector<16x256xf32>
      %15 = arith.addf %12, %14 : vector<16x256xf32>
      %cst_14 = arith.constant 5.000000e-01 : f32
      %16 = vector.broadcast %cst_14 : f32 to vector<16x256xf32>
      %17 = arith.mulf %16, %15 : vector<16x256xf32>
      %cst_15 = arith.constant 0.707106769 : f32
      %18 = vector.broadcast %cst_15 : f32 to vector<16x256xf32>
      %19 = arith.mulf %15, %18 : vector<16x256xf32>
      %20 = math.erf %19 : vector<16x256xf32>
      %cst_16 = arith.constant 1.000000e+00 : f32
      %21 = vector.broadcast %cst_16 : f32 to vector<16x256xf32>
      %22 = arith.addf %21, %20 : vector<16x256xf32>
      %23 = arith.mulf %17, %22 : vector<16x256xf32>
      %24 = arith.truncf %23 : vector<16x256xf32> to vector<16x256xbf16>
      %c0_17 = arith.constant 0 : index
      %c0_18 = arith.constant 0 : index
      %25 = vector.load %arg6[%c0_17, %c0_18] : memref<16x256xbf16, #tpu.memory_space<vmem>>, vector<16x256xbf16>
      tpu.vector_store %arg6[%c0_17, %c0_18], %24 {strides = array<i32>} : memref<16x256xbf16, #tpu.memory_space<vmem>>, vector<16x256xbf16>,
    } else {
    }
    return
  }
  func.func @transform_0(%arg0: i32, %arg1: i32, %arg2: i32) -> (i32, i32) {
    %c0_i32 = arith.constant 0 : i32
    return %arg0, %arg2 : i32, i32
  }
  func.func @transform_1(%arg0: i32, %arg1: i32, %arg2: i32) -> (i32, i32) {
    %c0_i32 = arith.constant 0 : i32
    return %arg2, %arg1 : i32, i32
  }
  func.func @transform_2(%arg0: i32, %arg1: i32, %arg2: i32) -> (i32, i32) {
    %c0_i32 = arith.constant 0 : i32
    %c0_i32_0 = arith.constant 0 : i32
    return %c0_i32, %arg1 : i32, i32
  }
  func.func @transform_3(%arg0: i32, %arg1: i32, %arg2: i32) -> (i32, i32) {
    %c0_i32 = arith.constant 0 : i32
    return %arg0, %arg1 : i32, i32
  }
}

module attributes {stable_mosaic.version = 11 : i64} {
  func.func @_dense_kernel(%arg0: i32, %arg1: i32, %arg2: i32, %arg3: memref<16x256xbf16, #tpu.memory_space<vmem>>, %arg4: memref<256x128xbf16, #tpu.memory_space<vmem>>, %arg5: memref<1x128xf32, #tpu.memory_space<vmem>>, %arg6: memref<16x128xbf16, #tpu.memory_space<vmem>>, %arg7: memref<1x128xf32, #tpu.memory_space<vmem>>, %arg8: memref<1x128xf32, #tpu.memory_space<vmem>>, %arg9: memref<16x128xbf16, #tpu.memory_space<vmem>>, %arg10: memref<16x128xf32, #tpu.memory_space<vmem>>) attributes {dimension_semantics = [#tpu.dimension_semantics<parallel>, #tpu.dimension_semantics<parallel>, #tpu.dimension_semantics<arbitrary>], iteration_bounds = array<i64: 1, 1, 1>, scalar_prefetch = 0 : i64, scratch_operands = 1 : i64, tpu.core_type = #tpu.core_type<tc>, window_params = [{transform_indices = @transform_0, window_bounds = array<i64: 16, 256>}, {transform_indices = @transform_1, window_bounds = array<i64: 256, 128>}, {transform_indices = @transform_2, window_bounds = array<i64: 1, 128>}, {transform_indices = @transform_3, window_bounds = array<i64: 16, 128>}, {transform_indices = @transform_4, window_bounds = array<i64: 1, 128>}, {transform_indices = @transform_5, window_bounds = array<i64: 1, 128>}, {transform_indices = @transform_6, window_bounds = array<i64: 16, 128>}]} {
    %c0_i32 = arith.constant 0 : i32
    %0 = arith.cmpi eq, %arg2, %c0_i32 : i32
    %1 = arith.extui %0 : i1 to i32
    %c0_i32_0 = arith.constant 0 : i32
    %2 = arith.cmpi ne, %1, %c0_i32_0 : i32
    scf.if %2 {
      %cst_10 = arith.constant 0.000000e+00 : f32
      %12 = vector.broadcast %cst_10 : f32 to vector<16x128xf32>
      %c0_11 = arith.constant 0 : index
      %c0_12 = arith.constant 0 : index
      %13 = vector.load %arg10[%c0_11, %c0_12] : memref<16x128xf32, #tpu.memory_space<vmem>>, vector<16x128xf32>
      tpu.vector_store %arg10[%c0_11, %c0_12], %12 {strides = array<i32>} : memref<16x128xf32, #tpu.memory_space<vmem>>, vector<16x128xf32>,
    } else {
    }
    %c0 = arith.constant 0 : index
    %c0_1 = arith.constant 0 : index
    %3 = vector.load %arg10[%c0, %c0_1] : memref<16x128xf32, #tpu.memory_space<vmem>>, vector<16x128xf32>
    %c0_2 = arith.constant 0 : index
    %c0_3 = arith.constant 0 : index
    %4 = vector.load %arg3[%c0_2, %c0_3] : memref<16x256xbf16, #tpu.memory_space<vmem>>, vector<16x256xbf16>
    %c0_4 = arith.constant 0 : index
    %c0_5 = arith.constant 0 : index
    %5 = vector.load %arg4[%c0_4, %c0_5] : memref<256x128xbf16, #tpu.memory_space<vmem>>, vector<256x128xbf16>
    %cst = arith.constant dense<0.000000e+00> : vector<16x128xf32>
    %6 = tpu.matmul %4, %5, %cst {dimension_numbers = #tpu.dot_dimension_numbers<[1], [0], [0], [1], [0, 0, 1, 1], [], []>} : vector<16x256xbf16>, vector<256x128xbf16>, vector<16x128xf32> -> vector<16x128xf32>
    %7 = arith.addf %3, %6 : vector<16x128xf32>
    %c0_6 = arith.constant 0 : index
    %c0_7 = arith.constant 0 : index
    %8 = vector.load %arg10[%c0_6, %c0_7] : memref<16x128xf32, #tpu.memory_space<vmem>>, vector<16x128xf32>
    tpu.vector_store %arg10[%c0_6, %c0_7], %7 {strides = array<i32>} : memref<16x128xf32, #tpu.memory_space<vmem>>, vector<16x128xf32>,
    %c0_i32_8 = arith.constant 0 : i32
    %9 = arith.cmpi eq, %arg2, %c0_i32_8 : i32
    %10 = arith.extui %9 : i1 to i32
    %c0_i32_9 = arith.constant 0 : i32
    %11 = arith.cmpi ne, %10, %c0_i32_9 : i32
    scf.if %11 {
      %c0_10 = arith.constant 0 : index
      %c0_11 = arith.constant 0 : index
      %12 = vector.load %arg10[%c0_10, %c0_11] : memref<16x128xf32, #tpu.memory_space<vmem>>, vector<16x128xf32>
      %c0_12 = arith.constant 0 : index
      %c0_13 = arith.constant 0 : index
      %13 = vector.load %arg5[%c0_12, %c0_13] : memref<1x128xf32, #tpu.memory_space<vmem>>, vector<1x128xf32>
      %14 = vector.broadcast %13 : vector<1x128xf32> to vector<16x128xf32>
      %15 = arith.addf %12, %14 : vector<16x128xf32>
      %c0_14 = arith.constant 0 : index
      %c0_15 = arith.constant 0 : index
      %16 = vector.load %arg6[%c0_14, %c0_15] : memref<16x128xbf16, #tpu.memory_space<vmem>>, vector<16x128xbf16>
      %17 = arith.extf %16 : vector<16x128xbf16> to vector<16x128xf32>
      %18 = arith.addf %15, %17 : vector<16x128xf32>
      %c0_16 = arith.constant 0 : index
      %c0_17 = arith.constant 0 : index
      %19 = vector.load %arg7[%c0_16, %c0_17] : memref<1x128xf32, #tpu.memory_space<vmem>>, vector<1x128xf32>
      %c0_18 = arith.constant 0 : index
      %c0_19 = arith.constant 0 : index
      %20 = vector.load %arg8[%c0_18, %c0_19] : memref<1x128xf32, #tpu.memory_space<vmem>>, vector<1x128xf32>
      %cst_20 = arith.constant dense<0.000000e+00> : vector<16xf32>
      %21 = vector.multi_reduction <add>, %18, %cst_20 [1] : vector<16x128xf32> to vector<16xf32>
      %22 = vector.shape_cast %21 : vector<16xf32> to vector<16x1xf32>
      %cst_21 = arith.constant 1.280000e+02 : f32
      %23 = vector.broadcast %cst_21 : f32 to vector<16x1xf32>
      %24 = arith.divf %22, %23 : vector<16x1xf32>
      %25 = vector.broadcast %24 : vector<16x1xf32> to vector<16x128xf32>
      %26 = arith.subf %18, %25 : vector<16x128xf32>
      %27 = arith.mulf %26, %26 : vector<16x128xf32>
      %cst_22 = arith.constant dense<0.000000e+00> : vector<16xf32>
      %28 = vector.multi_reduction <add>, %27, %cst_22 [1] : vector<16x128xf32> to vector<16xf32>
      %29 = vector.shape_cast %28 : vector<16xf32> to vector<16x1xf32>
      %cst_23 = arith.constant 1.280000e+02 : f32
      %30 = vector.broadcast %cst_23 : f32 to vector<16x1xf32>
      %31 = arith.divf %29, %30 : vector<16x1xf32>
      %cst_24 = arith.constant 9.99999996E-13 : f32
      %32 = vector.broadcast %cst_24 : f32 to vector<16x1xf32>
      %33 = arith.addf %31, %32 : vector<16x1xf32>
      %34 = math.rsqrt %33 : vector<16x1xf32>
      %35 = vector.broadcast %34 : vector<16x1xf32> to vector<16x128xf32>
      %36 = arith.mulf %26, %35 : vector<16x128xf32>
      %37 = vector.broadcast %19 : vector<1x128xf32> to vector<16x128xf32>
      %38 = arith.mulf %36, %37 : vector<16x128xf32>
      %39 = vector.broadcast %20 : vector<1x128xf32> to vector<16x128xf32>
      %40 = arith.addf %38, %39 : vector<16x128xf32>
      %41 = arith.truncf %40 : vector<16x128xf32> to vector<16x128xbf16>
      %c0_25 = arith.constant 0 : index
      %c0_26 = arith.constant 0 : index
      %42 = vector.load %arg9[%c0_25, %c0_26] : memref<16x128xbf16, #tpu.memory_space<vmem>>, vector<16x128xbf16>
      tpu.vector_store %arg9[%c0_25, %c0_26], %41 {strides = array<i32>} : memref<16x128xbf16, #tpu.memory_space<vmem>>, vector<16x128xbf16>,
    } else {
    }
    return
  }
  func.func @transform_0(%arg0: i32, %arg1: i32, %arg2: i32) -> (i32, i32) {
    %c0_i32 = arith.constant 0 : i32
    return %arg0, %arg2 : i32, i32
  }
  func.func @transform_1(%arg0: i32, %arg1: i32, %arg2: i32) -> (i32, i32) {
    %c0_i32 = arith.constant 0 : i32
    return %arg2, %arg1 : i32, i32
  }
  func.func @transform_2(%arg0: i32, %arg1: i32, %arg2: i32) -> (i32, i32) {
    %c0_i32 = arith.constant 0 : i32
    %c0_i32_0 = arith.constant 0 : i32
    return %c0_i32, %arg1 : i32, i32
  }
  func.func @transform_3(%arg0: i32, %arg1: i32, %arg2: i32) -> (i32, i32) {
    %c0_i32 = arith.constant 0 : i32
    return %arg0, %arg1 : i32, i32
  }
  func.func @transform_4(%arg0: i32, %arg1: i32, %arg2: i32) -> (i32, i32) {
    %c0_i32 = arith.constant 0 : i32
    %c0_i32_0 = arith.constant 0 : i32
    return %c0_i32, %arg1 : i32, i32
  }
  func.func @transform_5(%arg0: i32, %arg1: i32, %arg2: i32) -> (i32, i32) {
    %c0_i32 = arith.constant 0 : i32
    %c0_i32_0 = arith.constant 0 : i32
    return %c0_i32, %arg1 : i32, i32
  }
  func.func @transform_6(%arg0: i32, %arg1: i32, %arg2: i32) -> (i32, i32) {
    %c0_i32 = arith.constant 0 : i32
    return %arg0, %arg1 : i32, i32
  }
}

module attributes {stable_mosaic.version = 11 : i64} {
  func.func @_dense_kernel(%arg0: i32, %arg1: i32, %arg2: i32, %arg3: memref<16x128xbf16, #tpu.memory_space<vmem>>, %arg4: memref<128x256xbf16, #tpu.memory_space<vmem>>, %arg5: memref<1x256xf32, #tpu.memory_space<vmem>>, %arg6: memref<16x256xbf16, #tpu.memory_space<vmem>>, %arg7: memref<16x256xf32, #tpu.memory_space<vmem>>) attributes {dimension_semantics = [#tpu.dimension_semantics<parallel>, #tpu.dimension_semantics<parallel>, #tpu.dimension_semantics<arbitrary>], iteration_bounds = array<i64: 1, 1, 1>, scalar_prefetch = 0 : i64, scratch_operands = 1 : i64, tpu.core_type = #tpu.core_type<tc>, window_params = [{transform_indices = @transform_0, window_bounds = array<i64: 16, 128>}, {transform_indices = @transform_1, window_bounds = array<i64: 128, 256>}, {transform_indices = @transform_2, window_bounds = array<i64: 1, 256>}, {transform_indices = @transform_3, window_bounds = array<i64: 16, 256>}]} {
    %c0_i32 = arith.constant 0 : i32
    %0 = arith.cmpi eq, %arg2, %c0_i32 : i32
    %1 = arith.extui %0 : i1 to i32
    %c0_i32_0 = arith.constant 0 : i32
    %2 = arith.cmpi ne, %1, %c0_i32_0 : i32
    scf.if %2 {
      %cst_10 = arith.constant 0.000000e+00 : f32
      %12 = vector.broadcast %cst_10 : f32 to vector<16x256xf32>
      %c0_11 = arith.constant 0 : index
      %c0_12 = arith.constant 0 : index
      %13 = vector.load %arg7[%c0_11, %c0_12] : memref<16x256xf32, #tpu.memory_space<vmem>>, vector<16x256xf32>
      tpu.vector_store %arg7[%c0_11, %c0_12], %12 {strides = array<i32>} : memref<16x256xf32, #tpu.memory_space<vmem>>, vector<16x256xf32>,
    } else {
    }
    %c0 = arith.constant 0 : index
    %c0_1 = arith.constant 0 : index
    %3 = vector.load %arg7[%c0, %c0_1] : memref<16x256xf32, #tpu.memory_space<vmem>>, vector<16x256xf32>
    %c0_2 = arith.constant 0 : index
    %c0_3 = arith.constant 0 : index
    %4 = vector.load %arg3[%c0_2, %c0_3] : memref<16x128xbf16, #tpu.memory_space<vmem>>, vector<16x128xbf16>
    %c0_4 = arith.constant 0 : index
    %c0_5 = arith.constant 0 : index
    %5 = vector.load %arg4[%c0_4, %c0_5] : memref<128x256xbf16, #tpu.memory_space<vmem>>, vector<128x256xbf16>
    %cst = arith.constant dense<0.000000e+00> : vector<16x256xf32>
    %6 = tpu.matmul %4, %5, %cst {dimension_numbers = #tpu.dot_dimension_numbers<[1], [0], [0], [1], [0, 0, 1, 1], [], []>} : vector<16x128xbf16>, vector<128x256xbf16>, vector<16x256xf32> -> vector<16x256xf32>
    %7 = arith.addf %3, %6 : vector<16x256xf32>
    %c0_6 = arith.constant 0 : index
    %c0_7 = arith.constant 0 : index
    %8 = vector.load %arg7[%c0_6, %c0_7] : memref<16x256xf32, #tpu.memory_space<vmem>>, vector<16x256xf32>
    tpu.vector_store %arg7[%c0_6, %c0_7], %7 {strides = array<i32>} : memref<16x256xf32, #tpu.memory_space<vmem>>, vector<16x256xf32>,
    %c0_i32_8 = arith.constant 0 : i32
    %9 = arith.cmpi eq, %arg2, %c0_i32_8 : i32
    %10 = arith.extui %9 : i1 to i32
    %c0_i32_9 = arith.constant 0 : i32
    %11 = arith.cmpi ne, %10, %c0_i32_9 : i32
    scf.if %11 {
      %c0_10 = arith.constant 0 : index
      %c0_11 = arith.constant 0 : index
      %12 = vector.load %arg7[%c0_10, %c0_11] : memref<16x256xf32, #tpu.memory_space<vmem>>, vector<16x256xf32>
      %c0_12 = arith.constant 0 : index
      %c0_13 = arith.constant 0 : index
      %13 = vector.load %arg5[%c0_12, %c0_13] : memref<1x256xf32, #tpu.memory_space<vmem>>, vector<1x256xf32>
      %14 = vector.broadcast %13 : vector<1x256xf32> to vector<16x256xf32>
      %15 = arith.addf %12, %14 : vector<16x256xf32>
      %16 = arith.truncf %15 : vector<16x256xf32> to vector<16x256xbf16>
      %c0_14 = arith.constant 0 : index
      %c0_15 = arith.constant 0 : index
      %17 = vector.load %arg6[%c0_14, %c0_15] : memref<16x256xbf16, #tpu.memory_space<vmem>>, vector<16x256xbf16>
      tpu.vector_store %arg6[%c0_14, %c0_15], %16 {strides = array<i32>} : memref<16x256xbf16, #tpu.memory_space<vmem>>, vector<16x256xbf16>,
    } else {
    }
    return
  }
  func.func @transform_0(%arg0: i32, %arg1: i32, %arg2: i32) -> (i32, i32) {
    %c0_i32 = arith.constant 0 : i32
    return %arg0, %arg2 : i32, i32
  }
  func.func @transform_1(%arg0: i32, %arg1: i32, %arg2: i32) -> (i32, i32) {
    %c0_i32 = arith.constant 0 : i32
    return %arg2, %arg1 : i32, i32
  }
  func.func @transform_2(%arg0: i32, %arg1: i32, %arg2: i32) -> (i32, i32) {
    %c0_i32 = arith.constant 0 : i32
    %c0_i32_0 = arith.constant 0 : i32
    return %c0_i32, %arg1 : i32, i32
  }
  func.func @transform_3(%arg0: i32, %arg1: i32, %arg2: i32) -> (i32, i32) {
    %c0_i32 = arith.constant 0 : i32
    return %arg0, %arg1 : i32, i32
  }
}

module attributes {stable_mosaic.version = 11 : i64} {
  func.func @_cross_attn_kernel(%arg0: i32, %arg1: memref<1x8x128xbf16, #tpu.memory_space<vmem>>, %arg2: memref<1x8x256xbf16, #tpu.memory_space<vmem>>, %arg3: memref<1x1x8xf32, #tpu.memory_space<vmem>>, %arg4: memref<1x8x128xbf16, #tpu.memory_space<vmem>>) attributes {dimension_semantics = [#tpu.dimension_semantics<parallel>], iteration_bounds = array<i64: 2>, scalar_prefetch = 0 : i64, scratch_operands = 0 : i64, tpu.core_type = #tpu.core_type<tc>, window_params = [{transform_indices = @transform_0, window_bounds = array<i64: 1, 8, 128>}, {transform_indices = @transform_1, window_bounds = array<i64: 1, 8, 256>}, {transform_indices = @transform_2, window_bounds = array<i64: 1, 1, 8>}, {transform_indices = @transform_3, window_bounds = array<i64: 1, 8, 128>}]} {
    %c0 = arith.constant 0 : index
    %c0_0 = arith.constant 0 : index
    %c0_1 = arith.constant 0 : index
    %0 = vector.load %arg2[%c0, %c0_0, %c0_1] : memref<1x8x256xbf16, #tpu.memory_space<vmem>>, vector<1x8x256xbf16>
    %1 = vector.shape_cast %0 : vector<1x8x256xbf16> to vector<8x256xbf16>
    %c0_2 = arith.constant 0 : index
    %c0_3 = arith.constant 0 : index
    %c0_4 = arith.constant 0 : index
    %2 = vector.load %arg1[%c0_2, %c0_3, %c0_4] : memref<1x8x128xbf16, #tpu.memory_space<vmem>>, vector<1x8x128xbf16>
    %3 = vector.shape_cast %2 : vector<1x8x128xbf16> to vector<8x128xbf16>
    %4 = vector.extract_strided_slice %1 {offsets = [0, 0], sizes = [8, 128], strides = [1, 1]} : vector<8x256xbf16> to vector<8x128xbf16>
    %5 = vector.extract_strided_slice %1 {offsets = [0, 128], sizes = [8, 128], strides = [1, 1]} : vector<8x256xbf16> to vector<8x128xbf16>
    %c0_5 = arith.constant 0 : index
    %c0_6 = arith.constant 0 : index
    %c0_7 = arith.constant 0 : index
    %6 = vector.load %arg3[%c0_5, %c0_6, %c0_7] : memref<1x1x8xf32, #tpu.memory_space<vmem>>, vector<1x1x8xf32>
    %7 = vector.shape_cast %6 : vector<1x1x8xf32> to vector<1x8xf32>
    %cst = arith.constant 1.000000e+00 : f32
    %8 = vector.broadcast %cst : f32 to vector<1x8xf32>
    %9 = arith.subf %8, %7 : vector<1x8xf32>
    %cst_8 = arith.constant -1.000000e+09 : f32
    %10 = vector.broadcast %cst_8 : f32 to vector<1x8xf32>
    %11 = arith.mulf %9, %10 : vector<1x8xf32>
    %12 = vector.extract_strided_slice %3 {offsets = [0, 0], sizes = [8, 64], strides = [1, 1]} : vector<8x128xbf16> to vector<8x64xbf16>
    %13 = arith.extf %12 : vector<8x64xbf16> to vector<8x64xf32>
    %cst_9 = arith.constant 1.250000e-01 : f32
    %14 = vector.broadcast %cst_9 : f32 to vector<8x64xf32>
    %15 = arith.mulf %13, %14 : vector<8x64xf32>
    %16 = arith.truncf %15 : vector<8x64xf32> to vector<8x64xbf16>
    %17 = vector.extract_strided_slice %4 {offsets = [0, 0], sizes = [8, 64], strides = [1, 1]} : vector<8x128xbf16> to vector<8x64xbf16>
    %18 = vector.extract_strided_slice %5 {offsets = [0, 0], sizes = [8, 64], strides = [1, 1]} : vector<8x128xbf16> to vector<8x64xbf16>
    %cst_10 = arith.constant dense<0.000000e+00> : vector<8x8xf32>
    %19 = tpu.matmul %16, %17, %cst_10 {dimension_numbers = #tpu.dot_dimension_numbers<[1], [1], [0], [0], [0, 0, 1, 0], [], []>} : vector<8x64xbf16>, vector<8x64xbf16>, vector<8x8xf32> -> vector<8x8xf32>
    %20 = vector.broadcast %11 : vector<1x8xf32> to vector<8x8xf32>
    %21 = arith.addf %19, %20 : vector<8x8xf32>
    %cst_11 = arith.constant dense<0xFF800000> : vector<8xf32>
    %22 = vector.multi_reduction <maximumf>, %21, %cst_11 [1] : vector<8x8xf32> to vector<8xf32>
    %23 = vector.shape_cast %22 : vector<8xf32> to vector<8x1xf32>
    %24 = vector.broadcast %23 : vector<8x1xf32> to vector<8x8xf32>
    %25 = arith.subf %21, %24 : vector<8x8xf32>
    %26 = math.exp %25 : vector<8x8xf32>
    %cst_12 = arith.constant dense<0.000000e+00> : vector<8xf32>
    %27 = vector.multi_reduction <add>, %26, %cst_12 [1] : vector<8x8xf32> to vector<8xf32>
    %28 = vector.shape_cast %27 : vector<8xf32> to vector<8x1xf32>
    %29 = tpu.reciprocal %28 {approx = true} : vector<8x1xf32> -> vector<8x1xf32>
    %30 = vector.broadcast %29 : vector<8x1xf32> to vector<8x8xf32>
    %31 = arith.mulf %26, %30 : vector<8x8xf32>
    %32 = arith.truncf %31 : vector<8x8xf32> to vector<8x8xbf16>
    %cst_13 = arith.constant dense<0.000000e+00> : vector<8x64xf32>
    %33 = tpu.matmul %32, %18, %cst_13 {dimension_numbers = #tpu.dot_dimension_numbers<[1], [0], [0], [1], [0, 0, 1, 1], [], []>} : vector<8x8xbf16>, vector<8x64xbf16>, vector<8x64xf32> -> vector<8x64xf32>
    %34 = vector.extract_strided_slice %3 {offsets = [0, 64], sizes = [8, 64], strides = [1, 1]} : vector<8x128xbf16> to vector<8x64xbf16>
    %35 = arith.extf %34 : vector<8x64xbf16> to vector<8x64xf32>
    %cst_14 = arith.constant 1.250000e-01 : f32
    %36 = vector.broadcast %cst_14 : f32 to vector<8x64xf32>
    %37 = arith.mulf %35, %36 : vector<8x64xf32>
    %38 = arith.truncf %37 : vector<8x64xf32> to vector<8x64xbf16>
    %39 = vector.extract_strided_slice %4 {offsets = [0, 64], sizes = [8, 64], strides = [1, 1]} : vector<8x128xbf16> to vector<8x64xbf16>
    %40 = vector.extract_strided_slice %5 {offsets = [0, 64], sizes = [8, 64], strides = [1, 1]} : vector<8x128xbf16> to vector<8x64xbf16>
    %cst_15 = arith.constant dense<0.000000e+00> : vector<8x8xf32>
    %41 = tpu.matmul %38, %39, %cst_15 {dimension_numbers = #tpu.dot_dimension_numbers<[1], [1], [0], [0], [0, 0, 1, 0], [], []>} : vector<8x64xbf16>, vector<8x64xbf16>, vector<8x8xf32> -> vector<8x8xf32>
    %42 = vector.broadcast %11 : vector<1x8xf32> to vector<8x8xf32>
    %43 = arith.addf %41, %42 : vector<8x8xf32>
    %cst_16 = arith.constant dense<0xFF800000> : vector<8xf32>
    %44 = vector.multi_reduction <maximumf>, %43, %cst_16 [1] : vector<8x8xf32> to vector<8xf32>
    %45 = vector.shape_cast %44 : vector<8xf32> to vector<8x1xf32>
    %46 = vector.broadcast %45 : vector<8x1xf32> to vector<8x8xf32>
    %47 = arith.subf %43, %46 : vector<8x8xf32>
    %48 = math.exp %47 : vector<8x8xf32>
    %cst_17 = arith.constant dense<0.000000e+00> : vector<8xf32>
    %49 = vector.multi_reduction <add>, %48, %cst_17 [1] : vector<8x8xf32> to vector<8xf32>
    %50 = vector.shape_cast %49 : vector<8xf32> to vector<8x1xf32>
    %51 = tpu.reciprocal %50 {approx = true} : vector<8x1xf32> -> vector<8x1xf32>
    %52 = vector.broadcast %51 : vector<8x1xf32> to vector<8x8xf32>
    %53 = arith.mulf %48, %52 : vector<8x8xf32>
    %54 = arith.truncf %53 : vector<8x8xf32> to vector<8x8xbf16>
    %cst_18 = arith.constant dense<0.000000e+00> : vector<8x64xf32>
    %55 = tpu.matmul %54, %40, %cst_18 {dimension_numbers = #tpu.dot_dimension_numbers<[1], [0], [0], [1], [0, 0, 1, 1], [], []>} : vector<8x8xbf16>, vector<8x64xbf16>, vector<8x64xf32> -> vector<8x64xf32>
    %56 = tpu.concatenate %33, %55 in 1 : vector<8x64xf32>, vector<8x64xf32> -> vector<8x128xf32>
    %57 = arith.truncf %56 : vector<8x128xf32> to vector<8x128xbf16>
    %c0_19 = arith.constant 0 : index
    %c0_20 = arith.constant 0 : index
    %c0_21 = arith.constant 0 : index
    %58 = vector.load %arg4[%c0_19, %c0_20, %c0_21] : memref<1x8x128xbf16, #tpu.memory_space<vmem>>, vector<1x8x128xbf16>
    %59 = vector.shape_cast %58 : vector<1x8x128xbf16> to vector<8x128xbf16>
    %60 = vector.shape_cast %57 : vector<8x128xbf16> to vector<1x8x128xbf16>
    tpu.vector_store %arg4[%c0_19, %c0_20, %c0_21], %60 {strides = array<i32>} : memref<1x8x128xbf16, #tpu.memory_space<vmem>>, vector<1x8x128xbf16>,
    return
  }
  func.func @transform_0(%arg0: i32) -> (i32, i32, i32) {
    %c0_i32 = arith.constant 0 : i32
    %c0_i32_0 = arith.constant 0 : i32
    %c0_i32_1 = arith.constant 0 : i32
    return %arg0, %c0_i32, %c0_i32_0 : i32, i32, i32
  }
  func.func @transform_1(%arg0: i32) -> (i32, i32, i32) {
    %c0_i32 = arith.constant 0 : i32
    %c0_i32_0 = arith.constant 0 : i32
    %c0_i32_1 = arith.constant 0 : i32
    return %arg0, %c0_i32, %c0_i32_0 : i32, i32, i32
  }
  func.func @transform_2(%arg0: i32) -> (i32, i32, i32) {
    %c0_i32 = arith.constant 0 : i32
    %c0_i32_0 = arith.constant 0 : i32
    %c0_i32_1 = arith.constant 0 : i32
    return %arg0, %c0_i32, %c0_i32_0 : i32, i32, i32
  }
  func.func @transform_3(%arg0: i32) -> (i32, i32, i32) {
    %c0_i32 = arith.constant 0 : i32
    %c0_i32_0 = arith.constant 0 : i32
    %c0_i32_1 = arith.constant 0 : i32
    return %arg0, %c0_i32, %c0_i32_0 : i32, i32, i32
  }
}

module attributes {stable_mosaic.version = 11 : i64} {
  func.func @_dense_kernel(%arg0: i32, %arg1: i32, %arg2: i32, %arg3: memref<16x128xbf16, #tpu.memory_space<vmem>>, %arg4: memref<128x128xbf16, #tpu.memory_space<vmem>>, %arg5: memref<1x128xf32, #tpu.memory_space<vmem>>, %arg6: memref<1x128xf32, #tpu.memory_space<vmem>>, %arg7: memref<1x128xf32, #tpu.memory_space<vmem>>, %arg8: memref<16x128xbf16, #tpu.memory_space<vmem>>, %arg9: memref<16x128xf32, #tpu.memory_space<vmem>>) attributes {dimension_semantics = [#tpu.dimension_semantics<parallel>, #tpu.dimension_semantics<parallel>, #tpu.dimension_semantics<arbitrary>], iteration_bounds = array<i64: 1, 1, 1>, scalar_prefetch = 0 : i64, scratch_operands = 1 : i64, tpu.core_type = #tpu.core_type<tc>, window_params = [{transform_indices = @transform_0, window_bounds = array<i64: 16, 128>}, {transform_indices = @transform_1, window_bounds = array<i64: 128, 128>}, {transform_indices = @transform_2, window_bounds = array<i64: 1, 128>}, {transform_indices = @transform_3, window_bounds = array<i64: 1, 128>}, {transform_indices = @transform_4, window_bounds = array<i64: 1, 128>}, {transform_indices = @transform_5, window_bounds = array<i64: 16, 128>}]} {
    %c0_i32 = arith.constant 0 : i32
    %0 = arith.cmpi eq, %arg2, %c0_i32 : i32
    %1 = arith.extui %0 : i1 to i32
    %c0_i32_0 = arith.constant 0 : i32
    %2 = arith.cmpi ne, %1, %c0_i32_0 : i32
    scf.if %2 {
      %cst_10 = arith.constant 0.000000e+00 : f32
      %12 = vector.broadcast %cst_10 : f32 to vector<16x128xf32>
      %c0_11 = arith.constant 0 : index
      %c0_12 = arith.constant 0 : index
      %13 = vector.load %arg9[%c0_11, %c0_12] : memref<16x128xf32, #tpu.memory_space<vmem>>, vector<16x128xf32>
      tpu.vector_store %arg9[%c0_11, %c0_12], %12 {strides = array<i32>} : memref<16x128xf32, #tpu.memory_space<vmem>>, vector<16x128xf32>,
    } else {
    }
    %c0 = arith.constant 0 : index
    %c0_1 = arith.constant 0 : index
    %3 = vector.load %arg9[%c0, %c0_1] : memref<16x128xf32, #tpu.memory_space<vmem>>, vector<16x128xf32>
    %c0_2 = arith.constant 0 : index
    %c0_3 = arith.constant 0 : index
    %4 = vector.load %arg3[%c0_2, %c0_3] : memref<16x128xbf16, #tpu.memory_space<vmem>>, vector<16x128xbf16>
    %c0_4 = arith.constant 0 : index
    %c0_5 = arith.constant 0 : index
    %5 = vector.load %arg4[%c0_4, %c0_5] : memref<128x128xbf16, #tpu.memory_space<vmem>>, vector<128x128xbf16>
    %cst = arith.constant dense<0.000000e+00> : vector<16x128xf32>
    %6 = tpu.matmul %4, %5, %cst {dimension_numbers = #tpu.dot_dimension_numbers<[1], [0], [0], [1], [0, 0, 1, 1], [], []>} : vector<16x128xbf16>, vector<128x128xbf16>, vector<16x128xf32> -> vector<16x128xf32>
    %7 = arith.addf %3, %6 : vector<16x128xf32>
    %c0_6 = arith.constant 0 : index
    %c0_7 = arith.constant 0 : index
    %8 = vector.load %arg9[%c0_6, %c0_7] : memref<16x128xf32, #tpu.memory_space<vmem>>, vector<16x128xf32>
    tpu.vector_store %arg9[%c0_6, %c0_7], %7 {strides = array<i32>} : memref<16x128xf32, #tpu.memory_space<vmem>>, vector<16x128xf32>,
    %c0_i32_8 = arith.constant 0 : i32
    %9 = arith.cmpi eq, %arg2, %c0_i32_8 : i32
    %10 = arith.extui %9 : i1 to i32
    %c0_i32_9 = arith.constant 0 : i32
    %11 = arith.cmpi ne, %10, %c0_i32_9 : i32
    scf.if %11 {
      %c0_10 = arith.constant 0 : index
      %c0_11 = arith.constant 0 : index
      %12 = vector.load %arg9[%c0_10, %c0_11] : memref<16x128xf32, #tpu.memory_space<vmem>>, vector<16x128xf32>
      %c0_12 = arith.constant 0 : index
      %c0_13 = arith.constant 0 : index
      %13 = vector.load %arg5[%c0_12, %c0_13] : memref<1x128xf32, #tpu.memory_space<vmem>>, vector<1x128xf32>
      %14 = vector.broadcast %13 : vector<1x128xf32> to vector<16x128xf32>
      %15 = arith.addf %12, %14 : vector<16x128xf32>
      %cst_14 = arith.constant 5.000000e-01 : f32
      %16 = vector.broadcast %cst_14 : f32 to vector<16x128xf32>
      %17 = arith.mulf %16, %15 : vector<16x128xf32>
      %cst_15 = arith.constant 0.707106769 : f32
      %18 = vector.broadcast %cst_15 : f32 to vector<16x128xf32>
      %19 = arith.mulf %15, %18 : vector<16x128xf32>
      %20 = math.erf %19 : vector<16x128xf32>
      %cst_16 = arith.constant 1.000000e+00 : f32
      %21 = vector.broadcast %cst_16 : f32 to vector<16x128xf32>
      %22 = arith.addf %21, %20 : vector<16x128xf32>
      %23 = arith.mulf %17, %22 : vector<16x128xf32>
      %c0_17 = arith.constant 0 : index
      %c0_18 = arith.constant 0 : index
      %24 = vector.load %arg6[%c0_17, %c0_18] : memref<1x128xf32, #tpu.memory_space<vmem>>, vector<1x128xf32>
      %c0_19 = arith.constant 0 : index
      %c0_20 = arith.constant 0 : index
      %25 = vector.load %arg7[%c0_19, %c0_20] : memref<1x128xf32, #tpu.memory_space<vmem>>, vector<1x128xf32>
      %cst_21 = arith.constant dense<0.000000e+00> : vector<16xf32>
      %26 = vector.multi_reduction <add>, %23, %cst_21 [1] : vector<16x128xf32> to vector<16xf32>
      %27 = vector.shape_cast %26 : vector<16xf32> to vector<16x1xf32>
      %cst_22 = arith.constant 1.280000e+02 : f32
      %28 = vector.broadcast %cst_22 : f32 to vector<16x1xf32>
      %29 = arith.divf %27, %28 : vector<16x1xf32>
      %30 = vector.broadcast %29 : vector<16x1xf32> to vector<16x128xf32>
      %31 = arith.subf %23, %30 : vector<16x128xf32>
      %32 = arith.mulf %31, %31 : vector<16x128xf32>
      %cst_23 = arith.constant dense<0.000000e+00> : vector<16xf32>
      %33 = vector.multi_reduction <add>, %32, %cst_23 [1] : vector<16x128xf32> to vector<16xf32>
      %34 = vector.shape_cast %33 : vector<16xf32> to vector<16x1xf32>
      %cst_24 = arith.constant 1.280000e+02 : f32
      %35 = vector.broadcast %cst_24 : f32 to vector<16x1xf32>
      %36 = arith.divf %34, %35 : vector<16x1xf32>
      %cst_25 = arith.constant 9.99999996E-13 : f32
      %37 = vector.broadcast %cst_25 : f32 to vector<16x1xf32>
      %38 = arith.addf %36, %37 : vector<16x1xf32>
      %39 = math.rsqrt %38 : vector<16x1xf32>
      %40 = vector.broadcast %39 : vector<16x1xf32> to vector<16x128xf32>
      %41 = arith.mulf %31, %40 : vector<16x128xf32>
      %42 = vector.broadcast %24 : vector<1x128xf32> to vector<16x128xf32>
      %43 = arith.mulf %41, %42 : vector<16x128xf32>
      %44 = vector.broadcast %25 : vector<1x128xf32> to vector<16x128xf32>
      %45 = arith.addf %43, %44 : vector<16x128xf32>
      %46 = arith.truncf %45 : vector<16x128xf32> to vector<16x128xbf16>
      %c0_26 = arith.constant 0 : index
      %c0_27 = arith.constant 0 : index
      %47 = vector.load %arg8[%c0_26, %c0_27] : memref<16x128xbf16, #tpu.memory_space<vmem>>, vector<16x128xbf16>
      tpu.vector_store %arg8[%c0_26, %c0_27], %46 {strides = array<i32>} : memref<16x128xbf16, #tpu.memory_space<vmem>>, vector<16x128xbf16>,
    } else {
    }
    return
  }
  func.func @transform_0(%arg0: i32, %arg1: i32, %arg2: i32) -> (i32, i32) {
    %c0_i32 = arith.constant 0 : i32
    return %arg0, %arg2 : i32, i32
  }
  func.func @transform_1(%arg0: i32, %arg1: i32, %arg2: i32) -> (i32, i32) {
    %c0_i32 = arith.constant 0 : i32
    return %arg2, %arg1 : i32, i32
  }
  func.func @transform_2(%arg0: i32, %arg1: i32, %arg2: i32) -> (i32, i32) {
    %c0_i32 = arith.constant 0 : i32
    %c0_i32_0 = arith.constant 0 : i32
    return %c0_i32, %arg1 : i32, i32
  }
  func.func @transform_3(%arg0: i32, %arg1: i32, %arg2: i32) -> (i32, i32) {
    %c0_i32 = arith.constant 0 : i32
    %c0_i32_0 = arith.constant 0 : i32
    return %c0_i32, %arg1 : i32, i32
  }
  func.func @transform_4(%arg0: i32, %arg1: i32, %arg2: i32) -> (i32, i32) {
    %c0_i32 = arith.constant 0 : i32
    %c0_i32_0 = arith.constant 0 : i32
    return %c0_i32, %arg1 : i32, i32
  }
  func.func @transform_5(%arg0: i32, %arg1: i32, %arg2: i32) -> (i32, i32) {
    %c0_i32 = arith.constant 0 : i32
    return %arg0, %arg1 : i32, i32
  }
}

module attributes {stable_mosaic.version = 11 : i64} {
  func.func @_dense_kernel(%arg0: i32, %arg1: i32, %arg2: i32, %arg3: memref<16x128xbf16, #tpu.memory_space<vmem>>, %arg4: memref<128x128xbf16, #tpu.memory_space<vmem>>, %arg5: memref<1x128xf32, #tpu.memory_space<vmem>>, %arg6: memref<16x128xbf16, #tpu.memory_space<vmem>>, %arg7: memref<16x128xf32, #tpu.memory_space<vmem>>) attributes {dimension_semantics = [#tpu.dimension_semantics<parallel>, #tpu.dimension_semantics<parallel>, #tpu.dimension_semantics<arbitrary>], iteration_bounds = array<i64: 1, 1, 1>, scalar_prefetch = 0 : i64, scratch_operands = 1 : i64, tpu.core_type = #tpu.core_type<tc>, window_params = [{transform_indices = @transform_0, window_bounds = array<i64: 16, 128>}, {transform_indices = @transform_1, window_bounds = array<i64: 128, 128>}, {transform_indices = @transform_2, window_bounds = array<i64: 1, 128>}, {transform_indices = @transform_3, window_bounds = array<i64: 16, 128>}]} {
    %c0_i32 = arith.constant 0 : i32
    %0 = arith.cmpi eq, %arg2, %c0_i32 : i32
    %1 = arith.extui %0 : i1 to i32
    %c0_i32_0 = arith.constant 0 : i32
    %2 = arith.cmpi ne, %1, %c0_i32_0 : i32
    scf.if %2 {
      %cst_10 = arith.constant 0.000000e+00 : f32
      %12 = vector.broadcast %cst_10 : f32 to vector<16x128xf32>
      %c0_11 = arith.constant 0 : index
      %c0_12 = arith.constant 0 : index
      %13 = vector.load %arg7[%c0_11, %c0_12] : memref<16x128xf32, #tpu.memory_space<vmem>>, vector<16x128xf32>
      tpu.vector_store %arg7[%c0_11, %c0_12], %12 {strides = array<i32>} : memref<16x128xf32, #tpu.memory_space<vmem>>, vector<16x128xf32>,
    } else {
    }
    %c0 = arith.constant 0 : index
    %c0_1 = arith.constant 0 : index
    %3 = vector.load %arg7[%c0, %c0_1] : memref<16x128xf32, #tpu.memory_space<vmem>>, vector<16x128xf32>
    %c0_2 = arith.constant 0 : index
    %c0_3 = arith.constant 0 : index
    %4 = vector.load %arg3[%c0_2, %c0_3] : memref<16x128xbf16, #tpu.memory_space<vmem>>, vector<16x128xbf16>
    %c0_4 = arith.constant 0 : index
    %c0_5 = arith.constant 0 : index
    %5 = vector.load %arg4[%c0_4, %c0_5] : memref<128x128xbf16, #tpu.memory_space<vmem>>, vector<128x128xbf16>
    %cst = arith.constant dense<0.000000e+00> : vector<16x128xf32>
    %6 = tpu.matmul %4, %5, %cst {dimension_numbers = #tpu.dot_dimension_numbers<[1], [0], [0], [1], [0, 0, 1, 1], [], []>} : vector<16x128xbf16>, vector<128x128xbf16>, vector<16x128xf32> -> vector<16x128xf32>
    %7 = arith.addf %3, %6 : vector<16x128xf32>
    %c0_6 = arith.constant 0 : index
    %c0_7 = arith.constant 0 : index
    %8 = vector.load %arg7[%c0_6, %c0_7] : memref<16x128xf32, #tpu.memory_space<vmem>>, vector<16x128xf32>
    tpu.vector_store %arg7[%c0_6, %c0_7], %7 {strides = array<i32>} : memref<16x128xf32, #tpu.memory_space<vmem>>, vector<16x128xf32>,
    %c0_i32_8 = arith.constant 0 : i32
    %9 = arith.cmpi eq, %arg2, %c0_i32_8 : i32
    %10 = arith.extui %9 : i1 to i32
    %c0_i32_9 = arith.constant 0 : i32
    %11 = arith.cmpi ne, %10, %c0_i32_9 : i32
    scf.if %11 {
      %c0_10 = arith.constant 0 : index
      %c0_11 = arith.constant 0 : index
      %12 = vector.load %arg7[%c0_10, %c0_11] : memref<16x128xf32, #tpu.memory_space<vmem>>, vector<16x128xf32>
      %c0_12 = arith.constant 0 : index
      %c0_13 = arith.constant 0 : index
      %13 = vector.load %arg5[%c0_12, %c0_13] : memref<1x128xf32, #tpu.memory_space<vmem>>, vector<1x128xf32>
      %14 = vector.broadcast %13 : vector<1x128xf32> to vector<16x128xf32>
      %15 = arith.addf %12, %14 : vector<16x128xf32>
      %16 = math.tanh %15 : vector<16x128xf32>
      %17 = arith.truncf %16 : vector<16x128xf32> to vector<16x128xbf16>
      %c0_14 = arith.constant 0 : index
      %c0_15 = arith.constant 0 : index
      %18 = vector.load %arg6[%c0_14, %c0_15] : memref<16x128xbf16, #tpu.memory_space<vmem>>, vector<16x128xbf16>
      tpu.vector_store %arg6[%c0_14, %c0_15], %17 {strides = array<i32>} : memref<16x128xbf16, #tpu.memory_space<vmem>>, vector<16x128xbf16>,
    } else {
    }
    return
  }
  func.func @transform_0(%arg0: i32, %arg1: i32, %arg2: i32) -> (i32, i32) {
    %c0_i32 = arith.constant 0 : i32
    return %arg0, %arg2 : i32, i32
  }
  func.func @transform_1(%arg0: i32, %arg1: i32, %arg2: i32) -> (i32, i32) {
    %c0_i32 = arith.constant 0 : i32
    return %arg2, %arg1 : i32, i32
  }
  func.func @transform_2(%arg0: i32, %arg1: i32, %arg2: i32) -> (i32, i32) {
    %c0_i32 = arith.constant 0 : i32
    %c0_i32_0 = arith.constant 0 : i32
    return %c0_i32, %arg1 : i32, i32
  }
  func.func @transform_3(%arg0: i32, %arg1: i32, %arg2: i32) -> (i32, i32) {
    %c0_i32 = arith.constant 0 : i32
    return %arg0, %arg1 : i32, i32
  }
}

module attributes {stable_mosaic.version = 11 : i64} {
  func.func @_dense_kernel(%arg0: i32, %arg1: i32, %arg2: i32, %arg3: memref<16x128xbf16, #tpu.memory_space<vmem>>, %arg4: memref<128x128xbf16, #tpu.memory_space<vmem>>, %arg5: memref<1x128xf32, #tpu.memory_space<vmem>>, %arg6: memref<16x128xf32, #tpu.memory_space<vmem>>, %arg7: memref<16x128xf32, #tpu.memory_space<vmem>>) attributes {dimension_semantics = [#tpu.dimension_semantics<parallel>, #tpu.dimension_semantics<parallel>, #tpu.dimension_semantics<arbitrary>], iteration_bounds = array<i64: 1, 1, 1>, scalar_prefetch = 0 : i64, scratch_operands = 1 : i64, tpu.core_type = #tpu.core_type<tc>, window_params = [{transform_indices = @transform_0, window_bounds = array<i64: 16, 128>}, {transform_indices = @transform_1, window_bounds = array<i64: 128, 128>}, {transform_indices = @transform_2, window_bounds = array<i64: 1, 128>}, {transform_indices = @transform_3, window_bounds = array<i64: 16, 128>}]} {
    %c0_i32 = arith.constant 0 : i32
    %0 = arith.cmpi eq, %arg2, %c0_i32 : i32
    %1 = arith.extui %0 : i1 to i32
    %c0_i32_0 = arith.constant 0 : i32
    %2 = arith.cmpi ne, %1, %c0_i32_0 : i32
    scf.if %2 {
      %cst_10 = arith.constant 0.000000e+00 : f32
      %12 = vector.broadcast %cst_10 : f32 to vector<16x128xf32>
      %c0_11 = arith.constant 0 : index
      %c0_12 = arith.constant 0 : index
      %13 = vector.load %arg7[%c0_11, %c0_12] : memref<16x128xf32, #tpu.memory_space<vmem>>, vector<16x128xf32>
      tpu.vector_store %arg7[%c0_11, %c0_12], %12 {strides = array<i32>} : memref<16x128xf32, #tpu.memory_space<vmem>>, vector<16x128xf32>,
    } else {
    }
    %c0 = arith.constant 0 : index
    %c0_1 = arith.constant 0 : index
    %3 = vector.load %arg7[%c0, %c0_1] : memref<16x128xf32, #tpu.memory_space<vmem>>, vector<16x128xf32>
    %c0_2 = arith.constant 0 : index
    %c0_3 = arith.constant 0 : index
    %4 = vector.load %arg3[%c0_2, %c0_3] : memref<16x128xbf16, #tpu.memory_space<vmem>>, vector<16x128xbf16>
    %c0_4 = arith.constant 0 : index
    %c0_5 = arith.constant 0 : index
    %5 = vector.load %arg4[%c0_4, %c0_5] : memref<128x128xbf16, #tpu.memory_space<vmem>>, vector<128x128xbf16>
    %cst = arith.constant dense<0.000000e+00> : vector<16x128xf32>
    %6 = tpu.matmul %4, %5, %cst {dimension_numbers = #tpu.dot_dimension_numbers<[1], [0], [0], [1], [0, 0, 1, 1], [], []>} : vector<16x128xbf16>, vector<128x128xbf16>, vector<16x128xf32> -> vector<16x128xf32>
    %7 = arith.addf %3, %6 : vector<16x128xf32>
    %c0_6 = arith.constant 0 : index
    %c0_7 = arith.constant 0 : index
    %8 = vector.load %arg7[%c0_6, %c0_7] : memref<16x128xf32, #tpu.memory_space<vmem>>, vector<16x128xf32>
    tpu.vector_store %arg7[%c0_6, %c0_7], %7 {strides = array<i32>} : memref<16x128xf32, #tpu.memory_space<vmem>>, vector<16x128xf32>,
    %c0_i32_8 = arith.constant 0 : i32
    %9 = arith.cmpi eq, %arg2, %c0_i32_8 : i32
    %10 = arith.extui %9 : i1 to i32
    %c0_i32_9 = arith.constant 0 : i32
    %11 = arith.cmpi ne, %10, %c0_i32_9 : i32
    scf.if %11 {
      %c0_10 = arith.constant 0 : index
      %c0_11 = arith.constant 0 : index
      %12 = vector.load %arg7[%c0_10, %c0_11] : memref<16x128xf32, #tpu.memory_space<vmem>>, vector<16x128xf32>
      %c0_12 = arith.constant 0 : index
      %c0_13 = arith.constant 0 : index
      %13 = vector.load %arg5[%c0_12, %c0_13] : memref<1x128xf32, #tpu.memory_space<vmem>>, vector<1x128xf32>
      %14 = vector.broadcast %13 : vector<1x128xf32> to vector<16x128xf32>
      %15 = arith.addf %12, %14 : vector<16x128xf32>
      %c0_14 = arith.constant 0 : index
      %c0_15 = arith.constant 0 : index
      %16 = vector.load %arg6[%c0_14, %c0_15] : memref<16x128xf32, #tpu.memory_space<vmem>>, vector<16x128xf32>
      tpu.vector_store %arg6[%c0_14, %c0_15], %15 {strides = array<i32>} : memref<16x128xf32, #tpu.memory_space<vmem>>, vector<16x128xf32>,
    } else {
    }
    return
  }
  func.func @transform_0(%arg0: i32, %arg1: i32, %arg2: i32) -> (i32, i32) {
    %c0_i32 = arith.constant 0 : i32
    return %arg0, %arg2 : i32, i32
  }
  func.func @transform_1(%arg0: i32, %arg1: i32, %arg2: i32) -> (i32, i32) {
    %c0_i32 = arith.constant 0 : i32
    return %arg2, %arg1 : i32, i32
  }
  func.func @transform_2(%arg0: i32, %arg1: i32, %arg2: i32) -> (i32, i32) {
    %c0_i32 = arith.constant 0 : i32
    %c0_i32_0 = arith.constant 0 : i32
    return %c0_i32, %arg1 : i32, i32
  }
  func.func @transform_3(%arg0: i32, %arg1: i32, %arg2: i32) -> (i32, i32) {
    %c0_i32 = arith.constant 0 : i32
    return %arg0, %arg1 : i32, i32
  }
}

module attributes {stable_mosaic.version = 11 : i64} {
  func.func @_dense_kernel(%arg0: i32, %arg1: i32, %arg2: i32, %arg3: memref<8x256xbf16, #tpu.memory_space<vmem>>, %arg4: memref<256x128xbf16, #tpu.memory_space<vmem>>, %arg5: memref<1x128xf32, #tpu.memory_space<vmem>>, %arg6: memref<8x128xbf16, #tpu.memory_space<vmem>>, %arg7: memref<8x128xf32, #tpu.memory_space<vmem>>) attributes {dimension_semantics = [#tpu.dimension_semantics<parallel>, #tpu.dimension_semantics<parallel>, #tpu.dimension_semantics<arbitrary>], iteration_bounds = array<i64: 1, 1, 1>, scalar_prefetch = 0 : i64, scratch_operands = 1 : i64, tpu.core_type = #tpu.core_type<tc>, window_params = [{transform_indices = @transform_0, window_bounds = array<i64: 8, 256>}, {transform_indices = @transform_1, window_bounds = array<i64: 256, 128>}, {transform_indices = @transform_2, window_bounds = array<i64: 1, 128>}, {transform_indices = @transform_3, window_bounds = array<i64: 8, 128>}]} {
    %c0_i32 = arith.constant 0 : i32
    %0 = arith.cmpi eq, %arg2, %c0_i32 : i32
    %1 = arith.extui %0 : i1 to i32
    %c0_i32_0 = arith.constant 0 : i32
    %2 = arith.cmpi ne, %1, %c0_i32_0 : i32
    scf.if %2 {
      %cst_10 = arith.constant 0.000000e+00 : f32
      %12 = vector.broadcast %cst_10 : f32 to vector<8x128xf32>
      %c0_11 = arith.constant 0 : index
      %c0_12 = arith.constant 0 : index
      %13 = vector.load %arg7[%c0_11, %c0_12] : memref<8x128xf32, #tpu.memory_space<vmem>>, vector<8x128xf32>
      tpu.vector_store %arg7[%c0_11, %c0_12], %12 {strides = array<i32>} : memref<8x128xf32, #tpu.memory_space<vmem>>, vector<8x128xf32>,
    } else {
    }
    %c0 = arith.constant 0 : index
    %c0_1 = arith.constant 0 : index
    %3 = vector.load %arg7[%c0, %c0_1] : memref<8x128xf32, #tpu.memory_space<vmem>>, vector<8x128xf32>
    %c0_2 = arith.constant 0 : index
    %c0_3 = arith.constant 0 : index
    %4 = vector.load %arg3[%c0_2, %c0_3] : memref<8x256xbf16, #tpu.memory_space<vmem>>, vector<8x256xbf16>
    %c0_4 = arith.constant 0 : index
    %c0_5 = arith.constant 0 : index
    %5 = vector.load %arg4[%c0_4, %c0_5] : memref<256x128xbf16, #tpu.memory_space<vmem>>, vector<256x128xbf16>
    %cst = arith.constant dense<0.000000e+00> : vector<8x128xf32>
    %6 = tpu.matmul %4, %5, %cst {dimension_numbers = #tpu.dot_dimension_numbers<[1], [0], [0], [1], [0, 0, 1, 1], [], []>} : vector<8x256xbf16>, vector<256x128xbf16>, vector<8x128xf32> -> vector<8x128xf32>
    %7 = arith.addf %3, %6 : vector<8x128xf32>
    %c0_6 = arith.constant 0 : index
    %c0_7 = arith.constant 0 : index
    %8 = vector.load %arg7[%c0_6, %c0_7] : memref<8x128xf32, #tpu.memory_space<vmem>>, vector<8x128xf32>
    tpu.vector_store %arg7[%c0_6, %c0_7], %7 {strides = array<i32>} : memref<8x128xf32, #tpu.memory_space<vmem>>, vector<8x128xf32>,
    %c0_i32_8 = arith.constant 0 : i32
    %9 = arith.cmpi eq, %arg2, %c0_i32_8 : i32
    %10 = arith.extui %9 : i1 to i32
    %c0_i32_9 = arith.constant 0 : i32
    %11 = arith.cmpi ne, %10, %c0_i32_9 : i32
    scf.if %11 {
      %c0_10 = arith.constant 0 : index
      %c0_11 = arith.constant 0 : index
      %12 = vector.load %arg7[%c0_10, %c0_11] : memref<8x128xf32, #tpu.memory_space<vmem>>, vector<8x128xf32>
      %c0_12 = arith.constant 0 : index
      %c0_13 = arith.constant 0 : index
      %13 = vector.load %arg5[%c0_12, %c0_13] : memref<1x128xf32, #tpu.memory_space<vmem>>, vector<1x128xf32>
      %14 = vector.broadcast %13 : vector<1x128xf32> to vector<8x128xf32>
      %15 = arith.addf %12, %14 : vector<8x128xf32>
      %cst_14 = arith.constant 0.000000e+00 : f32
      %16 = vector.broadcast %cst_14 : f32 to vector<8x128xf32>
      %17 = arith.maximumf %15, %16 : vector<8x128xf32>
      %18 = arith.truncf %17 : vector<8x128xf32> to vector<8x128xbf16>
      %c0_15 = arith.constant 0 : index
      %c0_16 = arith.constant 0 : index
      %19 = vector.load %arg6[%c0_15, %c0_16] : memref<8x128xbf16, #tpu.memory_space<vmem>>, vector<8x128xbf16>
      tpu.vector_store %arg6[%c0_15, %c0_16], %18 {strides = array<i32>} : memref<8x128xbf16, #tpu.memory_space<vmem>>, vector<8x128xbf16>,
    } else {
    }
    return
  }
  func.func @transform_0(%arg0: i32, %arg1: i32, %arg2: i32) -> (i32, i32) {
    %c0_i32 = arith.constant 0 : i32
    return %arg0, %arg2 : i32, i32
  }
  func.func @transform_1(%arg0: i32, %arg1: i32, %arg2: i32) -> (i32, i32) {
    %c0_i32 = arith.constant 0 : i32
    return %arg2, %arg1 : i32, i32
  }
  func.func @transform_2(%arg0: i32, %arg1: i32, %arg2: i32) -> (i32, i32) {
    %c0_i32 = arith.constant 0 : i32
    %c0_i32_0 = arith.constant 0 : i32
    return %c0_i32, %arg1 : i32, i32
  }
  func.func @transform_3(%arg0: i32, %arg1: i32, %arg2: i32) -> (i32, i32) {
    %c0_i32 = arith.constant 0 : i32
    return %arg0, %arg1 : i32, i32
  }
}

module attributes {stable_mosaic.version = 11 : i64} {
  func.func @_dense_kernel(%arg0: i32, %arg1: i32, %arg2: i32, %arg3: memref<8x128xbf16, #tpu.memory_space<vmem>>, %arg4: memref<128x128xbf16, #tpu.memory_space<vmem>>, %arg5: memref<1x128xf32, #tpu.memory_space<vmem>>, %arg6: memref<8x128xf32, #tpu.memory_space<vmem>>, %arg7: memref<8x128xf32, #tpu.memory_space<vmem>>) attributes {dimension_semantics = [#tpu.dimension_semantics<parallel>, #tpu.dimension_semantics<parallel>, #tpu.dimension_semantics<arbitrary>], iteration_bounds = array<i64: 1, 1, 1>, scalar_prefetch = 0 : i64, scratch_operands = 1 : i64, tpu.core_type = #tpu.core_type<tc>, window_params = [{transform_indices = @transform_0, window_bounds = array<i64: 8, 128>}, {transform_indices = @transform_1, window_bounds = array<i64: 128, 128>}, {transform_indices = @transform_2, window_bounds = array<i64: 1, 128>}, {transform_indices = @transform_3, window_bounds = array<i64: 8, 128>}]} {
    %c0_i32 = arith.constant 0 : i32
    %0 = arith.cmpi eq, %arg2, %c0_i32 : i32
    %1 = arith.extui %0 : i1 to i32
    %c0_i32_0 = arith.constant 0 : i32
    %2 = arith.cmpi ne, %1, %c0_i32_0 : i32
    scf.if %2 {
      %cst_10 = arith.constant 0.000000e+00 : f32
      %12 = vector.broadcast %cst_10 : f32 to vector<8x128xf32>
      %c0_11 = arith.constant 0 : index
      %c0_12 = arith.constant 0 : index
      %13 = vector.load %arg7[%c0_11, %c0_12] : memref<8x128xf32, #tpu.memory_space<vmem>>, vector<8x128xf32>
      tpu.vector_store %arg7[%c0_11, %c0_12], %12 {strides = array<i32>} : memref<8x128xf32, #tpu.memory_space<vmem>>, vector<8x128xf32>,
    } else {
    }
    %c0 = arith.constant 0 : index
    %c0_1 = arith.constant 0 : index
    %3 = vector.load %arg7[%c0, %c0_1] : memref<8x128xf32, #tpu.memory_space<vmem>>, vector<8x128xf32>
    %c0_2 = arith.constant 0 : index
    %c0_3 = arith.constant 0 : index
    %4 = vector.load %arg3[%c0_2, %c0_3] : memref<8x128xbf16, #tpu.memory_space<vmem>>, vector<8x128xbf16>
    %c0_4 = arith.constant 0 : index
    %c0_5 = arith.constant 0 : index
    %5 = vector.load %arg4[%c0_4, %c0_5] : memref<128x128xbf16, #tpu.memory_space<vmem>>, vector<128x128xbf16>
    %cst = arith.constant dense<0.000000e+00> : vector<8x128xf32>
    %6 = tpu.matmul %4, %5, %cst {dimension_numbers = #tpu.dot_dimension_numbers<[1], [0], [0], [1], [0, 0, 1, 1], [], []>} : vector<8x128xbf16>, vector<128x128xbf16>, vector<8x128xf32> -> vector<8x128xf32>
    %7 = arith.addf %3, %6 : vector<8x128xf32>
    %c0_6 = arith.constant 0 : index
    %c0_7 = arith.constant 0 : index
    %8 = vector.load %arg7[%c0_6, %c0_7] : memref<8x128xf32, #tpu.memory_space<vmem>>, vector<8x128xf32>
    tpu.vector_store %arg7[%c0_6, %c0_7], %7 {strides = array<i32>} : memref<8x128xf32, #tpu.memory_space<vmem>>, vector<8x128xf32>,
    %c0_i32_8 = arith.constant 0 : i32
    %9 = arith.cmpi eq, %arg2, %c0_i32_8 : i32
    %10 = arith.extui %9 : i1 to i32
    %c0_i32_9 = arith.constant 0 : i32
    %11 = arith.cmpi ne, %10, %c0_i32_9 : i32
    scf.if %11 {
      %c0_10 = arith.constant 0 : index
      %c0_11 = arith.constant 0 : index
      %12 = vector.load %arg7[%c0_10, %c0_11] : memref<8x128xf32, #tpu.memory_space<vmem>>, vector<8x128xf32>
      %c0_12 = arith.constant 0 : index
      %c0_13 = arith.constant 0 : index
      %13 = vector.load %arg5[%c0_12, %c0_13] : memref<1x128xf32, #tpu.memory_space<vmem>>, vector<1x128xf32>
      %14 = vector.broadcast %13 : vector<1x128xf32> to vector<8x128xf32>
      %15 = arith.addf %12, %14 : vector<8x128xf32>
      %cst_14 = arith.constant 0.000000e+00 : f32
      %16 = vector.broadcast %cst_14 : f32 to vector<8x128xf32>
      %17 = arith.maximumf %15, %16 : vector<8x128xf32>
      %c0_15 = arith.constant 0 : index
      %c0_16 = arith.constant 0 : index
      %18 = vector.load %arg6[%c0_15, %c0_16] : memref<8x128xf32, #tpu.memory_space<vmem>>, vector<8x128xf32>
      tpu.vector_store %arg6[%c0_15, %c0_16], %17 {strides = array<i32>} : memref<8x128xf32, #tpu.memory_space<vmem>>, vector<8x128xf32>,
    } else {
    }
    return
  }
  func.func @transform_0(%arg0: i32, %arg1: i32, %arg2: i32) -> (i32, i32) {
    %c0_i32 = arith.constant 0 : i32
    return %arg0, %arg2 : i32, i32
  }
  func.func @transform_1(%arg0: i32, %arg1: i32, %arg2: i32) -> (i32, i32) {
    %c0_i32 = arith.constant 0 : i32
    return %arg2, %arg1 : i32, i32
  }
  func.func @transform_2(%arg0: i32, %arg1: i32, %arg2: i32) -> (i32, i32) {
    %c0_i32 = arith.constant 0 : i32
    %c0_i32_0 = arith.constant 0 : i32
    return %c0_i32, %arg1 : i32, i32
  }
  func.func @transform_3(%arg0: i32, %arg1: i32, %arg2: i32) -> (i32, i32) {
    %c0_i32 = arith.constant 0 : i32
    return %arg0, %arg1 : i32, i32
  }
}

module attributes {stable_mosaic.version = 11 : i64} {
  func.func @_dense_kernel(%arg0: i32, %arg1: i32, %arg2: i32, %arg3: memref<8x128xbf16, #tpu.memory_space<vmem>>, %arg4: memref<128x128xbf16, #tpu.memory_space<vmem>>, %arg5: memref<1x128xf32, #tpu.memory_space<vmem>>, %arg6: memref<8x128xf32, #tpu.memory_space<vmem>>, %arg7: memref<8x128xf32, #tpu.memory_space<vmem>>) attributes {dimension_semantics = [#tpu.dimension_semantics<parallel>, #tpu.dimension_semantics<parallel>, #tpu.dimension_semantics<arbitrary>], iteration_bounds = array<i64: 1, 1, 1>, scalar_prefetch = 0 : i64, scratch_operands = 1 : i64, tpu.core_type = #tpu.core_type<tc>, window_params = [{transform_indices = @transform_0, window_bounds = array<i64: 8, 128>}, {transform_indices = @transform_1, window_bounds = array<i64: 128, 128>}, {transform_indices = @transform_2, window_bounds = array<i64: 1, 128>}, {transform_indices = @transform_3, window_bounds = array<i64: 8, 128>}]} {
    %c0_i32 = arith.constant 0 : i32
    %0 = arith.cmpi eq, %arg2, %c0_i32 : i32
    %1 = arith.extui %0 : i1 to i32
    %c0_i32_0 = arith.constant 0 : i32
    %2 = arith.cmpi ne, %1, %c0_i32_0 : i32
    scf.if %2 {
      %cst_10 = arith.constant 0.000000e+00 : f32
      %12 = vector.broadcast %cst_10 : f32 to vector<8x128xf32>
      %c0_11 = arith.constant 0 : index
      %c0_12 = arith.constant 0 : index
      %13 = vector.load %arg7[%c0_11, %c0_12] : memref<8x128xf32, #tpu.memory_space<vmem>>, vector<8x128xf32>
      tpu.vector_store %arg7[%c0_11, %c0_12], %12 {strides = array<i32>} : memref<8x128xf32, #tpu.memory_space<vmem>>, vector<8x128xf32>,
    } else {
    }
    %c0 = arith.constant 0 : index
    %c0_1 = arith.constant 0 : index
    %3 = vector.load %arg7[%c0, %c0_1] : memref<8x128xf32, #tpu.memory_space<vmem>>, vector<8x128xf32>
    %c0_2 = arith.constant 0 : index
    %c0_3 = arith.constant 0 : index
    %4 = vector.load %arg3[%c0_2, %c0_3] : memref<8x128xbf16, #tpu.memory_space<vmem>>, vector<8x128xbf16>
    %c0_4 = arith.constant 0 : index
    %c0_5 = arith.constant 0 : index
    %5 = vector.load %arg4[%c0_4, %c0_5] : memref<128x128xbf16, #tpu.memory_space<vmem>>, vector<128x128xbf16>
    %cst = arith.constant dense<0.000000e+00> : vector<8x128xf32>
    %6 = tpu.matmul %4, %5, %cst {dimension_numbers = #tpu.dot_dimension_numbers<[1], [0], [0], [1], [0, 0, 1, 1], [], []>} : vector<8x128xbf16>, vector<128x128xbf16>, vector<8x128xf32> -> vector<8x128xf32>
    %7 = arith.addf %3, %6 : vector<8x128xf32>
    %c0_6 = arith.constant 0 : index
    %c0_7 = arith.constant 0 : index
    %8 = vector.load %arg7[%c0_6, %c0_7] : memref<8x128xf32, #tpu.memory_space<vmem>>, vector<8x128xf32>
    tpu.vector_store %arg7[%c0_6, %c0_7], %7 {strides = array<i32>} : memref<8x128xf32, #tpu.memory_space<vmem>>, vector<8x128xf32>,
    %c0_i32_8 = arith.constant 0 : i32
    %9 = arith.cmpi eq, %arg2, %c0_i32_8 : i32
    %10 = arith.extui %9 : i1 to i32
    %c0_i32_9 = arith.constant 0 : i32
    %11 = arith.cmpi ne, %10, %c0_i32_9 : i32
    scf.if %11 {
      %c0_10 = arith.constant 0 : index
      %c0_11 = arith.constant 0 : index
      %12 = vector.load %arg7[%c0_10, %c0_11] : memref<8x128xf32, #tpu.memory_space<vmem>>, vector<8x128xf32>
      %c0_12 = arith.constant 0 : index
      %c0_13 = arith.constant 0 : index
      %13 = vector.load %arg5[%c0_12, %c0_13] : memref<1x128xf32, #tpu.memory_space<vmem>>, vector<1x128xf32>
      %14 = vector.broadcast %13 : vector<1x128xf32> to vector<8x128xf32>
      %15 = arith.addf %12, %14 : vector<8x128xf32>
      %c0_14 = arith.constant 0 : index
      %c0_15 = arith.constant 0 : index
      %16 = vector.load %arg6[%c0_14, %c0_15] : memref<8x128xf32, #tpu.memory_space<vmem>>, vector<8x128xf32>
      tpu.vector_store %arg6[%c0_14, %c0_15], %15 {strides = array<i32>} : memref<8x128xf32, #tpu.memory_space<vmem>>, vector<8x128xf32>,
    } else {
    }
    return
  }
  func.func @transform_0(%arg0: i32, %arg1: i32, %arg2: i32) -> (i32, i32) {
    %c0_i32 = arith.constant 0 : i32
    return %arg0, %arg2 : i32, i32
  }
  func.func @transform_1(%arg0: i32, %arg1: i32, %arg2: i32) -> (i32, i32) {
    %c0_i32 = arith.constant 0 : i32
    return %arg2, %arg1 : i32, i32
  }
  func.func @transform_2(%arg0: i32, %arg1: i32, %arg2: i32) -> (i32, i32) {
    %c0_i32 = arith.constant 0 : i32
    %c0_i32_0 = arith.constant 0 : i32
    return %c0_i32, %arg1 : i32, i32
  }
  func.func @transform_3(%arg0: i32, %arg1: i32, %arg2: i32) -> (i32, i32) {
    %c0_i32 = arith.constant 0 : i32
    return %arg0, %arg1 : i32, i32
  }
}

</mosaic_0001>

<bundles_post_ra>
// kernel: multimodal_forward.112
= control target key start
LH: loop header
LB: loop body
LE: loop exit
PB: predicated region body
PF: predicated region fallthrough
CT: control target
= control target key end

     0   :  { %s121_s0 = inlined_call_operand.vmem [shape: f32[16,128], index: 0, kind: input, shape index: {}]   ;;  %s122_s1 = inlined_call_operand.vmem [shape: f32[1,128], index: 1, kind: input, shape index: {}]   ;;  %s123_s2 = inlined_call_operand.vmem [shape: f32[1,128], index: 2, kind: input, shape index: {}]   ;;  %s124_s3 = inlined_call_operand.vmem [shape: bf16[16,128], index: 3, kind: output, shape index: {}]  }
   0x1   :  { %v14_v0 = vld [vmem:[%s121_s0] sm:$0xff]  ;;  %v15_v1 = vld [vmem:[%s121_s0 + $0x8] sm:$0xff] }
   0x2   :  { %18 = vadd.xlane.f32.xlu0 %v14_v0  ;;  %v71_v18 = vld [vmem:[%s122_s1] ss:$0 sm:$0xff] }
   0x3   :  { %v72_v22 = vld [vmem:[%s123_s2] ss:$0 sm:$0xff] }
   0x6   :  { %20 = vadd.xlane.f32.xlu0 %v15_v1 }
  0x8f   :  { %v19_v2 = vpop.xlane.xlu0 %18 }
  0x90   :  { %v23_v3 = vmul.f32 0.0078125, %v19_v2 }
  0x92   :  { %v25_v4 = vsub.f32 %v14_v0, %v23_v3 }
  0x93   :  { %v21_v5 = vpop.xlane.xlu0 %20 }
  0x94   :  { %v24_v6 = vmul.f32 0.0078125, %v21_v5  ;;  %v27_v7 = vmul.f32 %v25_v4, %v25_v4 }
  0x96   :  { %v26_v8 = vsub.f32 %v15_v1, %v24_v6  ;;  %29 = vadd.xlane.f32.xlu1 %v27_v7 }
  0x98   :  { %v28_v9 = vmul.f32 %v26_v8, %v26_v8 }
  0x9a   :  { %31 = vadd.xlane.f32.xlu1 %v28_v9 }
 0x123   :  { %v30_v10 = vpop.xlane.xlu1 %29 }
 0x124   :  { %v33_v11 = vmul.f32 0.0078125, %v30_v10 }
 0x126   :  { %v35_v12 = vadd.f32 1e-12, %v33_v11 }
 0x127   :  { %v32_v13 = vpop.xlane.xlu1 %31 }
 0x128   :  { %82 = vrsqrt.f32 %v35_v12  ;;  %v34_v14 = vmul.f32 0.0078125, %v32_v13 }
 0x12a   :  { %v36_v15 = vadd.f32 1e-12, %v34_v14 }
 0x12c   :  { %84 = vrsqrt.f32 %v36_v15 }
 0x132   :  { %v83_v16 = vpop.eup %82 }
 0x133   :  { %v39_v17 = vmul.f32 %v83_v16, %v25_v4 }
 0x135   :  { %v47_v20 = vmul.f32 %v71_v18, %v39_v17 }
 0x136   :  { %v85_v19 = vpop.eup %84 }
 0x137   :  { %v40_v21 = vmul.f32 %v85_v19, %v26_v8  ;;  %v55_v24 = vadd.f32 %v72_v22, %v47_v20 }
 0x139   :  { %v48_v23 = vmul.f32 %v71_v18, %v40_v21 }
 0x13b   :  { %v56_v25 = vadd.f32 %v72_v22, %v48_v23 }
 0x13d   :  { %v80_v26 = vpack.c.bf16 %v56_v25, %v55_v24 }
 0x13f   :  { %81 = vst [vmem:[%s124_s3] sm:$0xff] %v80_v26  }

// kernel: multimodal_forward.113
= control target key start
LH: loop header
LB: loop body
LE: loop exit
PB: predicated region body
PF: predicated region fallthrough
CT: control target
= control target key end

     0   :  { %v453_v0 = vmov 0.0   ;;  %vm454_vm0 = vmmov 0   ;;  %v455_v3 = vmov 0   ;;  %v306_v27 = vlaneseq  ;;  %s566_s1 = inlined_call_operand.vmem [shape: bf16[128,384], index: 1, kind: input, shape index: {}]   ;;  %s567_s0 = inlined_call_operand.vmem [shape: bf16[16,128], index: 0, kind: input, shape index: {}]   ;;  %s568_s2 = inlined_call_operand.vmem [shape: f32[1,384], index: 2, kind: input, shape index: {}]   ;;  %s569_s3 = inlined_call_operand.vmem [shape: bf16[16,384], index: 3, kind: output, shape index: {}]  }
   0x1   :  { %397 = vmatprep.subr.bf16.mxu1 %v453_v0  ;;  %v420_v1 = vld [vmem:[%s566_s1 + $0x4] ss:$12 sps:$4 sm:$0xff]   ;;  %413 = vmatprep.mubr.msk.bf16.mxu1 %vm454_vm0, %v453_v0  ;;  %v422_v2 = vld [vmem:[%s566_s1 + $0x8] ss:$12 sps:$4 sm:$0xff]   ;;  %v423_v4 = vld [vmem:[%s566_s1] ss:$12 sps:$4 sm:$0xff]  }
   0x2   :  { %231 = vmatprep.mubr.bf16.mxu0 %v455_v3  ;;  %199 = vmatprep.subr.bf16.mxu0 %v420_v1  ;;  %v424_v5 = vld [vmem:[%s566_s1 + $0x1c] ss:$12 sps:$4 sm:$0xff]   ;;  %v426_v6 = vld [vmem:[%s566_s1 + $0x20] ss:$12 sps:$4 sm:$0xff]   ;;  %v427_v7 = vld [vmem:[%s566_s1 + $0x18] ss:$12 sps:$4 sm:$0xff]  }
   0x3   :  { %398 = vmatpush3.bf16.msra.mxu1 %v422_v2  ;;  %200 = vmatpush1.bf16.msra.mxu0 %v423_v4  ;;  %v428_v8 = vld [vmem:[%s566_s1 + $0x34] ss:$12 sps:$4 sm:$0xff]   ;;  %v430_v9 = vld [vmem:[%s566_s1 + $0x38] ss:$12 sps:$4 sm:$0xff]   ;;  %v431_v10 = vld [vmem:[%s566_s1 + $0x30] ss:$12 sps:$4 sm:$0xff]  }
   0x4   :  { %399 = vmatprep.subr.bf16.mxu1 %v453_v0  ;;  %201 = vmatprep.subr.bf16.mxu0 %v424_v5  ;;  %v432_v11 = vld [vmem:[%s566_s1 + $0x4c] ss:$12 sps:$4 sm:$0xff]   ;;  %v434_v12 = vld [vmem:[%s566_s1 + $0x50] ss:$12 sps:$4 sm:$0xff]   ;;  %v435_v13 = vld [vmem:[%s566_s1 + $0x48] ss:$12 sps:$4 sm:$0xff]  }
   0x5   :  { %v436_v14 = vld [vmem:[%s566_s1 + $0x64] ss:$12 sps:$4 sm:$0xff]   ;;  %v438_v15 = vld [vmem:[%s566_s1 + $0x68] ss:$12 sps:$4 sm:$0xff]   ;;  %v439_v16 = vld [vmem:[%s566_s1 + $0x60] ss:$12 sps:$4 sm:$0xff]  }
   0x6   :  { %v440_v17 = vld [vmem:[%s566_s1 + $0x7c] ss:$12 sps:$4 sm:$0xff]   ;;  %v442_v18 = vld [vmem:[%s566_s1 + $0x80] ss:$12 sps:$4 sm:$0xff]   ;;  %v443_v19 = vld [vmem:[%s566_s1 + $0x78] ss:$12 sps:$4 sm:$0xff]  }
   0x7   :  { %400 = vmatpush3.bf16.msra.mxu1 %v426_v6  ;;  %202 = vmatpush1.bf16.msra.mxu0 %v427_v7  ;;  %v444_v20 = vld [vmem:[%s566_s1 + $0x94] ss:$12 sps:$4 sm:$0xff]   ;;  %v446_v21 = vld [vmem:[%s566_s1 + $0x98] ss:$12 sps:$4 sm:$0xff]   ;;  %v447_v22 = vld [vmem:[%s566_s1 + $0x90] ss:$12 sps:$4 sm:$0xff]  }
   0x8   :  { %401 = vmatprep.subr.bf16.mxu1 %v453_v0  ;;  %203 = vmatprep.subr.bf16.mxu0 %v428_v8  ;;  %v448_v23 = vld [vmem:[%s566_s1 + $0xac] ss:$12 sps:$4 sm:$0xff]   ;;  %v450_v24 = vld [vmem:[%s566_s1 + $0xb0] ss:$12 sps:$4 sm:$0xff]   ;;  %v451_v25 = vld [vmem:[%s566_s1 + $0xa8] ss:$12 sps:$4 sm:$0xff]  }
   0x9   :  { %v452_v26 = vld [vmem:[%s567_s0] sm:$0xff]   ;;  %v307_v28 = vshrl.u32 %v306_v27, 7 }
   0xa   :  { %v304_v30 = vld [vmem:[%s568_s2] sm:$0x7] }
   0xb   :  { %402 = vmatpush3.bf16.msra.mxu1 %v430_v9  ;;  %204 = vmatpush1.bf16.msra.mxu0 %v431_v10  ;;  %v316_v29 = vsub.s32 2, %v307_v28  ;;  %v308_v31 = vsub.s32 0, %v307_v28  ;;  %v312_v32 = vsub.s32 1, %v307_v28 }
   0xc   :  { %403 = vmatprep.subr.bf16.mxu1 %v453_v0  ;;  %205 = vmatprep.subr.bf16.mxu0 %v432_v11 }
   0xd   :  { %v317_v33 = vrot.slane %v304_v30, %v316_v29  ;;  %v309_v34 = vrot.slane %v304_v30, %v308_v31  ;;  %v313_v35 = vrot.slane %v304_v30, %v312_v32 }
   0xf   :  { %404 = vmatpush3.bf16.msra.mxu1 %v434_v12  ;;  %206 = vmatpush1.bf16.msra.mxu0 %v435_v13 }
  0x10   :  { %405 = vmatprep.subr.bf16.mxu1 %v453_v0  ;;  %207 = vmatprep.subr.bf16.mxu0 %v436_v14 }
  0x13   :  { %406 = vmatpush3.bf16.msra.mxu1 %v438_v15  ;;  %208 = vmatpush1.bf16.msra.mxu0 %v439_v16 }
  0x14   :  { %407 = vmatprep.subr.bf16.mxu1 %v453_v0  ;;  %209 = vmatprep.subr.bf16.mxu0 %v440_v17 }
  0x17   :  { %408 = vmatpush3.bf16.msra.mxu1 %v442_v18  ;;  %210 = vmatpush1.bf16.msra.mxu0 %v443_v19 }
  0x18   :  { %409 = vmatprep.subr.bf16.mxu1 %v453_v0  ;;  %211 = vmatprep.subr.bf16.mxu0 %v444_v20 }
  0x1b   :  { %410 = vmatpush3.bf16.msra.mxu1 %v446_v21  ;;  %212 = vmatpush1.bf16.msra.mxu0 %v447_v22 }
  0x1c   :  { %411 = vmatprep.subr.bf16.mxu1 %v453_v0  ;;  %213 = vmatprep.subr.bf16.mxu0 %v448_v23 }
  0x1f   :  { %412 = vmatpush3.bf16.msra.mxu1 %v450_v24  ;;  %214 = vmatpush1.bf16.msra.mxu0 %v451_v25 }
  0x22   :  { %414 = vmatmul.mubr.bf16.vlgmr.msra.gmra.mrb[0].mxu1 %v452_v26  ;;  %232 = vmatmul.mubr.bf16.vlgmr.msra.gmra.mrb[0].mxu0 %v452_v26 }
  0xf5   :  { %v276_v36 = vpop.f32.mrb[0].mxu1  ;;  %v233_v38 = vpop.f32.mrb[0].mxu0 }
  0xf6   :  { %v323_v37 = vadd.f32 %v317_v33, %v276_v36  ;;  %v415_v39 = vpop.f32.mrb[1].mxu1  ;;  %v321_v40 = vadd.f32 %v309_v34, %v233_v38  ;;  %v235_v41 = vpop.f32.mrb[1].mxu0 }
  0xf7   :  { %v279_v42 = vpop.f32.mrb[2].mxu1  ;;  %v322_v44 = vadd.f32 %v313_v35, %v235_v41  ;;  %v237_v46 = vpop.f32.mrb[2].mxu0 }
  0xf8   :  { %v385_v43 = vpack.c.bf16 %v323_v37, %v323_v37  ;;  %v326_v45 = vadd.f32 %v317_v33, %v279_v42  ;;  %v416_v47 = vpop.f32.mrb[3].mxu1  ;;  %v324_v48 = vadd.f32 %v309_v34, %v237_v46  ;;  %v239_v49 = vpop.f32.mrb[3].mxu0 }
  0xf9   :  { %v384_v50 = vpack.c.bf16 %v322_v44, %v321_v40  ;;  %v325_v52 = vadd.f32 %v313_v35, %v239_v49 }
  0xfa   :  { %348 = vst [vmem:[%s569_s3 + $0x8] sm:$0xf] %v385_v43  ;;  %v387_v51 = vpack.c.bf16 %v326_v45, %v326_v45 }
  0xfb   :  { %347 = vst [vmem:[%s569_s3] sm:$0xff] %v384_v50  ;;  %v386_v53 = vpack.c.bf16 %v325_v52, %v324_v48 }
  0xfc   :  { %350 = vst [vmem:[%s569_s3 + $0x14] sm:$0xf] %v387_v51 }
  0xfd   :  { %349 = vst [vmem:[%s569_s3 + $0xc] sm:$0xff] %v386_v53 }

// kernel: multimodal_forward.114
= control target key start
LH: loop header
LB: loop body
LE: loop exit
PB: predicated region body
PF: predicated region fallthrough
CT: control target
= control target key end

     0   :  { %s569_s9 = smov 0   ;;  %s627_s0 = inlined_call_operand.vmem [shape: bf16[2,8,384], index: 0, kind: input, shape index: {}]   ;;  %s628_s1 = inlined_call_operand.vmem [shape: f32[2,1,8], index: 1, kind: input, shape index: {}]   ;;  %s629_s2 = inlined_call_operand.vmem [shape: bf16[2,8,128], index: 2, kind: output, shape index: {}]  }
   0x1 LB: > { %s472_s10 = sadd.s32 4294967295, %s548_s9   ;;  %p476_p0 = scmp.ge.s32.totalorder %s548_s9, 1  ;;  %s548_s9 = sphi %s569_s9, %s12_s9  }
   0x2   : > { %p120_p1 = scmp.lt.s32.totalorder %s548_s9, 3 }
   0x4   : > { %p121_p2 = pnand %p476_p0, %p120_p1 }
   0x5   : > { %p144_p3 = scmp.lt.s32.totalorder (!%p121_p2), %s472_s10, 1  ;;  %v550_v0 = vmov (!%p121_p2), 0.0   ;;  %vm551_vm0 = vmmov (!%p121_p2), 0   ;;  %vm180_vm1 = vcmask (!%p121_p2), 523264   ;;  %v162_v7 = vlaneseq (!%p121_p2)  ;;  %s553_s18 = smov (!%p121_p2), 64  }
   0x6   : > { %124 = sbr.rel (%p121_p2) target bundleno = 1431 (0x597), region = 28  ;;  %495 = vmatprep.subr.bf16.mxu0 (!%p121_p2), %v550_v0  ;;  %497 = vmatprep.mubr.msk.bf16.mxu0 (!%p121_p2), %vm551_vm0, %v550_v0  ;;  %v552_v16 = vmov (!%p121_p2), -1e+09   ;;  %vm228_vm3 = vcmask (!%p121_p2), 64512   ;;  %vm244_vm4 = vcmask (!%p121_p2), 1043456  }
   0x7   : > { %501 = vmatprep.subr.bf16.mxu1 (!%p121_p2), %v550_v0  ;;  %503 = vmatprep.mubr.msk.bf16.mxu1 (!%p121_p2), %vm551_vm0, %v550_v0  ;;  %v163_v10 = vshrl.u32 (!%p121_p2), %v162_v7, 7  ;;  %v165_v13 = vand.u32 (!%p121_p2), 127, %v162_v7 }
   0x9   : > { %v174_v12 = vsub.s32 (!%p121_p2), 0, %v163_v10  ;;  %vm166_vm2 = vcmp.le.s32.totalorder (!%p121_p2), %v165_v13, %v163_v10 }
   0xa   : > { %v167_v17 = vsel (!%p121_p2), %vm166_vm2, 0.0, %v552_v16 }
   0xd   : > { %s631_s10 = smov (!%p144_p3, %s472_s10), 1 }
   0xe   : > { %s519_s11 = smul.u32 12, %s631_s10  ;;  %s151_s17 = scalar_lea.vmem %s628_s1, %s631_s10 }
   0xf   : > { %v159_v8 = vld [vmem:[%s151_s17] sm:$0x1]  ;;  %s478_s19 = sshll.u32 %s631_s10, 2 }
  0x10   : > { %s589_s14 = scalar_lea.vmem %s627_s0, %s519_s11  ;;  %v160_v9 = vsub.f32 1.0, %v159_v8  ;;  %s155_s22 = scalar_lea.vmem %s629_s2, %s478_s19 }
  0x11   : > { %v157_v1 = vld [vmem:[%s589_s14] sm:$0xff]  ;;  %v158_v29 = vld [vmem:[%s589_s14 + $0x8] sm:$0xf] }
  0x12   : > { %v168_v2 = vunpack.c.l.bf16 %v157_v1  ;;  %v479_v3 = vcombine.high %v157_v1, %v157_v1  ;;  %v161_v11 = vmul.f32 -1e+09, %v160_v9  ;;  %v246_v30 = vsel %vm244_vm4, %v158_v29, 0 }
  0x13   : > { %502 = vmatpush3.bf16.msra.mxu1 %v246_v30  ;;  %v483_v49 = vcombine.low %v158_v29, %v158_v29 }
  0x14   : > { %v169_v4 = vmul.f32 0.125, %v168_v2  ;;  %v185_v5 = vsel %vm180_vm1, %v479_v3, 0  ;;  %v175_v14 = vrot.slane %v161_v11, %v174_v12  ;;  %291 = vrot.lane.b32.xlu1 %v479_v3, %s553_s18  ;;  %507 = vmatprep.subr.bf16.mxu1 %v550_v0 }
  0x15   : > { %496 = vmatpush3.bf16.xpose.msra.mxu0 %v185_v5 }
  0x16   : > { %513 = vmatprep.subr.bf16.mxu0 %v550_v0  ;;  %v170_v6 = vpack.c.bf16 %v169_v4, %v169_v4 }
  0x18   : > { %289 = vrot.lane.b32.xlu1 %v170_v6, %s553_s18 }
  0x1c   : > { %498 = vmatmul.mubr.msk.bf16.vlgmr.msra.gmra.mrb[0].mxu0 %vm180_vm1, %v170_v6 }
  0x1d   : > { %515 = vmatprep.mubr.msk.bf16.mxu0 %vm551_vm0, %v550_v0 }
  0x86   : > { %v292_v33 = vpop.permute.xlu1 %291 }
  0x87   : > { %v297_v35 = vsel %vm180_vm1, %v292_v33, 0 }
  0x8a   : > { %v290_v37 = vpop.permute.xlu1 %289 }
  0xef   : > { %v221_v15 = vpop.f32.mrb[0].mxu0 }
  0xf0   : > { %v222_v18 = vadd.f32 %v221_v15, %v175_v14  ;;  %v499_v19 = vpop.f32.mrb[1].mxu0 }
  0xf1   : > { %v224_v20 = vpop.f32.mrb[2].mxu0 }
  0xf2   : > { %v500_v21 = vpop.f32.mrb[3].mxu0  ;;  %v227_v22 = vadd.f32 %v222_v18, %v167_v17 }
  0xf4   : > { %v229_v23 = vsel %vm228_vm3, %v227_v22, -inf }
  0xf5   : > { %230 = vmax.xlane.f32.xlu0 %v229_v23 }
 0x182   : > { %v231_v24 = vpop.xlane.xlu0 %230 }
 0x183   : > { %v232_v25 = vsub.f32 %v227_v22, %v231_v24 }
 0x185   : > { %v233_v26 = vmul.f32 1.442695, %v232_v25 }
 0x187   : > { %534 = vpow2.f32 %v233_v26 }
 0x191   : > { %v535_v27 = vpop.eup %534 }
 0x192   : > { %v235_v28 = vsel %vm228_vm3, %v535_v27, 0.0 }
 0x193   : > { %236 = vadd.xlane.f32.xlu0 %v235_v28 }
 0x220   : > { %v237_v31 = vpop.xlane.xlu0 %236 }
 0x221   : > { %536 = vrcp.f32 %v237_v31 }
 0x22b   : > { %v537_v32 = vpop.eup %536 }
 0x22c   : > { %v239_v34 = vmul.f32 %v537_v32, %v535_v27 }
 0x22e   : > { %v240_v36 = vpack.c.bf16 %v239_v34, %v239_v34 }
 0x230   : > { %504 = vmatmul.mubr.msk.bf16.vlgmr.msra.gmra.mrb[0].mxu1 %vm228_vm3, %v240_v36 }
 0x231   : > { %508 = vmatpush3.bf16.xpose.msra.mxu1 %v297_v35  ;;  %509 = vmatprep.mubr.msk.bf16.mxu1 %vm551_vm0, %v550_v0 }
 0x238   : > { %510 = vmatmul.mubr.msk.bf16.vlgmr.msra.gmra.mrb[4].mxu1 %vm180_vm1, %v290_v37 }
 0x303   : > { %v282_v38 = vpop.f32.mrb[0].mxu1 }
 0x304   : > { %v505_v39 = vpop.f32.mrb[1].mxu1 }
 0x305   : > { %v285_v40 = vpop.f32.mrb[2].mxu1 }
 0x306   : > { %v506_v41 = vpop.f32.mrb[3].mxu1 }
 0x30b   : > { %v333_v42 = vpop.f32.mrb[4].mxu1 }
 0x30c   : > { %v334_v43 = vadd.f32 %v333_v42, %v175_v14  ;;  %v511_v44 = vpop.f32.mrb[5].mxu1 }
 0x30d   : > { %v336_v45 = vpop.f32.mrb[6].mxu1 }
 0x30e   : > { %v512_v46 = vpop.f32.mrb[7].mxu1  ;;  %v339_v47 = vadd.f32 %v334_v43, %v167_v17 }
 0x310   : > { %v340_v48 = vsel %vm228_vm3, %v339_v47, -inf }
 0x311   : > { %341 = vmax.xlane.f32.xlu0 %v340_v48 }
 0x327   : > { %355 = vrot.lane.b32.xlu0 %v483_v49, %s553_s18 }
 0x39e   : > { %v342_v50 = vpop.xlane.xlu0 %341 }
 0x39f   : > { %v343_v51 = vsub.f32 %v339_v47, %v342_v50 }
 0x3a1   : > { %v344_v52 = vmul.f32 1.442695, %v343_v51 }
 0x3a2   : > { %v356_v55 = vpop.permute.xlu0 %355 }
 0x3a3   : > { %538 = vpow2.f32 %v344_v52  ;;  %v361_v56 = vsel %vm244_vm4, %v356_v55, 0 }
 0x3a4   : > { %514 = vmatpush3.bf16.msra.mxu0 %v361_v56 }
 0x3ad   : > { %v539_v53 = vpop.eup %538 }
 0x3ae   : > { %v346_v54 = vsel %vm228_vm3, %v539_v53, 0.0 }
 0x3af   : > { %347 = vadd.xlane.f32.xlu1 %v346_v54 }
 0x43c   : > { %v348_v57 = vpop.xlane.xlu1 %347 }
 0x43d   : > { %540 = vrcp.f32 %v348_v57 }
 0x447   : > { %v541_v58 = vpop.eup %540 }
 0x448   : > { %v350_v59 = vmul.f32 %v541_v58, %v539_v53 }
 0x44a   : > { %v351_v60 = vpack.c.bf16 %v350_v59, %v350_v59 }
 0x44c   : > { %516 = vmatmul.mubr.msk.bf16.vlgmr.msra.gmra.mrb[4].mxu0 %vm228_vm3, %v351_v60 }
 0x51f   : > { %v397_v61 = vpop.f32.mrb[4].mxu0 }
 0x520   : > { %404 = vrot.lane.b32.xlu0 %v397_v61, %s553_s18  ;;  %v517_v62 = vpop.f32.mrb[5].mxu0 }
 0x521   : > { %v400_v63 = vpop.f32.mrb[6].mxu0 }
 0x522   : > { %v518_v0 = vpop.f32.mrb[7].mxu0 }
 0x592   : > { %v405_v1 = vpop.permute.xlu0 %404 }
 0x593   : > { %v407_v2 = vsel %vm180_vm1, %v282_v38, %v405_v1 }
 0x594   : > { %v408_v3 = vpack.c.bf16 %v407_v2, %v407_v2 }
 0x596   : > { %409 = vst [vmem:[%s155_s22] sm:$0xf] %v408_v3 }
 0x597 PF: > { %s12_s9 = sadd.s32 1, %s548_s9  }
 0x598   : > { %p9_p4 = scmp.ge.s32.totalorder %s12_s9, 4  }
 0x59a   :  { %11 = sbr.rel (!%p9_p4) target bundleno = 1 (0x1), region = 61 }

// kernel: multimodal_forward.115
= control target key start
LH: loop header
LB: loop body
LE: loop exit
PB: predicated region body
PF: predicated region fallthrough
CT: control target
= control target key end

     0   :  { %v293_v0 = vmov 0.0   ;;  %vm294_vm0 = vmmov 0   ;;  %s372_s1 = inlined_call_operand.vmem [shape: bf16[128,128], index: 1, kind: input, shape index: {}]   ;;  %s373_s0 = inlined_call_operand.vmem [shape: bf16[16,128], index: 0, kind: input, shape index: {}]   ;;  %s374_s3 = inlined_call_operand.vmem [shape: bf16[16,128], index: 3, kind: input, shape index: {}]   ;;  %s375_s2 = inlined_call_operand.vmem [shape: f32[1,128], index: 2, kind: input, shape index: {}]   ;;  %s376_s4 = inlined_call_operand.vmem [shape: f32[1,128], index: 4, kind: input, shape index: {}]   ;;  %s377_s5 = inlined_call_operand.vmem [shape: f32[1,128], index: 5, kind: input, shape index: {}]   ;;  %s378_s6 = inlined_call_operand.vmem [shape: bf16[16,128], index: 6, kind: output, shape index: {}]  }
   0x1   :  { %258 = vmatprep.subr.bf16.mxu0 %v293_v0  ;;  %v280_v1 = vld [vmem:[%s372_s1] sm:$0xff]   ;;  %274 = vmatprep.mubr.msk.bf16.mxu0 %vm294_vm0, %v293_v0  ;;  %v281_v2 = vld [vmem:[%s372_s1 + $0x8] sm:$0xff]   ;;  %v282_v3 = vld [vmem:[%s372_s1 + $0x10] sm:$0xff]  }
   0x2   :  { %259 = vmatpush3.bf16.msra.mxu0 %v280_v1  ;;  %v283_v4 = vld [vmem:[%s372_s1 + $0x18] sm:$0xff]   ;;  %v284_v5 = vld [vmem:[%s372_s1 + $0x20] sm:$0xff]   ;;  %v285_v6 = vld [vmem:[%s372_s1 + $0x28] sm:$0xff]  }
   0x3   :  { %260 = vmatprep.subr.bf16.mxu0 %v293_v0  ;;  %v286_v7 = vld [vmem:[%s372_s1 + $0x30] sm:$0xff]   ;;  %v287_v8 = vld [vmem:[%s372_s1 + $0x38] sm:$0xff]   ;;  %v288_v9 = vld [vmem:[%s373_s0] sm:$0xff]  }
   0x4   :  { %v241_v10 = vld [vmem:[%s374_s3] sm:$0xff]  }
   0x5   :  { %v233_v11 = vld [vmem:[%s375_s2] ss:$0 sm:$0xff]  ;;  %v242_v12 = vunpack.c.l.bf16 %v241_v10  ;;  %v243_v20 = vunpack.c.h.bf16 %v241_v10 }
   0x6   :  { %261 = vmatpush3.bf16.msra.mxu0 %v281_v2  ;;  %v234_v38 = vld [vmem:[%s376_s4] ss:$0 sm:$0xff] }
   0x7   :  { %262 = vmatprep.subr.bf16.mxu0 %v293_v0  ;;  %v235_v42 = vld [vmem:[%s377_s5] ss:$0 sm:$0xff] }
   0xa   :  { %263 = vmatpush3.bf16.msra.mxu0 %v282_v3 }
   0xb   :  { %264 = vmatprep.subr.bf16.mxu0 %v293_v0 }
   0xe   :  { %265 = vmatpush3.bf16.msra.mxu0 %v283_v4 }
   0xf   :  { %266 = vmatprep.subr.bf16.mxu0 %v293_v0 }
  0x12   :  { %267 = vmatpush3.bf16.msra.mxu0 %v284_v5 }
  0x13   :  { %268 = vmatprep.subr.bf16.mxu0 %v293_v0 }
  0x16   :  { %269 = vmatpush3.bf16.msra.mxu0 %v285_v6 }
  0x17   :  { %270 = vmatprep.subr.bf16.mxu0 %v293_v0 }
  0x1a   :  { %271 = vmatpush3.bf16.msra.mxu0 %v286_v7 }
  0x1b   :  { %272 = vmatprep.subr.bf16.mxu0 %v293_v0 }
  0x1e   :  { %273 = vmatpush3.bf16.msra.mxu0 %v287_v8 }
  0x21   :  { %275 = vmatmul.mubr.bf16.vlgmr.msra.gmra.mrb[0].mxu0 %v288_v9 }
  0xf4   :  { %v138_v13 = vpop.f32.mrb[0].mxu0 }
  0xf5   :  { %v161_v14 = vadd.f32 %v233_v11, %v138_v13  ;;  %v276_v15 = vpop.f32.mrb[1].mxu0 }
  0xf6   :  { %v141_v16 = vpop.f32.mrb[2].mxu0 }
  0xf7   :  { %v162_v17 = vadd.f32 %v233_v11, %v141_v16  ;;  %v277_v18 = vpop.f32.mrb[3].mxu0  ;;  %v167_v19 = vadd.f32 %v242_v12, %v161_v14 }
  0xf9   :  { %171 = vadd.xlane.f32.xlu0 %v167_v19  ;;  %v168_v21 = vadd.f32 %v243_v20, %v162_v17 }
  0xfd   :  { %173 = vadd.xlane.f32.xlu0 %v168_v21 }
 0x186   :  { %v172_v22 = vpop.xlane.xlu0 %171 }
 0x187   :  { %v176_v23 = vmul.f32 0.0078125, %v172_v22 }
 0x189   :  { %v178_v24 = vsub.f32 %v167_v19, %v176_v23 }
 0x18a   :  { %v174_v25 = vpop.xlane.xlu0 %173 }
 0x18b   :  { %v177_v26 = vmul.f32 0.0078125, %v174_v25  ;;  %v180_v27 = vmul.f32 %v178_v24, %v178_v24 }
 0x18d   :  { %v179_v28 = vsub.f32 %v168_v21, %v177_v26  ;;  %182 = vadd.xlane.f32.xlu1 %v180_v27 }
 0x18f   :  { %v181_v29 = vmul.f32 %v179_v28, %v179_v28 }
 0x191   :  { %184 = vadd.xlane.f32.xlu1 %v181_v29 }
 0x21a   :  { %v183_v30 = vpop.xlane.xlu1 %182 }
 0x21b   :  { %v186_v31 = vmul.f32 0.0078125, %v183_v30 }
 0x21d   :  { %v188_v32 = vadd.f32 1e-12, %v186_v31 }
 0x21e   :  { %v185_v33 = vpop.xlane.xlu1 %184 }
 0x21f   :  { %289 = vrsqrt.f32 %v188_v32  ;;  %v187_v34 = vmul.f32 0.0078125, %v185_v33 }
 0x221   :  { %v189_v35 = vadd.f32 1e-12, %v187_v34 }
 0x223   :  { %291 = vrsqrt.f32 %v189_v35 }
 0x229   :  { %v290_v36 = vpop.eup %289 }
 0x22a   :  { %v192_v37 = vmul.f32 %v290_v36, %v178_v24 }
 0x22c   :  { %v200_v40 = vmul.f32 %v234_v38, %v192_v37 }
 0x22d   :  { %v292_v39 = vpop.eup %291 }
 0x22e   :  { %v193_v41 = vmul.f32 %v292_v39, %v179_v28  ;;  %v208_v44 = vadd.f32 %v235_v42, %v200_v40 }
 0x230   :  { %v201_v43 = vmul.f32 %v234_v38, %v193_v41 }
 0x232   :  { %v209_v45 = vadd.f32 %v235_v42, %v201_v43 }
 0x234   :  { %v247_v46 = vpack.c.bf16 %v209_v45, %v208_v44 }
 0x236   :  { %248 = vst [vmem:[%s378_s6] sm:$0xff] %v247_v46  }

// kernel: multimodal_forward.116
= control target key start
LH: loop header
LB: loop body
LE: loop exit
PB: predicated region body
PF: predicated region fallthrough
CT: control target
= control target key end

     0   :  { %v227_v0 = vmov 0.0   ;;  %vm228_vm0 = vmmov 0   ;;  %s282_s1 = inlined_call_operand.vmem [shape: bf16[128,128], index: 1, kind: input, shape index: {}]   ;;  %s283_s0 = inlined_call_operand.vmem [shape: bf16[16,128], index: 0, kind: input, shape index: {}]   ;;  %s284_s2 = inlined_call_operand.vmem [shape: f32[1,128], index: 2, kind: input, shape index: {}]   ;;  %s285_s3 = inlined_call_operand.vmem [shape: bf16[16,128], index: 3, kind: output, shape index: {}]  }
   0x1   :  { %196 = vmatprep.subr.bf16.mxu0 %v227_v0  ;;  %v218_v1 = vld [vmem:[%s282_s1] sm:$0xff]   ;;  %212 = vmatprep.mubr.msk.bf16.mxu0 %vm228_vm0, %v227_v0  ;;  %v219_v2 = vld [vmem:[%s282_s1 + $0x8] sm:$0xff]   ;;  %v220_v3 = vld [vmem:[%s282_s1 + $0x10] sm:$0xff]  }
   0x2   :  { %197 = vmatpush3.bf16.msra.mxu0 %v218_v1  ;;  %v221_v4 = vld [vmem:[%s282_s1 + $0x18] sm:$0xff]   ;;  %v222_v5 = vld [vmem:[%s282_s1 + $0x20] sm:$0xff]   ;;  %v223_v6 = vld [vmem:[%s282_s1 + $0x28] sm:$0xff]  }
   0x3   :  { %198 = vmatprep.subr.bf16.mxu0 %v227_v0  ;;  %v224_v7 = vld [vmem:[%s282_s1 + $0x30] sm:$0xff]   ;;  %v225_v8 = vld [vmem:[%s282_s1 + $0x38] sm:$0xff]   ;;  %v226_v9 = vld [vmem:[%s283_s0] sm:$0xff]  }
   0x4   :  { %v177_v11 = vld [vmem:[%s284_s2] ss:$0 sm:$0xff] }
   0x6   :  { %199 = vmatpush3.bf16.msra.mxu0 %v219_v2 }
   0x7   :  { %200 = vmatprep.subr.bf16.mxu0 %v227_v0 }
   0xa   :  { %201 = vmatpush3.bf16.msra.mxu0 %v220_v3 }
   0xb   :  { %202 = vmatprep.subr.bf16.mxu0 %v227_v0 }
   0xe   :  { %203 = vmatpush3.bf16.msra.mxu0 %v221_v4 }
   0xf   :  { %204 = vmatprep.subr.bf16.mxu0 %v227_v0 }
  0x12   :  { %205 = vmatpush3.bf16.msra.mxu0 %v222_v5 }
  0x13   :  { %206 = vmatprep.subr.bf16.mxu0 %v227_v0 }
  0x16   :  { %207 = vmatpush3.bf16.msra.mxu0 %v223_v6 }
  0x17   :  { %208 = vmatprep.subr.bf16.mxu0 %v227_v0 }
  0x1a   :  { %209 = vmatpush3.bf16.msra.mxu0 %v224_v7 }
  0x1b   :  { %210 = vmatprep.subr.bf16.mxu0 %v227_v0 }
  0x1e   :  { %211 = vmatpush3.bf16.msra.mxu0 %v225_v8 }
  0x21   :  { %213 = vmatmul.mubr.bf16.vlgmr.msra.gmra.mrb[0].mxu0 %v226_v9 }
  0xf4   :  { %v129_v10 = vpop.f32.mrb[0].mxu0 }
  0xf5   :  { %v214_v12 = vpop.f32.mrb[1].mxu0  ;;  %v152_v14 = vadd.f32 %v177_v11, %v129_v10 }
  0xf6   :  { %v132_v13 = vpop.f32.mrb[2].mxu0 }
  0xf7   :  { %v153_v15 = vadd.f32 %v177_v11, %v132_v13  ;;  %v215_v16 = vpop.f32.mrb[3].mxu0 }
  0xf9   :  { %v185_v17 = vpack.c.bf16 %v153_v15, %v152_v14 }
  0xfb   :  { %186 = vst [vmem:[%s285_s3] sm:$0xff] %v185_v17  }

// kernel: multimodal_forward.103
= control target key start
LH: loop header
LB: loop body
LE: loop exit
PB: predicated region body
PF: predicated region fallthrough
CT: control target
= control target key end

     0   :  { %s559_s9 = smov 0   ;;  %s609_s0 = inlined_call_operand.vmem [shape: bf16[2,8,384], index: 0, kind: input, shape index: {}]   ;;  %s610_s1 = inlined_call_operand.vmem [shape: f32[2,1,8], index: 1, kind: input, shape index: {}]   ;;  %s611_s2 = inlined_call_operand.vmem [shape: bf16[2,8,128], index: 2, kind: output, shape index: {}]  }
   0x1 LB: > { %s464_s10 = sadd.s32 4294967295, %s539_s9   ;;  %p468_p0 = scmp.ge.s32.totalorder %s539_s9, 1  ;;  %s539_s9 = sphi %s559_s9, %s12_s9  }
   0x2   : > { %p120_p1 = scmp.lt.s32.totalorder %s539_s9, 3 }
   0x4   : > { %p121_p2 = pnand %p468_p0, %p120_p1 }
   0x5   : > { %p144_p3 = scmp.lt.s32.totalorder (!%p121_p2), %s464_s10, 1  ;;  %v541_v0 = vmov (!%p121_p2), 0.0   ;;  %vm542_vm0 = vmmov (!%p121_p2), 0   ;;  %vm174_vm1 = vcmask (!%p121_p2), 523264   ;;  %v166_v7 = vlaneseq (!%p121_p2)  ;;  %s543_s18 = smov (!%p121_p2), 64  }
   0x6   : > { %124 = sbr.rel (%p121_p2) target bundleno = 1427 (0x593), region = 28  ;;  %487 = vmatprep.subr.bf16.mxu0 (!%p121_p2), %v541_v0  ;;  %489 = vmatprep.mubr.msk.bf16.mxu0 (!%p121_p2), %vm542_vm0, %v541_v0  ;;  %vm221_vm2 = vcmask (!%p121_p2), 64512   ;;  %vm237_vm3 = vcmask (!%p121_p2), 1043456  }
   0x7   : > { %493 = vmatprep.subr.bf16.mxu1 (!%p121_p2), %v541_v0  ;;  %495 = vmatprep.mubr.msk.bf16.mxu1 (!%p121_p2), %vm542_vm0, %v541_v0  ;;  %v167_v10 = vshrl.u32 (!%p121_p2), %v166_v7, 7 }
   0x9   : > { %v168_v12 = vsub.s32 (!%p121_p2), 0, %v167_v10 }
   0xd   : > { %s613_s10 = smov (!%p144_p3, %s464_s10), 1 }
   0xe   : > { %s511_s11 = smul.u32 12, %s613_s10  ;;  %s151_s17 = scalar_lea.vmem %s610_s1, %s613_s10 }
   0xf   : > { %v159_v8 = vld [vmem:[%s151_s17] sm:$0x1]  ;;  %s470_s19 = sshll.u32 %s613_s10, 2 }
  0x10   : > { %s575_s14 = scalar_lea.vmem %s609_s0, %s511_s11  ;;  %v160_v9 = vsub.f32 1.0, %v159_v8  ;;  %s155_s22 = scalar_lea.vmem %s611_s2, %s470_s19 }
  0x11   : > { %v157_v1 = vld [vmem:[%s575_s14] sm:$0xff]  ;;  %v158_v25 = vld [vmem:[%s575_s14 + $0x8] sm:$0xf] }
  0x12   : > { %v162_v2 = vunpack.c.l.bf16 %v157_v1  ;;  %v471_v3 = vcombine.high %v157_v1, %v157_v1  ;;  %v161_v11 = vmul.f32 -1e+09, %v160_v9  ;;  %v239_v26 = vsel %vm237_vm3, %v158_v25, 0 }
  0x13   : > { %494 = vmatpush3.bf16.msra.mxu1 %v239_v26  ;;  %v475_v44 = vcombine.low %v158_v25, %v158_v25 }
  0x14   : > { %v163_v4 = vmul.f32 0.125, %v162_v2  ;;  %v179_v5 = vsel %vm174_vm1, %v471_v3, 0  ;;  %v169_v13 = vrot.slane %v161_v11, %v168_v12  ;;  %284 = vrot.lane.b32.xlu1 %v471_v3, %s543_s18  ;;  %499 = vmatprep.subr.bf16.mxu1 %v541_v0 }
  0x15   : > { %488 = vmatpush3.bf16.xpose.msra.mxu0 %v179_v5 }
  0x16   : > { %505 = vmatprep.subr.bf16.mxu0 %v541_v0  ;;  %v164_v6 = vpack.c.bf16 %v163_v4, %v163_v4 }
  0x18   : > { %282 = vrot.lane.b32.xlu1 %v164_v6, %s543_s18 }
  0x1c   : > { %490 = vmatmul.mubr.msk.bf16.vlgmr.msra.gmra.mrb[0].mxu0 %vm174_vm1, %v164_v6 }
  0x1d   : > { %507 = vmatprep.mubr.msk.bf16.mxu0 %vm542_vm0, %v541_v0 }
  0x86   : > { %v285_v29 = vpop.permute.xlu1 %284 }
  0x87   : > { %v290_v31 = vsel %vm174_vm1, %v285_v29, 0 }
  0x8a   : > { %v283_v33 = vpop.permute.xlu1 %282 }
  0xef   : > { %v215_v14 = vpop.f32.mrb[0].mxu0 }
  0xf0   : > { %v216_v15 = vadd.f32 %v215_v14, %v169_v13  ;;  %v491_v16 = vpop.f32.mrb[1].mxu0 }
  0xf1   : > { %v218_v17 = vpop.f32.mrb[2].mxu0 }
  0xf2   : > { %v492_v18 = vpop.f32.mrb[3].mxu0  ;;  %v222_v19 = vsel %vm221_vm2, %v216_v15, -inf }
  0xf3   : > { %223 = vmax.xlane.f32.xlu0 %v222_v19 }
 0x180   : > { %v224_v20 = vpop.xlane.xlu0 %223 }
 0x181   : > { %v225_v21 = vsub.f32 %v216_v15, %v224_v20 }
 0x183   : > { %v226_v22 = vmul.f32 1.442695, %v225_v21 }
 0x185   : > { %525 = vpow2.f32 %v226_v22 }
 0x18f   : > { %v526_v23 = vpop.eup %525 }
 0x190   : > { %v228_v24 = vsel %vm221_vm2, %v526_v23, 0.0 }
 0x191   : > { %229 = vadd.xlane.f32.xlu0 %v228_v24 }
 0x21e   : > { %v230_v27 = vpop.xlane.xlu0 %229 }
 0x21f   : > { %527 = vrcp.f32 %v230_v27 }
 0x229   : > { %v528_v28 = vpop.eup %527 }
 0x22a   : > { %v232_v30 = vmul.f32 %v528_v28, %v526_v23 }
 0x22c   : > { %v233_v32 = vpack.c.bf16 %v232_v30, %v232_v30 }
 0x22e   : > { %496 = vmatmul.mubr.msk.bf16.vlgmr.msra.gmra.mrb[0].mxu1 %vm221_vm2, %v233_v32 }
 0x22f   : > { %500 = vmatpush3.bf16.xpose.msra.mxu1 %v290_v31  ;;  %501 = vmatprep.mubr.msk.bf16.mxu1 %vm542_vm0, %v541_v0 }
 0x236   : > { %502 = vmatmul.mubr.msk.bf16.vlgmr.msra.gmra.mrb[4].mxu1 %vm174_vm1, %v283_v33 }
 0x301   : > { %v275_v34 = vpop.f32.mrb[0].mxu1 }
 0x302   : > { %v497_v35 = vpop.f32.mrb[1].mxu1 }
 0x303   : > { %v278_v36 = vpop.f32.mrb[2].mxu1 }
 0x304   : > { %v498_v37 = vpop.f32.mrb[3].mxu1 }
 0x309   : > { %v326_v38 = vpop.f32.mrb[4].mxu1 }
 0x30a   : > { %v327_v39 = vadd.f32 %v326_v38, %v169_v13  ;;  %v503_v40 = vpop.f32.mrb[5].mxu1 }
 0x30b   : > { %v329_v41 = vpop.f32.mrb[6].mxu1 }
 0x30c   : > { %v504_v42 = vpop.f32.mrb[7].mxu1  ;;  %v332_v43 = vsel %vm221_vm2, %v327_v39, -inf }
 0x30d   : > { %333 = vmax.xlane.f32.xlu0 %v332_v43 }
 0x323   : > { %347 = vrot.lane.b32.xlu0 %v475_v44, %s543_s18 }
 0x39a   : > { %v334_v45 = vpop.xlane.xlu0 %333 }
 0x39b   : > { %v335_v46 = vsub.f32 %v327_v39, %v334_v45 }
 0x39d   : > { %v336_v47 = vmul.f32 1.442695, %v335_v46 }
 0x39e   : > { %v348_v50 = vpop.permute.xlu0 %347 }
 0x39f   : > { %529 = vpow2.f32 %v336_v47  ;;  %v353_v51 = vsel %vm237_vm3, %v348_v50, 0 }
 0x3a0   : > { %506 = vmatpush3.bf16.msra.mxu0 %v353_v51 }
 0x3a9   : > { %v530_v48 = vpop.eup %529 }
 0x3aa   : > { %v338_v49 = vsel %vm221_vm2, %v530_v48, 0.0 }
 0x3ab   : > { %339 = vadd.xlane.f32.xlu1 %v338_v49 }
 0x438   : > { %v340_v52 = vpop.xlane.xlu1 %339 }
 0x439   : > { %531 = vrcp.f32 %v340_v52 }
 0x443   : > { %v532_v53 = vpop.eup %531 }
 0x444   : > { %v342_v54 = vmul.f32 %v532_v53, %v530_v48 }
 0x446   : > { %v343_v55 = vpack.c.bf16 %v342_v54, %v342_v54 }
 0x448   : > { %508 = vmatmul.mubr.msk.bf16.vlgmr.msra.gmra.mrb[4].mxu0 %vm221_vm2, %v343_v55 }
 0x51b   : > { %v389_v56 = vpop.f32.mrb[4].mxu0 }
 0x51c   : > { %396 = vrot.lane.b32.xlu0 %v389_v56, %s543_s18  ;;  %v509_v57 = vpop.f32.mrb[5].mxu0 }
 0x51d   : > { %v392_v58 = vpop.f32.mrb[6].mxu0 }
 0x51e   : > { %v510_v59 = vpop.f32.mrb[7].mxu0 }
 0x58e   : > { %v397_v60 = vpop.permute.xlu0 %396 }
 0x58f   : > { %v399_v61 = vsel %vm174_vm1, %v275_v34, %v397_v60 }
 0x590   : > { %v400_v62 = vpack.c.bf16 %v399_v61, %v399_v61 }
 0x592   : > { %401 = vst [vmem:[%s155_s22] sm:$0xf] %v400_v62 }
 0x593 PF: > { %s12_s9 = sadd.s32 1, %s539_s9  }
 0x594   : > { %p9_p4 = scmp.ge.s32.totalorder %s12_s9, 4  }
 0x596   :  { %11 = sbr.rel (!%p9_p4) target bundleno = 1 (0x1), region = 61 }

// kernel: multimodal_forward.105
= control target key start
LH: loop header
LB: loop body
LE: loop exit
PB: predicated region body
PF: predicated region fallthrough
CT: control target
= control target key end

     0   :  { %v298_v1 = vmov 0   ;;  %v191_v18 = vlaneseq  ;;  %s379_s1 = inlined_call_operand.vmem [shape: bf16[128,256], index: 1, kind: input, shape index: {}]   ;;  %s380_s0 = inlined_call_operand.vmem [shape: bf16[16,128], index: 0, kind: input, shape index: {}]   ;;  %s381_s2 = inlined_call_operand.vmem [shape: f32[1,256], index: 2, kind: input, shape index: {}]   ;;  %s382_s3 = inlined_call_operand.vmem [shape: bf16[16,256], index: 3, kind: output, shape index: {}]  }
   0x1   :  { %v265_v0 = vld [vmem:[%s379_s1 + $0x4] ss:$8 sps:$4 sm:$0xff]   ;;  %163 = vmatprep.mubr.bf16.mxu0 %v298_v1  ;;  %v267_v2 = vld [vmem:[%s379_s1] ss:$8 sps:$4 sm:$0xff]   ;;  %v268_v3 = vld [vmem:[%s379_s1 + $0x14] ss:$8 sps:$4 sm:$0xff]  }
   0x2   :  { %131 = vmatprep.subr.bf16.mxu0 %v265_v0  ;;  %v270_v4 = vld [vmem:[%s379_s1 + $0x10] ss:$8 sps:$4 sm:$0xff]   ;;  %v271_v5 = vld [vmem:[%s379_s1 + $0x24] ss:$8 sps:$4 sm:$0xff]   ;;  %v273_v6 = vld [vmem:[%s379_s1 + $0x20] ss:$8 sps:$4 sm:$0xff]  }
   0x3   :  { %132 = vmatpush1.bf16.msra.mxu0 %v267_v2  ;;  %v274_v7 = vld [vmem:[%s379_s1 + $0x34] ss:$8 sps:$4 sm:$0xff]   ;;  %v276_v8 = vld [vmem:[%s379_s1 + $0x30] ss:$8 sps:$4 sm:$0xff]   ;;  %v277_v9 = vld [vmem:[%s379_s1 + $0x44] ss:$8 sps:$4 sm:$0xff]  }
   0x4   :  { %133 = vmatprep.subr.bf16.mxu0 %v268_v3  ;;  %v279_v10 = vld [vmem:[%s379_s1 + $0x40] ss:$8 sps:$4 sm:$0xff]   ;;  %v280_v11 = vld [vmem:[%s379_s1 + $0x54] ss:$8 sps:$4 sm:$0xff]   ;;  %v282_v12 = vld [vmem:[%s379_s1 + $0x50] ss:$8 sps:$4 sm:$0xff]  }
   0x5   :  { %v283_v13 = vld [vmem:[%s379_s1 + $0x64] ss:$8 sps:$4 sm:$0xff]   ;;  %v285_v14 = vld [vmem:[%s379_s1 + $0x60] ss:$8 sps:$4 sm:$0xff]   ;;  %v286_v15 = vld [vmem:[%s379_s1 + $0x74] ss:$8 sps:$4 sm:$0xff]  }
   0x6   :  { %v288_v16 = vld [vmem:[%s379_s1 + $0x70] ss:$8 sps:$4 sm:$0xff]   ;;  %v289_v17 = vld [vmem:[%s380_s0] sm:$0xff]   ;;  %v192_v19 = vshrl.u32 %v191_v18, 7 }
   0x7   :  { %134 = vmatpush1.bf16.msra.mxu0 %v270_v4  ;;  %v189_v21 = vld [vmem:[%s381_s2] sm:$0x3] }
   0x8   :  { %135 = vmatprep.subr.bf16.mxu0 %v271_v5  ;;  %v193_v20 = vsub.s32 0, %v192_v19  ;;  %v197_v22 = vsub.s32 1, %v192_v19 }
   0xa   :  { %v194_v23 = vrot.slane %v189_v21, %v193_v20  ;;  %v198_v24 = vrot.slane %v189_v21, %v197_v22 }
   0xb   :  { %136 = vmatpush1.bf16.msra.mxu0 %v273_v6 }
   0xc   :  { %137 = vmatprep.subr.bf16.mxu0 %v274_v7 }
   0xf   :  { %138 = vmatpush1.bf16.msra.mxu0 %v276_v8 }
  0x10   :  { %139 = vmatprep.subr.bf16.mxu0 %v277_v9 }
  0x13   :  { %140 = vmatpush1.bf16.msra.mxu0 %v279_v10 }
  0x14   :  { %141 = vmatprep.subr.bf16.mxu0 %v280_v11 }
  0x17   :  { %142 = vmatpush1.bf16.msra.mxu0 %v282_v12 }
  0x18   :  { %143 = vmatprep.subr.bf16.mxu0 %v283_v13 }
  0x1b   :  { %144 = vmatpush1.bf16.msra.mxu0 %v285_v14 }
  0x1c   :  { %145 = vmatprep.subr.bf16.mxu0 %v286_v15 }
  0x1f   :  { %146 = vmatpush1.bf16.msra.mxu0 %v288_v16 }
  0x22   :  { %164 = vmatmul.mubr.bf16.vlgmr.msra.gmra.mrb[0].mxu0 %v289_v17 }
  0xf5   :  { %v165_v25 = vpop.f32.mrb[0].mxu0 }
  0xf6   :  { %v201_v26 = vadd.f32 %v194_v23, %v165_v25  ;;  %v167_v27 = vpop.f32.mrb[1].mxu0 }
  0xf7   :  { %v202_v28 = vadd.f32 %v198_v24, %v167_v27  ;;  %v169_v29 = vpop.f32.mrb[2].mxu0 }
  0xf8   :  { %v209_v30 = vmul.f32 0.70710677, %v201_v26  ;;  %v203_v31 = vadd.f32 %v194_v23, %v169_v29  ;;  %v171_v32 = vpop.f32.mrb[3].mxu0  ;;  %v205_v39 = vmul.f32 0.5, %v201_v26 }
  0xf9   :  { %v210_v33 = vmul.f32 0.70710677, %v202_v28  ;;  %v204_v34 = vadd.f32 %v198_v24, %v171_v32  ;;  %v206_v42 = vmul.f32 0.5, %v202_v28 }
  0xfa   :  { %290 = verf.f32 %v209_v30  ;;  %v211_v35 = vmul.f32 0.70710677, %v203_v31  ;;  %v207_v46 = vmul.f32 0.5, %v203_v31 }
  0xfb   :  { %292 = verf.f32 %v210_v33  ;;  %v212_v36 = vmul.f32 0.70710677, %v204_v34  ;;  %v208_v49 = vmul.f32 0.5, %v204_v34 }
  0xfc   :  { %294 = verf.f32 %v211_v35 }
  0xfd   :  { %296 = verf.f32 %v212_v36 }
 0x104   :  { %v291_v37 = vpop.eup %290 }
 0x105   :  { %v293_v38 = vpop.eup %292  ;;  %v217_v40 = vadd.f32 1.0, %v291_v37 }
 0x106   :  { %v295_v41 = vpop.eup %294  ;;  %v218_v43 = vadd.f32 1.0, %v293_v38 }
 0x107   :  { %v297_v44 = vpop.eup %296  ;;  %v221_v45 = vmul.f32 %v217_v40, %v205_v39  ;;  %v219_v47 = vadd.f32 1.0, %v295_v41 }
 0x108   :  { %v222_v48 = vmul.f32 %v218_v43, %v206_v42  ;;  %v220_v50 = vadd.f32 1.0, %v297_v44 }
 0x109   :  { %v223_v51 = vmul.f32 %v219_v47, %v207_v46 }
 0x10a   :  { %v262_v52 = vpack.c.bf16 %v222_v48, %v221_v45  ;;  %v224_v53 = vmul.f32 %v220_v50, %v208_v49 }
 0x10c   :  { %237 = vst [vmem:[%s382_s3] sm:$0xff] %v262_v52  ;;  %v263_v54 = vpack.c.bf16 %v224_v53, %v223_v51 }
 0x10e   :  { %238 = vst [vmem:[%s382_s3 + $0x8] sm:$0xff] %v263_v54 }

// kernel: multimodal_forward.106
= control target key start
LH: loop header
LB: loop body
LE: loop exit
PB: predicated region body
PF: predicated region fallthrough
CT: control target
= control target key end

     0   :  { %s475_s1 = inlined_call_operand.vmem [shape: bf16[256,128], index: 1, kind: input, shape index: {}]   ;;  %s476_s0 = inlined_call_operand.vmem [shape: bf16[16,256], index: 0, kind: input, shape index: {}]   ;;  %s477_s3 = inlined_call_operand.vmem [shape: bf16[16,128], index: 3, kind: input, shape index: {}]   ;;  %s478_s2 = inlined_call_operand.vmem [shape: f32[1,128], index: 2, kind: input, shape index: {}]   ;;  %s479_s4 = inlined_call_operand.vmem [shape: f32[1,128], index: 4, kind: input, shape index: {}]   ;;  %s480_s5 = inlined_call_operand.vmem [shape: f32[1,128], index: 5, kind: input, shape index: {}]   ;;  %s481_s6 = inlined_call_operand.vmem [shape: bf16[16,128], index: 6, kind: output, shape index: {}]  }
   0x1   :  { %v348_v0 = vld [vmem:[%s475_s1 + $0x40] sm:$0xff]   ;;  %v350_v2 = vld [vmem:[%s475_s1 + $0x48] sm:$0xff]   ;;  %v352_v4 = vld [vmem:[%s475_s1 + $0x50] sm:$0xff]  }
   0x2   :  { %v349_v1 = vld [vmem:[%s475_s1] sm:$0xff]   ;;  %326 = vmatprep.subr.bf16.mxu0 %v348_v0  ;;  %v351_v3 = vld [vmem:[%s475_s1 + $0x8] sm:$0xff]   ;;  %v353_v5 = vld [vmem:[%s475_s1 + $0x10] sm:$0xff]  }
   0x3   :  { %327 = vmatpush3.bf16.msra.mxu0 %v349_v1  ;;  %v354_v6 = vld [vmem:[%s475_s1 + $0x58] sm:$0xff]   ;;  %v356_v8 = vld [vmem:[%s475_s1 + $0x60] sm:$0xff]   ;;  %v358_v10 = vld [vmem:[%s475_s1 + $0x68] sm:$0xff]  }
   0x4   :  { %328 = vmatprep.subr.bf16.mxu0 %v350_v2  ;;  %v355_v7 = vld [vmem:[%s475_s1 + $0x18] sm:$0xff]   ;;  %v357_v9 = vld [vmem:[%s475_s1 + $0x20] sm:$0xff]   ;;  %v359_v12 = vld [vmem:[%s475_s1 + $0x28] sm:$0xff]  }
   0x5   :  { %v366_v11 = vld [vmem:[%s476_s0 + $0x4] ss:$8 sps:$4 sm:$0xff]   ;;  %v360_v13 = vld [vmem:[%s475_s1 + $0x70] sm:$0xff]   ;;  %v362_v15 = vld [vmem:[%s475_s1 + $0x78] sm:$0xff]  }
   0x6   :  { %204 = vmatprep.mubr.bf16.mxu0 %v366_v11  ;;  %v361_v14 = vld [vmem:[%s475_s1 + $0x30] sm:$0xff]   ;;  %v363_v16 = vld [vmem:[%s475_s1 + $0x38] sm:$0xff]   ;;  %v364_v17 = vld [vmem:[%s476_s0] ss:$8 sps:$4 sm:$0xff]  }
   0x7   :  { %329 = vmatpush3.bf16.msra.mxu0 %v351_v3  ;;  %v318_v18 = vld [vmem:[%s477_s3] sm:$0xff]  }
   0x8   :  { %330 = vmatprep.subr.bf16.mxu0 %v352_v4  ;;  %v310_v21 = vld [vmem:[%s478_s2] ss:$0 sm:$0xff]  ;;  %v319_v24 = vunpack.c.l.bf16 %v318_v18  ;;  %v320_v30 = vunpack.c.h.bf16 %v318_v18 }
   0x9   :  { %v311_v48 = vld [vmem:[%s479_s4] ss:$0 sm:$0xff] }
   0xa   :  { %v312_v52 = vld [vmem:[%s480_s5] ss:$0 sm:$0xff] }
   0xb   :  { %331 = vmatpush3.bf16.msra.mxu0 %v353_v5 }
   0xc   :  { %332 = vmatprep.subr.bf16.mxu0 %v354_v6 }
   0xf   :  { %333 = vmatpush3.bf16.msra.mxu0 %v355_v7 }
  0x10   :  { %334 = vmatprep.subr.bf16.mxu0 %v356_v8 }
  0x13   :  { %335 = vmatpush3.bf16.msra.mxu0 %v357_v9 }
  0x14   :  { %336 = vmatprep.subr.bf16.mxu0 %v358_v10 }
  0x17   :  { %337 = vmatpush3.bf16.msra.mxu0 %v359_v12 }
  0x18   :  { %338 = vmatprep.subr.bf16.mxu0 %v360_v13 }
  0x1b   :  { %339 = vmatpush3.bf16.msra.mxu0 %v361_v14 }
  0x1c   :  { %340 = vmatprep.subr.bf16.mxu0 %v362_v15 }
  0x1f   :  { %341 = vmatpush3.bf16.msra.mxu0 %v363_v16 }
  0x22   :  { %205 = vmatmul.mubr.bf16.vlgmr.msra.gmra.mrb[0].mxu0 %v364_v17 }
  0xf5   :  { %v342_v19 = vpop.f32.mrb[0].mxu0 }
  0xf6   :  { %v343_v20 = vpop.f32.mrb[1].mxu0 }
  0xf7   :  { %v344_v22 = vadd.f32 %v343_v20, %v342_v19  ;;  %v345_v23 = vpop.f32.mrb[2].mxu0 }
  0xf8   :  { %v346_v25 = vpop.f32.mrb[3].mxu0 }
  0xf9   :  { %v229_v26 = vadd.f32 %v344_v22, %v310_v21  ;;  %v347_v27 = vadd.f32 %v346_v25, %v345_v23 }
  0xfb   :  { %v230_v28 = vadd.f32 %v347_v27, %v310_v21  ;;  %v235_v29 = vadd.f32 %v319_v24, %v229_v26 }
  0xfd   :  { %239 = vadd.xlane.f32.xlu0 %v235_v29  ;;  %v236_v31 = vadd.f32 %v320_v30, %v230_v28 }
 0x101   :  { %241 = vadd.xlane.f32.xlu0 %v236_v31 }
 0x18a   :  { %v240_v32 = vpop.xlane.xlu0 %239 }
 0x18b   :  { %v244_v33 = vmul.f32 0.0078125, %v240_v32 }
 0x18d   :  { %v246_v34 = vsub.f32 %v235_v29, %v244_v33 }
 0x18e   :  { %v242_v35 = vpop.xlane.xlu0 %241 }
 0x18f   :  { %v245_v36 = vmul.f32 0.0078125, %v242_v35  ;;  %v248_v37 = vmul.f32 %v246_v34, %v246_v34 }
 0x191   :  { %v247_v38 = vsub.f32 %v236_v31, %v245_v36  ;;  %250 = vadd.xlane.f32.xlu1 %v248_v37 }
 0x193   :  { %v249_v39 = vmul.f32 %v247_v38, %v247_v38 }
 0x195   :  { %252 = vadd.xlane.f32.xlu1 %v249_v39 }
 0x21e   :  { %v251_v40 = vpop.xlane.xlu1 %250 }
 0x21f   :  { %v254_v41 = vmul.f32 0.0078125, %v251_v40 }
 0x221   :  { %v256_v42 = vadd.f32 1e-12, %v254_v41 }
 0x222   :  { %v253_v43 = vpop.xlane.xlu1 %252 }
 0x223   :  { %367 = vrsqrt.f32 %v256_v42  ;;  %v255_v44 = vmul.f32 0.0078125, %v253_v43 }
 0x225   :  { %v257_v45 = vadd.f32 1e-12, %v255_v44 }
 0x227   :  { %369 = vrsqrt.f32 %v257_v45 }
 0x22d   :  { %v368_v46 = vpop.eup %367 }
 0x22e   :  { %v260_v47 = vmul.f32 %v368_v46, %v246_v34 }
 0x230   :  { %v268_v50 = vmul.f32 %v311_v48, %v260_v47 }
 0x231   :  { %v370_v49 = vpop.eup %369 }
 0x232   :  { %v261_v51 = vmul.f32 %v370_v49, %v247_v38  ;;  %v276_v54 = vadd.f32 %v312_v52, %v268_v50 }
 0x234   :  { %v269_v53 = vmul.f32 %v311_v48, %v261_v51 }
 0x236   :  { %v277_v55 = vadd.f32 %v312_v52, %v269_v53 }
 0x238   :  { %v324_v56 = vpack.c.bf16 %v277_v55, %v276_v54 }
 0x23a   :  { %325 = vst [vmem:[%s481_s6] sm:$0xff] %v324_v56  }

// kernel: multimodal_forward.117
= control target key start
LH: loop header
LB: loop body
LE: loop exit
PB: predicated region body
PF: predicated region fallthrough
CT: control target
= control target key end

     0   :  { %v270_v1 = vmov 0   ;;  %v191_v18 = vlaneseq  ;;  %s351_s1 = inlined_call_operand.vmem [shape: bf16[128,256], index: 1, kind: input, shape index: {}]   ;;  %s352_s0 = inlined_call_operand.vmem [shape: bf16[16,128], index: 0, kind: input, shape index: {}]   ;;  %s353_s2 = inlined_call_operand.vmem [shape: f32[1,256], index: 2, kind: input, shape index: {}]   ;;  %s354_s3 = inlined_call_operand.vmem [shape: bf16[16,256], index: 3, kind: output, shape index: {}]  }
   0x1   :  { %v245_v0 = vld [vmem:[%s351_s1 + $0x4] ss:$8 sps:$4 sm:$0xff]   ;;  %163 = vmatprep.mubr.bf16.mxu0 %v270_v1  ;;  %v247_v2 = vld [vmem:[%s351_s1] ss:$8 sps:$4 sm:$0xff]   ;;  %v248_v3 = vld [vmem:[%s351_s1 + $0x14] ss:$8 sps:$4 sm:$0xff]  }
   0x2   :  { %131 = vmatprep.subr.bf16.mxu0 %v245_v0  ;;  %v250_v4 = vld [vmem:[%s351_s1 + $0x10] ss:$8 sps:$4 sm:$0xff]   ;;  %v251_v5 = vld [vmem:[%s351_s1 + $0x24] ss:$8 sps:$4 sm:$0xff]   ;;  %v253_v6 = vld [vmem:[%s351_s1 + $0x20] ss:$8 sps:$4 sm:$0xff]  }
   0x3   :  { %132 = vmatpush1.bf16.msra.mxu0 %v247_v2  ;;  %v254_v7 = vld [vmem:[%s351_s1 + $0x34] ss:$8 sps:$4 sm:$0xff]   ;;  %v256_v8 = vld [vmem:[%s351_s1 + $0x30] ss:$8 sps:$4 sm:$0xff]   ;;  %v257_v9 = vld [vmem:[%s351_s1 + $0x44] ss:$8 sps:$4 sm:$0xff]  }
   0x4   :  { %133 = vmatprep.subr.bf16.mxu0 %v248_v3  ;;  %v259_v10 = vld [vmem:[%s351_s1 + $0x40] ss:$8 sps:$4 sm:$0xff]   ;;  %v260_v11 = vld [vmem:[%s351_s1 + $0x54] ss:$8 sps:$4 sm:$0xff]   ;;  %v262_v12 = vld [vmem:[%s351_s1 + $0x50] ss:$8 sps:$4 sm:$0xff]  }
   0x5   :  { %v263_v13 = vld [vmem:[%s351_s1 + $0x64] ss:$8 sps:$4 sm:$0xff]   ;;  %v265_v14 = vld [vmem:[%s351_s1 + $0x60] ss:$8 sps:$4 sm:$0xff]   ;;  %v266_v15 = vld [vmem:[%s351_s1 + $0x74] ss:$8 sps:$4 sm:$0xff]  }
   0x6   :  { %v268_v16 = vld [vmem:[%s351_s1 + $0x70] ss:$8 sps:$4 sm:$0xff]   ;;  %v269_v17 = vld [vmem:[%s352_s0] sm:$0xff]   ;;  %v192_v19 = vshrl.u32 %v191_v18, 7 }
   0x7   :  { %134 = vmatpush1.bf16.msra.mxu0 %v250_v4  ;;  %v189_v21 = vld [vmem:[%s353_s2] sm:$0x3] }
   0x8   :  { %135 = vmatprep.subr.bf16.mxu0 %v251_v5  ;;  %v193_v20 = vsub.s32 0, %v192_v19  ;;  %v197_v22 = vsub.s32 1, %v192_v19 }
   0xa   :  { %v194_v23 = vrot.slane %v189_v21, %v193_v20  ;;  %v198_v24 = vrot.slane %v189_v21, %v197_v22 }
   0xb   :  { %136 = vmatpush1.bf16.msra.mxu0 %v253_v6 }
   0xc   :  { %137 = vmatprep.subr.bf16.mxu0 %v254_v7 }
   0xf   :  { %138 = vmatpush1.bf16.msra.mxu0 %v256_v8 }
  0x10   :  { %139 = vmatprep.subr.bf16.mxu0 %v257_v9 }
  0x13   :  { %140 = vmatpush1.bf16.msra.mxu0 %v259_v10 }
  0x14   :  { %141 = vmatprep.subr.bf16.mxu0 %v260_v11 }
  0x17   :  { %142 = vmatpush1.bf16.msra.mxu0 %v262_v12 }
  0x18   :  { %143 = vmatprep.subr.bf16.mxu0 %v263_v13 }
  0x1b   :  { %144 = vmatpush1.bf16.msra.mxu0 %v265_v14 }
  0x1c   :  { %145 = vmatprep.subr.bf16.mxu0 %v266_v15 }
  0x1f   :  { %146 = vmatpush1.bf16.msra.mxu0 %v268_v16 }
  0x22   :  { %164 = vmatmul.mubr.bf16.vlgmr.msra.gmra.mrb[0].mxu0 %v269_v17 }
  0xf5   :  { %v165_v25 = vpop.f32.mrb[0].mxu0 }
  0xf6   :  { %v201_v26 = vadd.f32 %v194_v23, %v165_v25  ;;  %v167_v27 = vpop.f32.mrb[1].mxu0 }
  0xf7   :  { %v202_v28 = vadd.f32 %v198_v24, %v167_v27  ;;  %v169_v29 = vpop.f32.mrb[2].mxu0 }
  0xf8   :  { %v203_v30 = vadd.f32 %v194_v23, %v169_v29  ;;  %v171_v31 = vpop.f32.mrb[3].mxu0 }
  0xf9   :  { %v242_v32 = vpack.c.bf16 %v202_v28, %v201_v26  ;;  %v204_v33 = vadd.f32 %v198_v24, %v171_v31 }
  0xfb   :  { %217 = vst [vmem:[%s354_s3] sm:$0xff] %v242_v32  ;;  %v243_v34 = vpack.c.bf16 %v204_v33, %v203_v30 }
  0xfd   :  { %218 = vst [vmem:[%s354_s3 + $0x8] sm:$0xff] %v243_v34 }

// kernel: multimodal_forward.118
= control target key start
LH: loop header
LB: loop body
LE: loop exit
PB: predicated region body
PF: predicated region fallthrough
CT: control target
= control target key end

     0   :  { %s621_s12 = smov 0   ;;  %s682_s0 = inlined_call_operand.vmem [shape: bf16[2,8,128], index: 0, kind: input, shape index: {}]   ;;  %s683_s1 = inlined_call_operand.vmem [shape: bf16[2,8,256], index: 1, kind: input, shape index: {}]   ;;  %s684_s2 = inlined_call_operand.vmem [shape: f32[2,1,8], index: 2, kind: input, shape index: {}]   ;;  %s685_s3 = inlined_call_operand.vmem [shape: bf16[2,8,128], index: 3, kind: output, shape index: {}]  }
   0x1 LB: > { %s519_s13 = sadd.s32 4294967295, %s596_s12   ;;  %p523_p0 = scmp.ge.s32.totalorder %s596_s12, 1  ;;  %s596_s12 = sphi %s621_s12, %s13_s12  }
   0x2   : > { %p154_p1 = scmp.lt.s32.totalorder %s596_s12, 3 }
   0x4   : > { %p155_p2 = pnand %p523_p0, %p154_p1 }
   0x5   : > { %p184_p3 = scmp.lt.s32.totalorder (!%p155_p2), %s519_s13, 1  ;;  %v598_v0 = vmov (!%p155_p2), 0.0   ;;  %vm599_vm0 = vmmov (!%p155_p2), 0   ;;  %vm215_vm1 = vcmask (!%p155_p2), 523264   ;;  %v210_v7 = vlaneseq (!%p155_p2)  ;;  %s600_s25 = smov (!%p155_p2), 64  }
   0x6   : > { %158 = sbr.rel (%p155_p2) target bundleno = 1424 (0x590), region = 32  ;;  %545 = vmatprep.subr.bf16.mxu0 (!%p155_p2), %v598_v0  ;;  %547 = vmatprep.mubr.msk.bf16.mxu0 (!%p155_p2), %vm599_vm0, %v598_v0  ;;  %vm262_vm2 = vcmask (!%p155_p2), 64512   ;;  %vm281_vm3 = vcmask (!%p155_p2), 1043456  }
   0x7   : > { %551 = vmatprep.subr.bf16.mxu1 (!%p155_p2), %v598_v0  ;;  %553 = vmatprep.mubr.msk.bf16.mxu1 (!%p155_p2), %vm599_vm0, %v598_v0  ;;  %v211_v10 = vshrl.u32 (!%p155_p2), %v210_v7, 7 }
   0x9   : > { %v212_v12 = vsub.s32 (!%p155_p2), 0, %v211_v10 }
   0xd   : > { %s687_s13 = smov (!%p184_p3, %s519_s13), 1 }
   0xe   : > { %s536_s14 = sshll.u32 %s687_s13, 3  ;;  %s524_s15 = sshll.u32 %s687_s13, 2 }
   0xf   : > { %s192_s18 = scalar_lea.vmem %s683_s1, %s536_s14  ;;  %s187_s21 = scalar_lea.vmem %s682_s0, %s524_s15 }
  0x10   : > { %v201_v1 = vld [vmem:[%s192_s18] sm:$0xff]  ;;  %s195_s24 = scalar_lea.vmem %s684_s2, %s687_s13  ;;  %s199_s28 = scalar_lea.vmem %s685_s3, %s524_s15 }
  0x11   : > { %v202_v2 = vld [vmem:[%s187_s21] sm:$0xf]  ;;  %v220_v3 = vsel %vm215_vm1, %v201_v1, 0  ;;  %v531_v20 = vcombine.low %v201_v1, %v201_v1  ;;  %v529_v26 = vcombine.high %v201_v1, %v201_v1 }
  0x12   : > { %v206_v4 = vunpack.c.l.bf16 %v202_v2  ;;  %546 = vmatpush3.bf16.xpose.msra.mxu0 %v220_v3  ;;  %v203_v8 = vld [vmem:[%s195_s24] sm:$0x1] }
  0x13   : > { %563 = vmatprep.subr.bf16.mxu0 %v598_v0  ;;  %v204_v9 = vsub.f32 1.0, %v203_v8  ;;  %330 = vrot.lane.b32.xlu1 %v531_v20, %s600_s25  ;;  %v283_v27 = vsel %vm281_vm3, %v529_v26, 0 }
  0x14   : > { %v207_v5 = vmul.f32 0.125, %v206_v4  ;;  %552 = vmatpush3.bf16.msra.mxu1 %v283_v27 }
  0x15   : > { %v205_v11 = vmul.f32 -1e+09, %v204_v9  ;;  %557 = vmatprep.subr.bf16.mxu1 %v598_v0 }
  0x16   : > { %v208_v6 = vpack.c.bf16 %v207_v5, %v207_v5 }
  0x17   : > { %v213_v13 = vrot.slane %v205_v11, %v212_v12 }
  0x18   : > { %326 = vrot.lane.b32.xlu1 %v208_v6, %s600_s25 }
  0x19   : > { %548 = vmatmul.mubr.msk.bf16.vlgmr.msra.gmra.mrb[0].mxu0 %vm215_vm1, %v208_v6 }
  0x1a   : > { %565 = vmatprep.mubr.msk.bf16.mxu0 %vm599_vm0, %v598_v0 }
  0x85   : > { %v331_v30 = vpop.permute.xlu1 %330 }
  0x86   : > { %v336_v32 = vsel %vm215_vm1, %v331_v30, 0 }
  0x8a   : > { %v327_v34 = vpop.permute.xlu1 %326 }
  0xec   : > { %v256_v14 = vpop.f32.mrb[0].mxu0 }
  0xed   : > { %v257_v15 = vadd.f32 %v256_v14, %v213_v13  ;;  %v549_v16 = vpop.f32.mrb[1].mxu0 }
  0xee   : > { %v259_v17 = vpop.f32.mrb[2].mxu0 }
  0xef   : > { %v550_v18 = vpop.f32.mrb[3].mxu0  ;;  %v263_v19 = vsel %vm262_vm2, %v257_v15, -inf }
  0xf0   : > { %264 = vmax.xlane.f32.xlu0 %v263_v19 }
 0x17d   : > { %v265_v21 = vpop.xlane.xlu0 %264 }
 0x17e   : > { %v266_v22 = vsub.f32 %v257_v15, %v265_v21 }
 0x180   : > { %v267_v23 = vmul.f32 1.442695, %v266_v22 }
 0x182   : > { %582 = vpow2.f32 %v267_v23 }
 0x18c   : > { %v583_v24 = vpop.eup %582 }
 0x18d   : > { %v269_v25 = vsel %vm262_vm2, %v583_v24, 0.0 }
 0x18e   : > { %270 = vadd.xlane.f32.xlu0 %v269_v25 }
 0x21b   : > { %v271_v28 = vpop.xlane.xlu0 %270 }
 0x21c   : > { %584 = vrcp.f32 %v271_v28 }
 0x226   : > { %v585_v29 = vpop.eup %584 }
 0x227   : > { %v273_v31 = vmul.f32 %v585_v29, %v583_v24 }
 0x229   : > { %v274_v33 = vpack.c.bf16 %v273_v31, %v273_v31 }
 0x22b   : > { %554 = vmatmul.mubr.msk.bf16.vlgmr.msra.gmra.mrb[0].mxu1 %vm262_vm2, %v274_v33 }
 0x22c   : > { %558 = vmatpush3.bf16.xpose.msra.mxu1 %v336_v32  ;;  %559 = vmatprep.mubr.msk.bf16.mxu1 %vm599_vm0, %v598_v0 }
 0x233   : > { %560 = vmatmul.mubr.msk.bf16.vlgmr.msra.gmra.mrb[4].mxu1 %vm215_vm1, %v327_v34 }
 0x2fe   : > { %v319_v35 = vpop.f32.mrb[0].mxu1 }
 0x2ff   : > { %v555_v36 = vpop.f32.mrb[1].mxu1 }
 0x300   : > { %v322_v37 = vpop.f32.mrb[2].mxu1 }
 0x301   : > { %v556_v38 = vpop.f32.mrb[3].mxu1 }
 0x306   : > { %v372_v39 = vpop.f32.mrb[4].mxu1 }
 0x307   : > { %v373_v40 = vadd.f32 %v372_v39, %v213_v13  ;;  %v561_v41 = vpop.f32.mrb[5].mxu1 }
 0x308   : > { %v375_v42 = vpop.f32.mrb[6].mxu1 }
 0x309   : > { %v562_v43 = vpop.f32.mrb[7].mxu1  ;;  %v378_v44 = vsel %vm262_vm2, %v373_v40, -inf }
 0x30a   : > { %379 = vmax.xlane.f32.xlu0 %v378_v44 }
 0x320   : > { %390 = vrot.lane.b32.xlu0 %v529_v26, %s600_s25 }
 0x397   : > { %v380_v45 = vpop.xlane.xlu0 %379 }
 0x398   : > { %v381_v46 = vsub.f32 %v373_v40, %v380_v45 }
 0x39a   : > { %v382_v47 = vmul.f32 1.442695, %v381_v46 }
 0x39b   : > { %v391_v50 = vpop.permute.xlu0 %390 }
 0x39c   : > { %586 = vpow2.f32 %v382_v47  ;;  %v396_v51 = vsel %vm281_vm3, %v391_v50, 0 }
 0x39d   : > { %564 = vmatpush3.bf16.msra.mxu0 %v396_v51 }
 0x3a6   : > { %v587_v48 = vpop.eup %586 }
 0x3a7   : > { %v384_v49 = vsel %vm262_vm2, %v587_v48, 0.0 }
 0x3a8   : > { %385 = vadd.xlane.f32.xlu1 %v384_v49 }
 0x435   : > { %v386_v52 = vpop.xlane.xlu1 %385 }
 0x436   : > { %588 = vrcp.f32 %v386_v52 }
 0x440   : > { %v589_v53 = vpop.eup %588 }
 0x441   : > { %v388_v54 = vmul.f32 %v589_v53, %v587_v48 }
 0x443   : > { %v389_v55 = vpack.c.bf16 %v388_v54, %v388_v54 }
 0x445   : > { %566 = vmatmul.mubr.msk.bf16.vlgmr.msra.gmra.mrb[4].mxu0 %vm262_vm2, %v389_v55 }
 0x518   : > { %v432_v56 = vpop.f32.mrb[4].mxu0 }
 0x519   : > { %439 = vrot.lane.b32.xlu0 %v432_v56, %s600_s25  ;;  %v567_v57 = vpop.f32.mrb[5].mxu0 }
 0x51a   : > { %v435_v58 = vpop.f32.mrb[6].mxu0 }
 0x51b   : > { %v568_v59 = vpop.f32.mrb[7].mxu0 }
 0x58b   : > { %v440_v60 = vpop.permute.xlu0 %439 }
 0x58c   : > { %v442_v61 = vsel %vm215_vm1, %v319_v35, %v440_v60 }
 0x58d   : > { %v443_v62 = vpack.c.bf16 %v442_v61, %v442_v61 }
 0x58f   : > { %444 = vst [vmem:[%s199_s28] sm:$0xf] %v443_v62 }
 0x590 PF: > { %s13_s12 = sadd.s32 1, %s596_s12  }
 0x591   : > { %p10_p4 = scmp.ge.s32.totalorder %s13_s12, 4  }
 0x593   :  { %12 = sbr.rel (!%p10_p4) target bundleno = 1 (0x1), region = 68 }

// kernel: multimodal_forward.133
= control target key start
LH: loop header
LB: loop body
LE: loop exit
PB: predicated region body
PF: predicated region fallthrough
CT: control target
= control target key end

     0   :  { %v233_v0 = vmov 0.0   ;;  %vm234_vm0 = vmmov 0   ;;  %s288_s1 = inlined_call_operand.vmem [shape: bf16[128,128], index: 1, kind: input, shape index: {}]   ;;  %s289_s0 = inlined_call_operand.vmem [shape: bf16[16,128], index: 0, kind: input, shape index: {}]   ;;  %s290_s2 = inlined_call_operand.vmem [shape: f32[1,128], index: 2, kind: input, shape index: {}]   ;;  %s291_s3 = inlined_call_operand.vmem [shape: bf16[16,128], index: 3, kind: output, shape index: {}]  }
   0x1   :  { %198 = vmatprep.subr.bf16.mxu0 %v233_v0  ;;  %v220_v1 = vld [vmem:[%s288_s1] sm:$0xff]   ;;  %214 = vmatprep.mubr.msk.bf16.mxu0 %vm234_vm0, %v233_v0  ;;  %v221_v2 = vld [vmem:[%s288_s1 + $0x8] sm:$0xff]   ;;  %v222_v3 = vld [vmem:[%s288_s1 + $0x10] sm:$0xff]  }
   0x2   :  { %199 = vmatpush3.bf16.msra.mxu0 %v220_v1  ;;  %v223_v4 = vld [vmem:[%s288_s1 + $0x18] sm:$0xff]   ;;  %v224_v5 = vld [vmem:[%s288_s1 + $0x20] sm:$0xff]   ;;  %v225_v6 = vld [vmem:[%s288_s1 + $0x28] sm:$0xff]  }
   0x3   :  { %200 = vmatprep.subr.bf16.mxu0 %v233_v0  ;;  %v226_v7 = vld [vmem:[%s288_s1 + $0x30] sm:$0xff]   ;;  %v227_v8 = vld [vmem:[%s288_s1 + $0x38] sm:$0xff]   ;;  %v228_v9 = vld [vmem:[%s289_s0] sm:$0xff]  }
   0x4   :  { %v179_v10 = vld [vmem:[%s290_s2] ss:$0 sm:$0xff] }
   0x6   :  { %201 = vmatpush3.bf16.msra.mxu0 %v221_v2 }
   0x7   :  { %202 = vmatprep.subr.bf16.mxu0 %v233_v0 }
   0xa   :  { %203 = vmatpush3.bf16.msra.mxu0 %v222_v3 }
   0xb   :  { %204 = vmatprep.subr.bf16.mxu0 %v233_v0 }
   0xe   :  { %205 = vmatpush3.bf16.msra.mxu0 %v223_v4 }
   0xf   :  { %206 = vmatprep.subr.bf16.mxu0 %v233_v0 }
  0x12   :  { %207 = vmatpush3.bf16.msra.mxu0 %v224_v5 }
  0x13   :  { %208 = vmatprep.subr.bf16.mxu0 %v233_v0 }
  0x16   :  { %209 = vmatpush3.bf16.msra.mxu0 %v225_v6 }
  0x17   :  { %210 = vmatprep.subr.bf16.mxu0 %v233_v0 }
  0x1a   :  { %211 = vmatpush3.bf16.msra.mxu0 %v226_v7 }
  0x1b   :  { %212 = vmatprep.subr.bf16.mxu0 %v233_v0 }
  0x1e   :  { %213 = vmatpush3.bf16.msra.mxu0 %v227_v8 }
  0x21   :  { %215 = vmatmul.mubr.bf16.vlgmr.msra.gmra.mrb[0].mxu0 %v228_v9 }
  0xf4   :  { %v129_v11 = vpop.f32.mrb[0].mxu0 }
  0xf5   :  { %v152_v12 = vadd.f32 %v179_v10, %v129_v11  ;;  %v216_v13 = vpop.f32.mrb[1].mxu0 }
  0xf6   :  { %v132_v14 = vpop.f32.mrb[2].mxu0 }
  0xf7   :  { %v153_v15 = vadd.f32 %v179_v10, %v132_v14  ;;  %v217_v16 = vpop.f32.mrb[3].mxu0  ;;  %229 = vtanh.f32 %v152_v12 }
  0xf9   :  { %231 = vtanh.f32 %v153_v15 }
 0x101   :  { %v230_v17 = vpop.eup %229 }
 0x103   :  { %v232_v18 = vpop.eup %231 }
 0x104   :  { %v187_v19 = vpack.c.bf16 %v232_v18, %v230_v17 }
 0x106   :  { %188 = vst [vmem:[%s291_s3] sm:$0xff] %v187_v19  }

// kernel: multimodal_forward.131
= control target key start
LH: loop header
LB: loop body
LE: loop exit
PB: predicated region body
PF: predicated region fallthrough
CT: control target
= control target key end

     0   :  { %v294_v0 = vmov 0.0   ;;  %vm295_vm0 = vmmov 0   ;;  %s365_s1 = inlined_call_operand.vmem [shape: bf16[128,128], index: 1, kind: input, shape index: {}]   ;;  %s366_s0 = inlined_call_operand.vmem [shape: bf16[16,128], index: 0, kind: input, shape index: {}]   ;;  %s367_s2 = inlined_call_operand.vmem [shape: f32[1,128], index: 2, kind: input, shape index: {}]   ;;  %s368_s3 = inlined_call_operand.vmem [shape: f32[1,128], index: 3, kind: input, shape index: {}]   ;;  %s369_s4 = inlined_call_operand.vmem [shape: f32[1,128], index: 4, kind: input, shape index: {}]   ;;  %s370_s5 = inlined_call_operand.vmem [shape: bf16[16,128], index: 5, kind: output, shape index: {}]  }
   0x1   :  { %255 = vmatprep.subr.bf16.mxu0 %v294_v0  ;;  %v277_v1 = vld [vmem:[%s365_s1] sm:$0xff]   ;;  %271 = vmatprep.mubr.msk.bf16.mxu0 %vm295_vm0, %v294_v0  ;;  %v278_v2 = vld [vmem:[%s365_s1 + $0x8] sm:$0xff]   ;;  %v279_v3 = vld [vmem:[%s365_s1 + $0x10] sm:$0xff]  }
   0x2   :  { %256 = vmatpush3.bf16.msra.mxu0 %v277_v1  ;;  %v280_v4 = vld [vmem:[%s365_s1 + $0x18] sm:$0xff]   ;;  %v281_v5 = vld [vmem:[%s365_s1 + $0x20] sm:$0xff]   ;;  %v282_v6 = vld [vmem:[%s365_s1 + $0x28] sm:$0xff]  }
   0x3   :  { %257 = vmatprep.subr.bf16.mxu0 %v294_v0  ;;  %v283_v7 = vld [vmem:[%s365_s1 + $0x30] sm:$0xff]   ;;  %v284_v8 = vld [vmem:[%s365_s1 + $0x38] sm:$0xff]   ;;  %v285_v9 = vld [vmem:[%s366_s0] sm:$0xff]  }
   0x4   :  { %v234_v10 = vld [vmem:[%s367_s2] ss:$0 sm:$0xff] }
   0x5   :  { %v235_v43 = vld [vmem:[%s368_s3] ss:$0 sm:$0xff] }
   0x6   :  { %258 = vmatpush3.bf16.msra.mxu0 %v278_v2  ;;  %v236_v47 = vld [vmem:[%s369_s4] ss:$0 sm:$0xff] }
   0x7   :  { %259 = vmatprep.subr.bf16.mxu0 %v294_v0 }
   0xa   :  { %260 = vmatpush3.bf16.msra.mxu0 %v279_v3 }
   0xb   :  { %261 = vmatprep.subr.bf16.mxu0 %v294_v0 }
   0xe   :  { %262 = vmatpush3.bf16.msra.mxu0 %v280_v4 }
   0xf   :  { %263 = vmatprep.subr.bf16.mxu0 %v294_v0 }
  0x12   :  { %264 = vmatpush3.bf16.msra.mxu0 %v281_v5 }
  0x13   :  { %265 = vmatprep.subr.bf16.mxu0 %v294_v0 }
  0x16   :  { %266 = vmatpush3.bf16.msra.mxu0 %v282_v6 }
  0x17   :  { %267 = vmatprep.subr.bf16.mxu0 %v294_v0 }
  0x1a   :  { %268 = vmatpush3.bf16.msra.mxu0 %v283_v7 }
  0x1b   :  { %269 = vmatprep.subr.bf16.mxu0 %v294_v0 }
  0x1e   :  { %270 = vmatpush3.bf16.msra.mxu0 %v284_v8 }
  0x21   :  { %272 = vmatmul.mubr.bf16.vlgmr.msra.gmra.mrb[0].mxu0 %v285_v9 }
  0xf4   :  { %v135_v11 = vpop.f32.mrb[0].mxu0 }
  0xf5   :  { %v158_v12 = vadd.f32 %v234_v10, %v135_v11  ;;  %v273_v13 = vpop.f32.mrb[1].mxu0 }
  0xf6   :  { %v138_v14 = vpop.f32.mrb[2].mxu0 }
  0xf7   :  { %v162_v15 = vmul.f32 0.70710677, %v158_v12  ;;  %v159_v16 = vadd.f32 %v234_v10, %v138_v14  ;;  %v274_v17 = vpop.f32.mrb[3].mxu0  ;;  %v160_v20 = vmul.f32 0.5, %v158_v12 }
  0xf9   :  { %286 = verf.f32 %v162_v15  ;;  %v163_v18 = vmul.f32 0.70710677, %v159_v16  ;;  %v161_v25 = vmul.f32 0.5, %v159_v16 }
  0xfb   :  { %288 = verf.f32 %v163_v18 }
 0x103   :  { %v287_v19 = vpop.eup %286 }
 0x104   :  { %v166_v21 = vadd.f32 1.0, %v287_v19 }
 0x105   :  { %v289_v22 = vpop.eup %288 }
 0x106   :  { %v168_v23 = vmul.f32 %v166_v21, %v160_v20  ;;  %v167_v24 = vadd.f32 1.0, %v289_v22 }
 0x108   :  { %172 = vadd.xlane.f32.xlu0 %v168_v23  ;;  %v169_v26 = vmul.f32 %v167_v24, %v161_v25 }
 0x10c   :  { %174 = vadd.xlane.f32.xlu0 %v169_v26 }
 0x195   :  { %v173_v27 = vpop.xlane.xlu0 %172 }
 0x196   :  { %v177_v28 = vmul.f32 0.0078125, %v173_v27 }
 0x198   :  { %v179_v29 = vsub.f32 %v168_v23, %v177_v28 }
 0x199   :  { %v175_v30 = vpop.xlane.xlu0 %174 }
 0x19a   :  { %v178_v31 = vmul.f32 0.0078125, %v175_v30  ;;  %v181_v32 = vmul.f32 %v179_v29, %v179_v29 }
 0x19c   :  { %v180_v33 = vsub.f32 %v169_v26, %v178_v31  ;;  %183 = vadd.xlane.f32.xlu1 %v181_v32 }
 0x19e   :  { %v182_v34 = vmul.f32 %v180_v33, %v180_v33 }
 0x1a0   :  { %185 = vadd.xlane.f32.xlu1 %v182_v34 }
 0x229   :  { %v184_v35 = vpop.xlane.xlu1 %183 }
 0x22a   :  { %v187_v36 = vmul.f32 0.0078125, %v184_v35 }
 0x22c   :  { %v189_v37 = vadd.f32 1e-12, %v187_v36 }
 0x22d   :  { %v186_v38 = vpop.xlane.xlu1 %185 }
 0x22e   :  { %290 = vrsqrt.f32 %v189_v37  ;;  %v188_v39 = vmul.f32 0.0078125, %v186_v38 }
 0x230   :  { %v190_v40 = vadd.f32 1e-12, %v188_v39 }
 0x232   :  { %292 = vrsqrt.f32 %v190_v40 }
 0x238   :  { %v291_v41 = vpop.eup %290 }
 0x239   :  { %v193_v42 = vmul.f32 %v291_v41, %v179_v29 }
 0x23b   :  { %v201_v45 = vmul.f32 %v235_v43, %v193_v42 }
 0x23c   :  { %v293_v44 = vpop.eup %292 }
 0x23d   :  { %v194_v46 = vmul.f32 %v293_v44, %v180_v33  ;;  %v209_v49 = vadd.f32 %v236_v47, %v201_v45 }
 0x23f   :  { %v202_v48 = vmul.f32 %v235_v43, %v194_v46 }
 0x241   :  { %v210_v50 = vadd.f32 %v236_v47, %v202_v48 }
 0x243   :  { %v244_v51 = vpack.c.bf16 %v210_v50, %v209_v49 }
 0x245   :  { %245 = vst [vmem:[%s370_s5] sm:$0xff] %v244_v51  }

// kernel: multimodal_forward.134
= control target key start
LH: loop header
LB: loop body
LE: loop exit
PB: predicated region body
PF: predicated region fallthrough
CT: control target
= control target key end

     0   :  { %v210_v0 = vmov 0.0   ;;  %vm211_vm0 = vmmov 0   ;;  %s268_s1 = inlined_call_operand.vmem [shape: bf16[128,128], index: 1, kind: input, shape index: {}]   ;;  %s269_s0 = inlined_call_operand.vmem [shape: bf16[16,128], index: 0, kind: input, shape index: {}]   ;;  %s270_s2 = inlined_call_operand.vmem [shape: f32[1,128], index: 2, kind: input, shape index: {}]   ;;  %s271_s3 = inlined_call_operand.vmem [shape: f32[16,128], index: 3, kind: output, shape index: {}]  }
   0x1   :  { %179 = vmatprep.subr.bf16.mxu0 %v210_v0  ;;  %v201_v1 = vld [vmem:[%s268_s1] sm:$0xff]   ;;  %195 = vmatprep.mubr.msk.bf16.mxu0 %vm211_vm0, %v210_v0  ;;  %v202_v2 = vld [vmem:[%s268_s1 + $0x8] sm:$0xff]   ;;  %v203_v3 = vld [vmem:[%s268_s1 + $0x10] sm:$0xff]  }
   0x2   :  { %180 = vmatpush3.bf16.msra.mxu0 %v201_v1  ;;  %v204_v4 = vld [vmem:[%s268_s1 + $0x18] sm:$0xff]   ;;  %v205_v5 = vld [vmem:[%s268_s1 + $0x20] sm:$0xff]   ;;  %v206_v6 = vld [vmem:[%s268_s1 + $0x28] sm:$0xff]  }
   0x3   :  { %181 = vmatprep.subr.bf16.mxu0 %v210_v0  ;;  %v207_v7 = vld [vmem:[%s268_s1 + $0x30] sm:$0xff]   ;;  %v208_v8 = vld [vmem:[%s268_s1 + $0x38] sm:$0xff]   ;;  %v209_v9 = vld [vmem:[%s269_s0] sm:$0xff]  }
   0x4   :  { %v169_v10 = vld [vmem:[%s270_s2] ss:$0 sm:$0xff] }
   0x6   :  { %182 = vmatpush3.bf16.msra.mxu0 %v202_v2 }
   0x7   :  { %183 = vmatprep.subr.bf16.mxu0 %v210_v0 }
   0xa   :  { %184 = vmatpush3.bf16.msra.mxu0 %v203_v3 }
   0xb   :  { %185 = vmatprep.subr.bf16.mxu0 %v210_v0 }
   0xe   :  { %186 = vmatpush3.bf16.msra.mxu0 %v204_v4 }
   0xf   :  { %187 = vmatprep.subr.bf16.mxu0 %v210_v0 }
  0x12   :  { %188 = vmatpush3.bf16.msra.mxu0 %v205_v5 }
  0x13   :  { %189 = vmatprep.subr.bf16.mxu0 %v210_v0 }
  0x16   :  { %190 = vmatpush3.bf16.msra.mxu0 %v206_v6 }
  0x17   :  { %191 = vmatprep.subr.bf16.mxu0 %v210_v0 }
  0x1a   :  { %192 = vmatpush3.bf16.msra.mxu0 %v207_v7 }
  0x1b   :  { %193 = vmatprep.subr.bf16.mxu0 %v210_v0 }
  0x1e   :  { %194 = vmatpush3.bf16.msra.mxu0 %v208_v8 }
  0x21   :  { %196 = vmatmul.mubr.bf16.vlgmr.msra.gmra.mrb[0].mxu0 %v209_v9 }
  0xf4   :  { %v129_v11 = vpop.f32.mrb[0].mxu0 }
  0xf5   :  { %v152_v12 = vadd.f32 %v169_v10, %v129_v11  ;;  %v197_v13 = vpop.f32.mrb[1].mxu0 }
  0xf6   :  { %v132_v14 = vpop.f32.mrb[2].mxu0 }
  0xf7   :  { %154 = vst [vmem:[%s271_s3] sm:$0xff] %v152_v12  ;;  %v153_v15 = vadd.f32 %v169_v10, %v132_v14  ;;  %v198_v16 = vpop.f32.mrb[3].mxu0 }
  0xf9   :  { %155 = vst [vmem:[%s271_s3 + $0x8] sm:$0xff] %v153_v15 }

// kernel: multimodal_forward.136
= control target key start
LH: loop header
LB: loop body
LE: loop exit
PB: predicated region body
PF: predicated region fallthrough
CT: control target
= control target key end

     0   :  { %v194_v0 = vmov 0.0   ;;  %vm195_vm0 = vmmov 0   ;;  %s249_s1 = inlined_call_operand.vmem [shape: bf16[128,128], index: 1, kind: input, shape index: {}]   ;;  %s250_s0 = inlined_call_operand.vmem [shape: bf16[8,128], index: 0, kind: input, shape index: {}]   ;;  %s251_s2 = inlined_call_operand.vmem [shape: f32[1,128], index: 2, kind: input, shape index: {}]   ;;  %s252_s3 = inlined_call_operand.vmem [shape: f32[8,128], index: 3, kind: output, shape index: {}]  }
   0x1   :  { %164 = vmatprep.subr.bf16.mxu0 %v194_v0  ;;  %v186_v1 = vld [vmem:[%s249_s1] sm:$0xff]   ;;  %180 = vmatprep.mubr.msk.bf16.mxu0 %vm195_vm0, %v194_v0  ;;  %v187_v2 = vld [vmem:[%s249_s1 + $0x8] sm:$0xff]   ;;  %v188_v3 = vld [vmem:[%s249_s1 + $0x10] sm:$0xff]  }
   0x2   :  { %165 = vmatpush3.bf16.msra.mxu0 %v186_v1  ;;  %v189_v4 = vld [vmem:[%s249_s1 + $0x18] sm:$0xff]   ;;  %v190_v5 = vld [vmem:[%s249_s1 + $0x20] sm:$0xff]   ;;  %v191_v6 = vld [vmem:[%s249_s1 + $0x28] sm:$0xff]  }
   0x3   :  { %166 = vmatprep.subr.bf16.mxu0 %v194_v0  ;;  %v192_v7 = vld [vmem:[%s249_s1 + $0x30] sm:$0xff]   ;;  %v193_v8 = vld [vmem:[%s249_s1 + $0x38] sm:$0xff]   ;;  %v21_v9 = vld [vmem:[%s250_s0] sm:$0xf] }
   0x4   :  { %v154_v10 = vld [vmem:[%s251_s2] ss:$0 sm:$0xff] }
   0x6   :  { %167 = vmatpush3.bf16.msra.mxu0 %v187_v2 }
   0x7   :  { %168 = vmatprep.subr.bf16.mxu0 %v194_v0 }
   0xa   :  { %169 = vmatpush3.bf16.msra.mxu0 %v188_v3 }
   0xb   :  { %170 = vmatprep.subr.bf16.mxu0 %v194_v0 }
   0xe   :  { %171 = vmatpush3.bf16.msra.mxu0 %v189_v4 }
   0xf   :  { %172 = vmatprep.subr.bf16.mxu0 %v194_v0 }
  0x12   :  { %173 = vmatpush3.bf16.msra.mxu0 %v190_v5 }
  0x13   :  { %174 = vmatprep.subr.bf16.mxu0 %v194_v0 }
  0x16   :  { %175 = vmatpush3.bf16.msra.mxu0 %v191_v6 }
  0x17   :  { %176 = vmatprep.subr.bf16.mxu0 %v194_v0 }
  0x1a   :  { %177 = vmatpush3.bf16.msra.mxu0 %v192_v7 }
  0x1b   :  { %178 = vmatprep.subr.bf16.mxu0 %v194_v0 }
  0x1e   :  { %179 = vmatpush3.bf16.msra.mxu0 %v193_v8 }
  0x21   :  { %181 = vmatmul.mubr.bf16.vlgmr.msra.gmra.mrb[0].mxu0 %v21_v9 }
  0xf4   :  { %v120_v11 = vpop.f32.mrb[0].mxu0 }
  0xf5   :  { %v139_v12 = vadd.f32 %v154_v10, %v120_v11  ;;  %v182_v13 = vpop.f32.mrb[1].mxu0 }
  0xf6   :  { %v123_v14 = vpop.f32.mrb[2].mxu0 }
  0xf7   :  { %v140_v15 = vmax.f32 %v139_v12, 0.0  ;;  %v183_v16 = vpop.f32.mrb[3].mxu0 }
  0xf9   :  { %141 = vst [vmem:[%s252_s3] sm:$0xff] %v140_v15 }

// kernel: multimodal_forward.135
= control target key start
LH: loop header
LB: loop body
LE: loop exit
PB: predicated region body
PF: predicated region fallthrough
CT: control target
= control target key end

     0   :  { %s354_s1 = inlined_call_operand.vmem [shape: bf16[256,128], index: 1, kind: input, shape index: {}]   ;;  %s355_s0 = inlined_call_operand.vmem [shape: bf16[8,256], index: 0, kind: input, shape index: {}]   ;;  %s356_s2 = inlined_call_operand.vmem [shape: f32[1,128], index: 2, kind: input, shape index: {}]   ;;  %s357_s3 = inlined_call_operand.vmem [shape: bf16[8,128], index: 3, kind: output, shape index: {}]  }
   0x1   :  { %v259_v0 = vld [vmem:[%s354_s1 + $0x40] sm:$0xff]   ;;  %v261_v2 = vld [vmem:[%s354_s1 + $0x48] sm:$0xff]   ;;  %v263_v4 = vld [vmem:[%s354_s1 + $0x50] sm:$0xff]  }
   0x2   :  { %v260_v1 = vld [vmem:[%s354_s1] sm:$0xff]   ;;  %237 = vmatprep.subr.bf16.mxu0 %v259_v0  ;;  %v262_v3 = vld [vmem:[%s354_s1 + $0x8] sm:$0xff]   ;;  %v264_v5 = vld [vmem:[%s354_s1 + $0x10] sm:$0xff]  }
   0x3   :  { %238 = vmatpush3.bf16.msra.mxu0 %v260_v1  ;;  %v265_v6 = vld [vmem:[%s354_s1 + $0x58] sm:$0xff]   ;;  %v267_v8 = vld [vmem:[%s354_s1 + $0x60] sm:$0xff]   ;;  %v269_v10 = vld [vmem:[%s354_s1 + $0x68] sm:$0xff]  }
   0x4   :  { %239 = vmatprep.subr.bf16.mxu0 %v261_v2  ;;  %v266_v7 = vld [vmem:[%s354_s1 + $0x18] sm:$0xff]   ;;  %v268_v9 = vld [vmem:[%s354_s1 + $0x20] sm:$0xff]   ;;  %v270_v13 = vld [vmem:[%s354_s1 + $0x28] sm:$0xff]  }
   0x5   :  { %v21_v11 = vld [vmem:[%s355_s0] sm:$0xff]  ;;  %v271_v14 = vld [vmem:[%s354_s1 + $0x70] sm:$0xff]   ;;  %v273_v16 = vld [vmem:[%s354_s1 + $0x78] sm:$0xff]  }
   0x6   :  { %v219_v12 = vcombine.high %v21_v11, %v21_v11  ;;  %v272_v15 = vld [vmem:[%s354_s1 + $0x30] sm:$0xff]   ;;  %v274_v17 = vld [vmem:[%s354_s1 + $0x38] sm:$0xff]   ;;  %v218_v18 = vcombine.low %v21_v11, %v21_v11  ;;  %v236_v21 = vld [vmem:[%s356_s2] ss:$0 sm:$0xff] }
   0x7   :  { %240 = vmatpush3.bf16.msra.mxu0 %v262_v3 }
   0x8   :  { %241 = vmatprep.subr.bf16.mxu0 %v263_v4  ;;  %189 = vmatprep.mubr.bf16.mxu0 %v219_v12 }
   0xb   :  { %242 = vmatpush3.bf16.msra.mxu0 %v264_v5 }
   0xc   :  { %243 = vmatprep.subr.bf16.mxu0 %v265_v6 }
   0xf   :  { %244 = vmatpush3.bf16.msra.mxu0 %v266_v7 }
  0x10   :  { %245 = vmatprep.subr.bf16.mxu0 %v267_v8 }
  0x13   :  { %246 = vmatpush3.bf16.msra.mxu0 %v268_v9 }
  0x14   :  { %247 = vmatprep.subr.bf16.mxu0 %v269_v10 }
  0x17   :  { %248 = vmatpush3.bf16.msra.mxu0 %v270_v13 }
  0x18   :  { %249 = vmatprep.subr.bf16.mxu0 %v271_v14 }
  0x1b   :  { %250 = vmatpush3.bf16.msra.mxu0 %v272_v15 }
  0x1c   :  { %251 = vmatprep.subr.bf16.mxu0 %v273_v16 }
  0x1f   :  { %252 = vmatpush3.bf16.msra.mxu0 %v274_v17 }
  0x22   :  { %190 = vmatmul.mubr.bf16.vlgmr.msra.gmra.mrb[0].mxu0 %v218_v18 }
  0xf5   :  { %v253_v19 = vpop.f32.mrb[0].mxu0 }
  0xf6   :  { %v254_v20 = vpop.f32.mrb[1].mxu0 }
  0xf7   :  { %v255_v22 = vadd.f32 %v254_v20, %v253_v19  ;;  %v256_v23 = vpop.f32.mrb[2].mxu0 }
  0xf8   :  { %v257_v24 = vpop.f32.mrb[3].mxu0 }
  0xf9   :  { %v210_v25 = vadd.f32 %v255_v22, %v236_v21 }
  0xfb   :  { %v211_v26 = vmax.f32 %v210_v25, 0.0 }
  0xfd   :  { %v212_v27 = vpack.c.bf16 %v211_v26, %v211_v26 }
  0xff   :  { %213 = vst [vmem:[%s357_s3] sm:$0xf] %v212_v27 }

// kernel: multimodal_forward.137
= control target key start
LH: loop header
LB: loop body
LE: loop exit
PB: predicated region body
PF: predicated region fallthrough
CT: control target
= control target key end

     0   :  { %v193_v0 = vmov 0.0   ;;  %vm194_vm0 = vmmov 0   ;;  %s248_s1 = inlined_call_operand.vmem [shape: bf16[128,128], index: 1, kind: input, shape index: {}]   ;;  %s249_s0 = inlined_call_operand.vmem [shape: bf16[8,128], index: 0, kind: input, shape index: {}]   ;;  %s250_s2 = inlined_call_operand.vmem [shape: f32[1,128], index: 2, kind: input, shape index: {}]   ;;  %s251_s3 = inlined_call_operand.vmem [shape: f32[8,128], index: 3, kind: output, shape index: {}]  }
   0x1   :  { %163 = vmatprep.subr.bf16.mxu0 %v193_v0  ;;  %v185_v1 = vld [vmem:[%s248_s1] sm:$0xff]   ;;  %179 = vmatprep.mubr.msk.bf16.mxu0 %vm194_vm0, %v193_v0  ;;  %v186_v2 = vld [vmem:[%s248_s1 + $0x8] sm:$0xff]   ;;  %v187_v3 = vld [vmem:[%s248_s1 + $0x10] sm:$0xff]  }
   0x2   :  { %164 = vmatpush3.bf16.msra.mxu0 %v185_v1  ;;  %v188_v4 = vld [vmem:[%s248_s1 + $0x18] sm:$0xff]   ;;  %v189_v5 = vld [vmem:[%s248_s1 + $0x20] sm:$0xff]   ;;  %v190_v6 = vld [vmem:[%s248_s1 + $0x28] sm:$0xff]  }
   0x3   :  { %165 = vmatprep.subr.bf16.mxu0 %v193_v0  ;;  %v191_v7 = vld [vmem:[%s248_s1 + $0x30] sm:$0xff]   ;;  %v192_v8 = vld [vmem:[%s248_s1 + $0x38] sm:$0xff]   ;;  %v21_v9 = vld [vmem:[%s249_s0] sm:$0xf] }
   0x4   :  { %v153_v10 = vld [vmem:[%s250_s2] ss:$0 sm:$0xff] }
   0x6   :  { %166 = vmatpush3.bf16.msra.mxu0 %v186_v2 }
   0x7   :  { %167 = vmatprep.subr.bf16.mxu0 %v193_v0 }
   0xa   :  { %168 = vmatpush3.bf16.msra.mxu0 %v187_v3 }
   0xb   :  { %169 = vmatprep.subr.bf16.mxu0 %v193_v0 }
   0xe   :  { %170 = vmatpush3.bf16.msra.mxu0 %v188_v4 }
   0xf   :  { %171 = vmatprep.subr.bf16.mxu0 %v193_v0 }
  0x12   :  { %172 = vmatpush3.bf16.msra.mxu0 %v189_v5 }
  0x13   :  { %173 = vmatprep.subr.bf16.mxu0 %v193_v0 }
  0x16   :  { %174 = vmatpush3.bf16.msra.mxu0 %v190_v6 }
  0x17   :  { %175 = vmatprep.subr.bf16.mxu0 %v193_v0 }
  0x1a   :  { %176 = vmatpush3.bf16.msra.mxu0 %v191_v7 }
  0x1b   :  { %177 = vmatprep.subr.bf16.mxu0 %v193_v0 }
  0x1e   :  { %178 = vmatpush3.bf16.msra.mxu0 %v192_v8 }
  0x21   :  { %180 = vmatmul.mubr.bf16.vlgmr.msra.gmra.mrb[0].mxu0 %v21_v9 }
  0xf4   :  { %v120_v11 = vpop.f32.mrb[0].mxu0 }
  0xf5   :  { %v139_v12 = vadd.f32 %v153_v10, %v120_v11  ;;  %v181_v13 = vpop.f32.mrb[1].mxu0 }
  0xf6   :  { %v123_v14 = vpop.f32.mrb[2].mxu0 }
  0xf7   :  { %140 = vst [vmem:[%s251_s3] sm:$0xff] %v139_v12  ;;  %v182_v15 = vpop.f32.mrb[3].mxu0 }

</bundles_post_ra>
